<compile_context>
chip_gen: v7x
topology: tpu7x:2x2x1
jax: 0.10.0
libtpu: 0.0.40
codegen_flags: <defaults>
</compile_context>

<pallas_src>
import functools

import jax
import jax.numpy as jnp
import numpy as np
from jax import lax
from jax.experimental import pallas as pl
from jax.experimental.pallas import tpu as pltpu

BN_EPS = 1e-5  # nn.BatchNorm2d default


# ----------------------------- kernel helpers --------------------------------

def _silu(v):
    # sigmoid via EUP: exp + approx reciprocal both use the transcendental slot,
    # keeping the VPU free for the depthwise taps.  (~2^-12 rel error: fine.)
    return v * pl.reciprocal(1.0 + jnp.exp(-v), approx=True)


def _pointwise_mxu(w, x, bias):
    """1x1 conv (+ folded BN bias) as an MXU matmul: (Cout, Cin) @ (Cin, P)."""
    y = jnp.dot(w, x, preferred_element_type=jnp.float32,
                precision=lax.Precision.HIGHEST)
    return y if bias is None else y + bias


def _depthwise5x5_same(y, wm_ref, bias, W, P):
    """5x5 depthwise conv, stride 1, 'same' zero padding, on the flat (C, P) map.

    y:      (C, P) float32, P == H*W, pixels row-major on the lane axis.
    wm_ref: (25, C, P) Ref of host-precomputed *masked* weights:
            wm[t, c, p] = W[c, 0, di, dj] * border_mask[t, p], t = di*5 + dj.
    bias:   (C, 1).
    Each tap is a lane rotation (XLU) of the flat map times its masked weight, so
    the zero halo never exists and the inner loop has no mask/select VALU work.
    """
    acc = None
    for di in range(5):
        for dj in range(5):
            t = di * 5 + dj
            off = (di - 2) * W + (dj - 2)        # flat offset of this tap's source pixel
            tap = y if off == 0 else pltpu.roll(y, (-off) % P, axis=1)
            term = tap * wm_ref[t]
            acc = term if acc is None else acc + term
    return acc + bias


# ----------------------------- fused kernel ----------------------------------

def _ghost_bottleneck_kernel(x_ref, wp1_ref, wp2_ref, wd1_ref, wd2_ref, b_ref,
                             o_ref, *, H, W, c_h1, c_h2, slot):
    """B images per grid step.  x_ref / o_ref are lane-dense (B, C, H*W) blocks."""
    P = H * W
    B = x_ref.shape[0]

    # Tiny grid-invariant operands: load once per step, shared by all B images.
    w1 = wp1_ref[...]                              # (c_h1, c1)
    w2 = wp2_ref[...]                              # (2*c_h2, c_h1): [W2a; W2b]
    w2a, w2b = w2[:c_h2], w2[c_h2:]
    bp1 = b_ref[0 * slot:0 * slot + c_h1]          # (c_h1, 1)
    bd1 = b_ref[1 * slot:1 * slot + c_h1]          # (c_h1, 1)
    bp2 = b_ref[2 * slot:2 * slot + c_h2]          # (c_h2, 1)
    bd2 = b_ref[3 * slot:3 * slot + c_h2]          # (c_h2, 1)

    for b in range(B):                             # unrolled: B is small & static
        # GhostConv #1 (act=SiLU): 1x1 conv (MXU) -> 5x5 DW conv (rolls).
        # x_ref[b] is consumed by the matmul only (short live range); the
        # residual re-reads x_ref slices at the stores below.
        y1 = _silu(_pointwise_mxu(w1, x_ref[b].astype(jnp.float32), bp1))    # (c_h1, P)
        z1 = _silu(_depthwise5x5_same(y1, wd1_ref, bd1, W, P))               # (c_h1, P)

        # GhostConv #2 (act=False).  Its 1x1 conv consumes concat(y1, z1) along
        # channels; the concat is never materialized: the weight halves were
        # stacked on the host and are static-sliced above.
        y2 = _pointwise_mxu(w2a, y1, None) + _pointwise_mxu(w2b, z1, bp2)    # (c_h2, P)
        z2 = _depthwise5x5_same(y2, wd2_ref, bd2, W, P)                      # (c_h2, P)

        # Ghost concat of (y2, z2) + identity shortcut, fused into the stores.
        o_ref[b, 0:c_h2, :] = (
            y2 + x_ref[b, 0:c_h2, :].astype(jnp.float32)).astype(o_ref.dtype)
        o_ref[b, c_h2:2 * c_h2, :] = (
            z2 + x_ref[b, c_h2:2 * c_h2, :].astype(jnp.float32)).astype(o_ref.dtype)


# ----------------------------- host-side prep --------------------------------

def _fold_bn(p):
    scale = p["gamma"] / jnp.sqrt(p["var"] + BN_EPS)
    w_f = p["w"] * scale[:, None, None, None]
    b_f = p["beta"] - p["mean"] * scale
    return w_f, b_f


def _prep_pointwise(p):
    w, b = _fold_bn(p)                               # (cout, cin, 1, 1), (cout,)
    return w[:, :, 0, 0], b                          # (cout, cin), (cout,)


def _border_masks(H, W):
    """(25, H*W) float32 validity masks for the 5x5 'same' taps (host-side)."""
    P = H * W
    pix = np.arange(P)
    row, col = pix // W, pix % W
    m = np.zeros((25, P), np.float32)
    for di in range(5):
        for dj in range(5):
            oi, oj = di - 2, dj - 2
            m[di * 5 + dj] = ((row + oi >= 0) & (row + oi < H) &
                              (col + oj >= 0) & (col + oj < W))
    return jnp.asarray(m)


def _prep_depthwise_masked(p, masks):
    """Fold BN and pre-multiply each tap weight by its border mask -> (25, C, P)."""
    w, b = _fold_bn(p)                               # (c, 1, 5, 5), (c,)
    c = w.shape[0]
    w_taps = jnp.transpose(w.reshape(c, 25))         # (25, c); [t, ch] = W[ch,0,di,dj]
    wm = w_taps[:, :, None] * masks[:, None, :]      # (25, c, P)
    return wm, b


def ghost_bottleneck(x_nchw, params, s=1, images_per_step=None):
    """GhostBottleneck forward (inference), NCHW in / NCHW out."""
    if s != 1:
        # TODO(synk): stride-2 variant (DWConv main branch + DWConv/Conv shortcut)
        # not implemented; the module default is s=1.
        raise NotImplementedError("Only the default s=1 GhostBottleneck is implemented.")

    N, c1, H, W = x_nchw.shape
    P = H * W
    assert P % 128 == 0, "lane-dense layout assumes H*W is a multiple of 128"

    wp1, bp1 = _prep_pointwise(params["gc1_cv1"])            # (c_/2, c1)
    wp2, bp2 = _prep_pointwise(params["gc2_cv1"])            # (c2/2, c_)
    masks = _border_masks(H, W)                              # shared by both DW stages
    wd1, bd1 = _prep_depthwise_masked(params["gc1_cv2"], masks)   # (25, c_/2, P)
    wd2, bd2 = _prep_depthwise_masked(params["gc2_cv2"], masks)   # (25, c2/2, P)

    c_h1 = wp1.shape[0]                                      # c_ // 2
    c_h2 = wp2.shape[0]                                      # c2 // 2
    c2 = 2 * c_h2
    assert c1 == c2, "s=1 GhostBottleneck uses an identity shortcut -> requires c1 == c2"
    assert wp2.shape[1] == 2 * c_h1

    # Split the second 1x1 weight so the kernel never builds the ghost concat;
    # stack the halves so it stays ONE sublane-aligned operand (sliced in-kernel).
    wp2_pack = jnp.concatenate([wp2[:, :c_h1], wp2[:, c_h1:]], axis=0)   # (2*c_h2, c_h1)

    # Pack the four folded-BN biases into one operand, each in an 8-row-aligned slot.
    slot = 8 * ((max(c_h1, c_h2) + 7) // 8)
    bias_pack = jnp.zeros((4 * slot, 1), jnp.float32)
    bias_pack = bias_pack.at[0 * slot:0 * slot + c_h1, 0].set(bp1)
    bias_pack = bias_pack.at[1 * slot:1 * slot + c_h1, 0].set(bd1)
    bias_pack = bias_pack.at[2 * slot:2 * slot + c_h2, 0].set(bp2)
    bias_pack = bias_pack.at[3 * slot:3 * slot + c_h2, 0].set(bd2)

    # Images per grid step: amortize per-step overhead and reuse VMEM-resident
    # weights/masks, but keep the parallel grid length >= 2 (v7x has 2 TCs).
    if images_per_step is None:
        images_per_step = N // 2 if (N >= 2 and N % 2 == 0) else 1
    B = images_per_step
    assert N % B == 0, "N must be divisible by images_per_step"

    x_flat = x_nchw.reshape(N, c1, P)            # NCHW -> (N, C, H*W): free reshape

    kernel = functools.partial(_ghost_bottleneck_kernel,
                               H=H, W=W, c_h1=c_h1, c_h2=c_h2, slot=slot)
    out_flat = pl.pallas_call(
        kernel,
        out_shape=jax.ShapeDtypeStruct((N, c2, P), x_nchw.dtype),
        grid=(N // B,),
        in_specs=[
            pl.BlockSpec((B, c1, P), lambda n: (n, 0, 0)),        # x (B images / step)
            pl.BlockSpec((c_h1, c1), lambda n: (0, 0)),           # wp1 (1x1 #1, MXU)
            pl.BlockSpec((2 * c_h2, c_h1), lambda n: (0, 0)),     # wp2 halves stacked
            pl.BlockSpec((25, c_h1, P), lambda n: (0, 0, 0)),     # DW1 masked tap weights
            pl.BlockSpec((25, c_h2, P), lambda n: (0, 0, 0)),     # DW2 masked tap weights
            pl.BlockSpec((4 * slot, 1), lambda n: (0, 0)),        # packed biases
        ],
        out_specs=pl.BlockSpec((B, c2, P), lambda n: (n, 0, 0)),
        compiler_params=pltpu.CompilerParams(
            dimension_semantics=("parallel",)),                   # megacore / v7x 2-TC
    )(x_flat, wp1, wp2_pack, wd1, wd2, bias_pack)

    return out_flat.reshape(N, c2, H, W)


# ----------------------------- parameters ------------------------------------

def make_conv_params(key, cin, cout, k, groups):
    kw, kg, kb, km, kv = jax.random.split(key, 5)
    return dict(
        w=jax.random.normal(kw, (cout, cin // groups, k, k), jnp.float32) * 0.1,
        gamma=1.0 + 0.1 * jax.random.normal(kg, (cout,), jnp.float32),
        beta=0.1 * jax.random.normal(kb, (cout,), jnp.float32),
        mean=0.1 * jax.random.normal(km, (cout,), jnp.float32),
        var=jnp.abs(jax.random.normal(kv, (cout,), jnp.float32)) + 0.5,
    )


# ----------------------------- pure-JAX reference -----------------------------

def _conv_bn_ref(x_nchw, p, stride, pad, groups, act):
    w_f, b_f = _fold_bn(p)
    y = jax.lax.conv_general_dilated(
        x_nchw, w_f, (stride, stride), [(pad, pad), (pad, pad)],
        feature_group_count=groups,
        dimension_numbers=("NCHW", "OIHW", "NCHW"),
        precision=jax.lax.Precision.HIGHEST,
    )
    y = y + b_f[None, :, None, None]
    if act:
        y = y * jax.nn.sigmoid(y)
    return y


def _ghost_conv_ref(x, p1, p2, act):
    y = _conv_bn_ref(x, p1, 1, 0, 1, act)
    y2 = _conv_bn_ref(y, p2, 1, 2, y.shape[1], act)
    return jnp.concatenate([y, y2], axis=1)


def ghost_bottleneck_ref(x, params):
    g1 = _ghost_conv_ref(x, params["gc1_cv1"], params["gc1_cv2"], True)
    g2 = _ghost_conv_ref(g1, params["gc2_cv1"], params["gc2_cv2"], False)
    return g2 + x


# ----------------------------- main -------------------------------------------

if __name__ == "__main__":
    key = jax.random.PRNGKey(0)
    N, c1, c2, H, W = 4, 16, 16, 16, 16      # s=1 identity shortcut => c1 == c2
    c_ = c2 // 2

    kx, k1, k2, k3, k4 = jax.random.split(key, 5)
    x = jax.random.normal(kx, (N, c1, H, W), jnp.float32)

    params = {
        # GhostConv(c1, c_): cv1 = Conv(c1, c_//2, 1), cv2 = Conv(c_//2, c_//2, 5, g=c_//2)
        "gc1_cv1": make_conv_params(k1, c1, c_ // 2, 1, 1),
        "gc1_cv2": make_conv_params(k2, c_ // 2, c_ // 2, 5, c_ // 2),
        # GhostConv(c_, c2, act=False): cv1 = Conv(c_, c2//2, 1), cv2 = Conv(c2//2, c2//2, 5, g=c2//2)
        "gc2_cv1": make_conv_params(k3, c_, c2 // 2, 1, 1),
        "gc2_cv2": make_conv_params(k4, c2 // 2, c2 // 2, 5, c2 // 2),
    }

    out = jax.block_until_ready(ghost_bottleneck(x, params))   # B=2 images/step, grid=(2,)
    ref = jax.block_until_ready(ghost_bottleneck_ref(x, params))

    assert out.shape == (N, c2, H, W), out.shape
    # atol covers the approx-reciprocal SiLU (~2^-12 rel) chained through two stages.
    np.testing.assert_allclose(np.asarray(out), np.asarray(ref), atol=2e-3, rtol=1e-3)
    print("KERNEL_OK")
</pallas_src>

<mosaic_0001>
module attributes {stable_mosaic.version = 11 : i64} {
  func.func @_ghost_bottleneck_kernel(%arg0: i32, %arg1: memref<2x16x256xf32, #tpu.memory_space<vmem>>, %arg2: memref<4x16xf32, #tpu.memory_space<vmem>>, %arg3: memref<16x4xf32, #tpu.memory_space<vmem>>, %arg4: memref<25x4x256xf32, #tpu.memory_space<vmem>>, %arg5: memref<25x8x256xf32, #tpu.memory_space<vmem>>, %arg6: memref<32x1xf32, #tpu.memory_space<vmem>>, %arg7: memref<2x16x256xf32, #tpu.memory_space<vmem>>) attributes {dimension_semantics = [#tpu.dimension_semantics<parallel>], iteration_bounds = array<i64: 2>, scalar_prefetch = 0 : i64, scratch_operands = 0 : i64, tpu.core_type = #tpu.core_type<tc>, window_params = [{transform_indices = @transform_0, window_bounds = array<i64: 2, 16, 256>}, {pipeline_mode = #tpu.pipeline_mode<synchronous>, transform_indices = @transform_1, window_bounds = array<i64: 4, 16>}, {pipeline_mode = #tpu.pipeline_mode<synchronous>, transform_indices = @transform_2, window_bounds = array<i64: 16, 4>}, {pipeline_mode = #tpu.pipeline_mode<synchronous>, transform_indices = @transform_3, window_bounds = array<i64: 25, 4, 256>}, {pipeline_mode = #tpu.pipeline_mode<synchronous>, transform_indices = @transform_4, window_bounds = array<i64: 25, 8, 256>}, {pipeline_mode = #tpu.pipeline_mode<synchronous>, transform_indices = @transform_5, window_bounds = array<i64: 32, 1>}, {transform_indices = @transform_6, window_bounds = array<i64: 2, 16, 256>}]} {
    %c0 = arith.constant 0 : index
    %c0_0 = arith.constant 0 : index
    %0 = vector.load %arg2[%c0, %c0_0] : memref<4x16xf32, #tpu.memory_space<vmem>>, vector<4x16xf32>
    %c0_1 = arith.constant 0 : index
    %c0_2 = arith.constant 0 : index
    %1 = vector.load %arg3[%c0_1, %c0_2] : memref<16x4xf32, #tpu.memory_space<vmem>>, vector<16x4xf32>
    %2 = vector.extract_strided_slice %1 {offsets = [0, 0], sizes = [8, 4], strides = [1, 1]} : vector<16x4xf32> to vector<8x4xf32>
    %3 = vector.extract_strided_slice %1 {offsets = [8, 0], sizes = [8, 4], strides = [1, 1]} : vector<16x4xf32> to vector<8x4xf32>
    %c0_3 = arith.constant 0 : index
    %c0_4 = arith.constant 0 : index
    %4 = vector.load %arg6[%c0_3, %c0_4] : memref<32x1xf32, #tpu.memory_space<vmem>>, vector<4x1xf32>
    %c8 = arith.constant 8 : index
    %c0_5 = arith.constant 0 : index
    %5 = vector.load %arg6[%c8, %c0_5] : memref<32x1xf32, #tpu.memory_space<vmem>>, vector<4x1xf32>
    %c16 = arith.constant 16 : index
    %c0_6 = arith.constant 0 : index
    %6 = vector.load %arg6[%c16, %c0_6] : memref<32x1xf32, #tpu.memory_space<vmem>>, vector<8x1xf32>
    %c24 = arith.constant 24 : index
    %c0_7 = arith.constant 0 : index
    %7 = vector.load %arg6[%c24, %c0_7] : memref<32x1xf32, #tpu.memory_space<vmem>>, vector<8x1xf32>
    %c0_8 = arith.constant 0 : index
    %c0_9 = arith.constant 0 : index
    %c0_10 = arith.constant 0 : index
    %8 = vector.load %arg1[%c0_8, %c0_9, %c0_10] : memref<2x16x256xf32, #tpu.memory_space<vmem>>, vector<1x16x256xf32>
    %9 = vector.shape_cast %8 : vector<1x16x256xf32> to vector<16x256xf32>
    %cst = arith.constant dense<0.000000e+00> : vector<4x256xf32>
    %10 = tpu.matmul %0, %9, %cst {dimension_numbers = #tpu.dot_dimension_numbers<[1], [0], [0], [1], [0, 0, 1, 1], [], []>, precision = #tpu.contract_precision<fp32>} : vector<4x16xf32>, vector<16x256xf32>, vector<4x256xf32> -> vector<4x256xf32>
    %11 = vector.broadcast %4 : vector<4x1xf32> to vector<4x256xf32>
    %12 = arith.addf %10, %11 : vector<4x256xf32>
    %cst_11 = arith.constant 0.000000e+00 : f32
    %13 = vector.broadcast %cst_11 : f32 to vector<4x256xf32>
    %14 = arith.subf %13, %12 : vector<4x256xf32>
    %15 = math.exp %14 : vector<4x256xf32>
    %cst_12 = arith.constant 1.000000e+00 : f32
    %16 = vector.broadcast %cst_12 : f32 to vector<4x256xf32>
    %17 = arith.addf %16, %15 : vector<4x256xf32>
    %18 = tpu.reciprocal %17 {approx = true} : vector<4x256xf32> -> vector<4x256xf32>
    %19 = arith.mulf %12, %18 : vector<4x256xf32>
    %c34_i32 = arith.constant 34 : i32
    %20 = tpu.dynamic_rotate %19 by %c34_i32 dim 1 : vector<4x256xf32>, i32 -> vector<4x256xf32>
    %c0_13 = arith.constant 0 : index
    %c0_14 = arith.constant 0 : index
    %c0_15 = arith.constant 0 : index
    %21 = vector.load %arg4[%c0_13, %c0_14, %c0_15] : memref<25x4x256xf32, #tpu.memory_space<vmem>>, vector<1x4x256xf32>
    %22 = vector.shape_cast %21 : vector<1x4x256xf32> to vector<4x256xf32>
    %23 = arith.mulf %20, %22 : vector<4x256xf32>
    %c33_i32 = arith.constant 33 : i32
    %24 = tpu.dynamic_rotate %19 by %c33_i32 dim 1 : vector<4x256xf32>, i32 -> vector<4x256xf32>
    %c1 = arith.constant 1 : index
    %c0_16 = arith.constant 0 : index
    %c0_17 = arith.constant 0 : index
    %25 = vector.load %arg4[%c1, %c0_16, %c0_17] : memref<25x4x256xf32, #tpu.memory_space<vmem>>, vector<1x4x256xf32>
    %26 = vector.shape_cast %25 : vector<1x4x256xf32> to vector<4x256xf32>
    %27 = arith.mulf %24, %26 : vector<4x256xf32>
    %28 = arith.addf %23, %27 : vector<4x256xf32>
    %c32_i32 = arith.constant 32 : i32
    %29 = tpu.dynamic_rotate %19 by %c32_i32 dim 1 : vector<4x256xf32>, i32 -> vector<4x256xf32>
    %c2 = arith.constant 2 : index
    %c0_18 = arith.constant 0 : index
    %c0_19 = arith.constant 0 : index
    %30 = vector.load %arg4[%c2, %c0_18, %c0_19] : memref<25x4x256xf32, #tpu.memory_space<vmem>>, vector<1x4x256xf32>
    %31 = vector.shape_cast %30 : vector<1x4x256xf32> to vector<4x256xf32>
    %32 = arith.mulf %29, %31 : vector<4x256xf32>
    %33 = arith.addf %28, %32 : vector<4x256xf32>
    %c31_i32 = arith.constant 31 : i32
    %34 = tpu.dynamic_rotate %19 by %c31_i32 dim 1 : vector<4x256xf32>, i32 -> vector<4x256xf32>
    %c3 = arith.constant 3 : index
    %c0_20 = arith.constant 0 : index
    %c0_21 = arith.constant 0 : index
    %35 = vector.load %arg4[%c3, %c0_20, %c0_21] : memref<25x4x256xf32, #tpu.memory_space<vmem>>, vector<1x4x256xf32>
    %36 = vector.shape_cast %35 : vector<1x4x256xf32> to vector<4x256xf32>
    %37 = arith.mulf %34, %36 : vector<4x256xf32>
    %38 = arith.addf %33, %37 : vector<4x256xf32>
    %c30_i32 = arith.constant 30 : i32
    %39 = tpu.dynamic_rotate %19 by %c30_i32 dim 1 : vector<4x256xf32>, i32 -> vector<4x256xf32>
    %c4 = arith.constant 4 : index
    %c0_22 = arith.constant 0 : index
    %c0_23 = arith.constant 0 : index
    %40 = vector.load %arg4[%c4, %c0_22, %c0_23] : memref<25x4x256xf32, #tpu.memory_space<vmem>>, vector<1x4x256xf32>
    %41 = vector.shape_cast %40 : vector<1x4x256xf32> to vector<4x256xf32>
    %42 = arith.mulf %39, %41 : vector<4x256xf32>
    %43 = arith.addf %38, %42 : vector<4x256xf32>
    %c18_i32 = arith.constant 18 : i32
    %44 = tpu.dynamic_rotate %19 by %c18_i32 dim 1 : vector<4x256xf32>, i32 -> vector<4x256xf32>
    %c5 = arith.constant 5 : index
    %c0_24 = arith.constant 0 : index
    %c0_25 = arith.constant 0 : index
    %45 = vector.load %arg4[%c5, %c0_24, %c0_25] : memref<25x4x256xf32, #tpu.memory_space<vmem>>, vector<1x4x256xf32>
    %46 = vector.shape_cast %45 : vector<1x4x256xf32> to vector<4x256xf32>
    %47 = arith.mulf %44, %46 : vector<4x256xf32>
    %48 = arith.addf %43, %47 : vector<4x256xf32>
    %c17_i32 = arith.constant 17 : i32
    %49 = tpu.dynamic_rotate %19 by %c17_i32 dim 1 : vector<4x256xf32>, i32 -> vector<4x256xf32>
    %c6 = arith.constant 6 : index
    %c0_26 = arith.constant 0 : index
    %c0_27 = arith.constant 0 : index
    %50 = vector.load %arg4[%c6, %c0_26, %c0_27] : memref<25x4x256xf32, #tpu.memory_space<vmem>>, vector<1x4x256xf32>
    %51 = vector.shape_cast %50 : vector<1x4x256xf32> to vector<4x256xf32>
    %52 = arith.mulf %49, %51 : vector<4x256xf32>
    %53 = arith.addf %48, %52 : vector<4x256xf32>
    %c16_i32 = arith.constant 16 : i32
    %54 = tpu.dynamic_rotate %19 by %c16_i32 dim 1 : vector<4x256xf32>, i32 -> vector<4x256xf32>
    %c7 = arith.constant 7 : index
    %c0_28 = arith.constant 0 : index
    %c0_29 = arith.constant 0 : index
    %55 = vector.load %arg4[%c7, %c0_28, %c0_29] : memref<25x4x256xf32, #tpu.memory_space<vmem>>, vector<1x4x256xf32>
    %56 = vector.shape_cast %55 : vector<1x4x256xf32> to vector<4x256xf32>
    %57 = arith.mulf %54, %56 : vector<4x256xf32>
    %58 = arith.addf %53, %57 : vector<4x256xf32>
    %c15_i32 = arith.constant 15 : i32
    %59 = tpu.dynamic_rotate %19 by %c15_i32 dim 1 : vector<4x256xf32>, i32 -> vector<4x256xf32>
    %c8_30 = arith.constant 8 : index
    %c0_31 = arith.constant 0 : index
    %c0_32 = arith.constant 0 : index
    %60 = vector.load %arg4[%c8_30, %c0_31, %c0_32] : memref<25x4x256xf32, #tpu.memory_space<vmem>>, vector<1x4x256xf32>
    %61 = vector.shape_cast %60 : vector<1x4x256xf32> to vector<4x256xf32>
    %62 = arith.mulf %59, %61 : vector<4x256xf32>
    %63 = arith.addf %58, %62 : vector<4x256xf32>
    %c14_i32 = arith.constant 14 : i32
    %64 = tpu.dynamic_rotate %19 by %c14_i32 dim 1 : vector<4x256xf32>, i32 -> vector<4x256xf32>
    %c9 = arith.constant 9 : index
    %c0_33 = arith.constant 0 : index
    %c0_34 = arith.constant 0 : index
    %65 = vector.load %arg4[%c9, %c0_33, %c0_34] : memref<25x4x256xf32, #tpu.memory_space<vmem>>, vector<1x4x256xf32>
    %66 = vector.shape_cast %65 : vector<1x4x256xf32> to vector<4x256xf32>
    %67 = arith.mulf %64, %66 : vector<4x256xf32>
    %68 = arith.addf %63, %67 : vector<4x256xf32>
    %c2_i32 = arith.constant 2 : i32
    %69 = tpu.dynamic_rotate %19 by %c2_i32 dim 1 : vector<4x256xf32>, i32 -> vector<4x256xf32>
    %c10 = arith.constant 10 : index
    %c0_35 = arith.constant 0 : index
    %c0_36 = arith.constant 0 : index
    %70 = vector.load %arg4[%c10, %c0_35, %c0_36] : memref<25x4x256xf32, #tpu.memory_space<vmem>>, vector<1x4x256xf32>
    %71 = vector.shape_cast %70 : vector<1x4x256xf32> to vector<4x256xf32>
    %72 = arith.mulf %69, %71 : vector<4x256xf32>
    %73 = arith.addf %68, %72 : vector<4x256xf32>
    %c1_i32 = arith.constant 1 : i32
    %74 = tpu.dynamic_rotate %19 by %c1_i32 dim 1 : vector<4x256xf32>, i32 -> vector<4x256xf32>
    %c11 = arith.constant 11 : index
    %c0_37 = arith.constant 0 : index
    %c0_38 = arith.constant 0 : index
    %75 = vector.load %arg4[%c11, %c0_37, %c0_38] : memref<25x4x256xf32, #tpu.memory_space<vmem>>, vector<1x4x256xf32>
    %76 = vector.shape_cast %75 : vector<1x4x256xf32> to vector<4x256xf32>
    %77 = arith.mulf %74, %76 : vector<4x256xf32>
    %78 = arith.addf %73, %77 : vector<4x256xf32>
    %c12 = arith.constant 12 : index
    %c0_39 = arith.constant 0 : index
    %c0_40 = arith.constant 0 : index
    %79 = vector.load %arg4[%c12, %c0_39, %c0_40] : memref<25x4x256xf32, #tpu.memory_space<vmem>>, vector<1x4x256xf32>
    %80 = vector.shape_cast %79 : vector<1x4x256xf32> to vector<4x256xf32>
    %81 = arith.mulf %19, %80 : vector<4x256xf32>
    %82 = arith.addf %78, %81 : vector<4x256xf32>
    %c255_i32 = arith.constant 255 : i32
    %83 = tpu.dynamic_rotate %19 by %c255_i32 dim 1 : vector<4x256xf32>, i32 -> vector<4x256xf32>
    %c13 = arith.constant 13 : index
    %c0_41 = arith.constant 0 : index
    %c0_42 = arith.constant 0 : index
    %84 = vector.load %arg4[%c13, %c0_41, %c0_42] : memref<25x4x256xf32, #tpu.memory_space<vmem>>, vector<1x4x256xf32>
    %85 = vector.shape_cast %84 : vector<1x4x256xf32> to vector<4x256xf32>
    %86 = arith.mulf %83, %85 : vector<4x256xf32>
    %87 = arith.addf %82, %86 : vector<4x256xf32>
    %c254_i32 = arith.constant 254 : i32
    %88 = tpu.dynamic_rotate %19 by %c254_i32 dim 1 : vector<4x256xf32>, i32 -> vector<4x256xf32>
    %c14 = arith.constant 14 : index
    %c0_43 = arith.constant 0 : index
    %c0_44 = arith.constant 0 : index
    %89 = vector.load %arg4[%c14, %c0_43, %c0_44] : memref<25x4x256xf32, #tpu.memory_space<vmem>>, vector<1x4x256xf32>
    %90 = vector.shape_cast %89 : vector<1x4x256xf32> to vector<4x256xf32>
    %91 = arith.mulf %88, %90 : vector<4x256xf32>
    %92 = arith.addf %87, %91 : vector<4x256xf32>
    %c242_i32 = arith.constant 242 : i32
    %93 = tpu.dynamic_rotate %19 by %c242_i32 dim 1 : vector<4x256xf32>, i32 -> vector<4x256xf32>
    %c15 = arith.constant 15 : index
    %c0_45 = arith.constant 0 : index
    %c0_46 = arith.constant 0 : index
    %94 = vector.load %arg4[%c15, %c0_45, %c0_46] : memref<25x4x256xf32, #tpu.memory_space<vmem>>, vector<1x4x256xf32>
    %95 = vector.shape_cast %94 : vector<1x4x256xf32> to vector<4x256xf32>
    %96 = arith.mulf %93, %95 : vector<4x256xf32>
    %97 = arith.addf %92, %96 : vector<4x256xf32>
    %c241_i32 = arith.constant 241 : i32
    %98 = tpu.dynamic_rotate %19 by %c241_i32 dim 1 : vector<4x256xf32>, i32 -> vector<4x256xf32>
    %c16_47 = arith.constant 16 : index
    %c0_48 = arith.constant 0 : index
    %c0_49 = arith.constant 0 : index
    %99 = vector.load %arg4[%c16_47, %c0_48, %c0_49] : memref<25x4x256xf32, #tpu.memory_space<vmem>>, vector<1x4x256xf32>
    %100 = vector.shape_cast %99 : vector<1x4x256xf32> to vector<4x256xf32>
    %101 = arith.mulf %98, %100 : vector<4x256xf32>
    %102 = arith.addf %97, %101 : vector<4x256xf32>
    %c240_i32 = arith.constant 240 : i32
    %103 = tpu.dynamic_rotate %19 by %c240_i32 dim 1 : vector<4x256xf32>, i32 -> vector<4x256xf32>
    %c17 = arith.constant 17 : index
    %c0_50 = arith.constant 0 : index
    %c0_51 = arith.constant 0 : index
    %104 = vector.load %arg4[%c17, %c0_50, %c0_51] : memref<25x4x256xf32, #tpu.memory_space<vmem>>, vector<1x4x256xf32>
    %105 = vector.shape_cast %104 : vector<1x4x256xf32> to vector<4x256xf32>
    %106 = arith.mulf %103, %105 : vector<4x256xf32>
    %107 = arith.addf %102, %106 : vector<4x256xf32>
    %c239_i32 = arith.constant 239 : i32
    %108 = tpu.dynamic_rotate %19 by %c239_i32 dim 1 : vector<4x256xf32>, i32 -> vector<4x256xf32>
    %c18 = arith.constant 18 : index
    %c0_52 = arith.constant 0 : index
    %c0_53 = arith.constant 0 : index
    %109 = vector.load %arg4[%c18, %c0_52, %c0_53] : memref<25x4x256xf32, #tpu.memory_space<vmem>>, vector<1x4x256xf32>
    %110 = vector.shape_cast %109 : vector<1x4x256xf32> to vector<4x256xf32>
    %111 = arith.mulf %108, %110 : vector<4x256xf32>
    %112 = arith.addf %107, %111 : vector<4x256xf32>
    %c238_i32 = arith.constant 238 : i32
    %113 = tpu.dynamic_rotate %19 by %c238_i32 dim 1 : vector<4x256xf32>, i32 -> vector<4x256xf32>
    %c19 = arith.constant 19 : index
    %c0_54 = arith.constant 0 : index
    %c0_55 = arith.constant 0 : index
    %114 = vector.load %arg4[%c19, %c0_54, %c0_55] : memref<25x4x256xf32, #tpu.memory_space<vmem>>, vector<1x4x256xf32>
    %115 = vector.shape_cast %114 : vector<1x4x256xf32> to vector<4x256xf32>
    %116 = arith.mulf %113, %115 : vector<4x256xf32>
    %117 = arith.addf %112, %116 : vector<4x256xf32>
    %c226_i32 = arith.constant 226 : i32
    %118 = tpu.dynamic_rotate %19 by %c226_i32 dim 1 : vector<4x256xf32>, i32 -> vector<4x256xf32>
    %c20 = arith.constant 20 : index
    %c0_56 = arith.constant 0 : index
    %c0_57 = arith.constant 0 : index
    %119 = vector.load %arg4[%c20, %c0_56, %c0_57] : memref<25x4x256xf32, #tpu.memory_space<vmem>>, vector<1x4x256xf32>
    %120 = vector.shape_cast %119 : vector<1x4x256xf32> to vector<4x256xf32>
    %121 = arith.mulf %118, %120 : vector<4x256xf32>
    %122 = arith.addf %117, %121 : vector<4x256xf32>
    %c225_i32 = arith.constant 225 : i32
    %123 = tpu.dynamic_rotate %19 by %c225_i32 dim 1 : vector<4x256xf32>, i32 -> vector<4x256xf32>
    %c21 = arith.constant 21 : index
    %c0_58 = arith.constant 0 : index
    %c0_59 = arith.constant 0 : index
    %124 = vector.load %arg4[%c21, %c0_58, %c0_59] : memref<25x4x256xf32, #tpu.memory_space<vmem>>, vector<1x4x256xf32>
    %125 = vector.shape_cast %124 : vector<1x4x256xf32> to vector<4x256xf32>
    %126 = arith.mulf %123, %125 : vector<4x256xf32>
    %127 = arith.addf %122, %126 : vector<4x256xf32>
    %c224_i32 = arith.constant 224 : i32
    %128 = tpu.dynamic_rotate %19 by %c224_i32 dim 1 : vector<4x256xf32>, i32 -> vector<4x256xf32>
    %c22 = arith.constant 22 : index
    %c0_60 = arith.constant 0 : index
    %c0_61 = arith.constant 0 : index
    %129 = vector.load %arg4[%c22, %c0_60, %c0_61] : memref<25x4x256xf32, #tpu.memory_space<vmem>>, vector<1x4x256xf32>
    %130 = vector.shape_cast %129 : vector<1x4x256xf32> to vector<4x256xf32>
    %131 = arith.mulf %128, %130 : vector<4x256xf32>
    %132 = arith.addf %127, %131 : vector<4x256xf32>
    %c223_i32 = arith.constant 223 : i32
    %133 = tpu.dynamic_rotate %19 by %c223_i32 dim 1 : vector<4x256xf32>, i32 -> vector<4x256xf32>
    %c23 = arith.constant 23 : index
    %c0_62 = arith.constant 0 : index
    %c0_63 = arith.constant 0 : index
    %134 = vector.load %arg4[%c23, %c0_62, %c0_63] : memref<25x4x256xf32, #tpu.memory_space<vmem>>, vector<1x4x256xf32>
    %135 = vector.shape_cast %134 : vector<1x4x256xf32> to vector<4x256xf32>
    %136 = arith.mulf %133, %135 : vector<4x256xf32>
    %137 = arith.addf %132, %136 : vector<4x256xf32>
    %c222_i32 = arith.constant 222 : i32
    %138 = tpu.dynamic_rotate %19 by %c222_i32 dim 1 : vector<4x256xf32>, i32 -> vector<4x256xf32>
    %c24_64 = arith.constant 24 : index
    %c0_65 = arith.constant 0 : index
    %c0_66 = arith.constant 0 : index
    %139 = vector.load %arg4[%c24_64, %c0_65, %c0_66] : memref<25x4x256xf32, #tpu.memory_space<vmem>>, vector<1x4x256xf32>
    %140 = vector.shape_cast %139 : vector<1x4x256xf32> to vector<4x256xf32>
    %141 = arith.mulf %138, %140 : vector<4x256xf32>
    %142 = arith.addf %137, %141 : vector<4x256xf32>
    %143 = vector.broadcast %5 : vector<4x1xf32> to vector<4x256xf32>
    %144 = arith.addf %142, %143 : vector<4x256xf32>
    %cst_67 = arith.constant 0.000000e+00 : f32
    %145 = vector.broadcast %cst_67 : f32 to vector<4x256xf32>
    %146 = arith.subf %145, %144 : vector<4x256xf32>
    %147 = math.exp %146 : vector<4x256xf32>
    %cst_68 = arith.constant 1.000000e+00 : f32
    %148 = vector.broadcast %cst_68 : f32 to vector<4x256xf32>
    %149 = arith.addf %148, %147 : vector<4x256xf32>
    %150 = tpu.reciprocal %149 {approx = true} : vector<4x256xf32> -> vector<4x256xf32>
    %151 = arith.mulf %144, %150 : vector<4x256xf32>
    %cst_69 = arith.constant dense<0.000000e+00> : vector<8x256xf32>
    %152 = tpu.matmul %2, %19, %cst_69 {dimension_numbers = #tpu.dot_dimension_numbers<[1], [0], [0], [1], [0, 0, 1, 1], [], []>, precision = #tpu.contract_precision<fp32>} : vector<8x4xf32>, vector<4x256xf32>, vector<8x256xf32> -> vector<8x256xf32>
    %cst_70 = arith.constant dense<0.000000e+00> : vector<8x256xf32>
    %153 = tpu.matmul %3, %151, %cst_70 {dimension_numbers = #tpu.dot_dimension_numbers<[1], [0], [0], [1], [0, 0, 1, 1], [], []>, precision = #tpu.contract_precision<fp32>} : vector<8x4xf32>, vector<4x256xf32>, vector<8x256xf32> -> vector<8x256xf32>
    %154 = vector.broadcast %6 : vector<8x1xf32> to vector<8x256xf32>
    %155 = arith.addf %153, %154 : vector<8x256xf32>
    %156 = arith.addf %152, %155 : vector<8x256xf32>
    %c34_i32_71 = arith.constant 34 : i32
    %157 = tpu.dynamic_rotate %156 by %c34_i32_71 dim 1 : vector<8x256xf32>, i32 -> vector<8x256xf32>
    %c0_72 = arith.constant 0 : index
    %c0_73 = arith.constant 0 : index
    %c0_74 = arith.constant 0 : index
    %158 = vector.load %arg5[%c0_72, %c0_73, %c0_74] : memref<25x8x256xf32, #tpu.memory_space<vmem>>, vector<1x8x256xf32>
    %159 = vector.shape_cast %158 : vector<1x8x256xf32> to vector<8x256xf32>
    %160 = arith.mulf %157, %159 : vector<8x256xf32>
    %c33_i32_75 = arith.constant 33 : i32
    %161 = tpu.dynamic_rotate %156 by %c33_i32_75 dim 1 : vector<8x256xf32>, i32 -> vector<8x256xf32>
    %c1_76 = arith.constant 1 : index
    %c0_77 = arith.constant 0 : index
    %c0_78 = arith.constant 0 : index
    %162 = vector.load %arg5[%c1_76, %c0_77, %c0_78] : memref<25x8x256xf32, #tpu.memory_space<vmem>>, vector<1x8x256xf32>
    %163 = vector.shape_cast %162 : vector<1x8x256xf32> to vector<8x256xf32>
    %164 = arith.mulf %161, %163 : vector<8x256xf32>
    %165 = arith.addf %160, %164 : vector<8x256xf32>
    %c32_i32_79 = arith.constant 32 : i32
    %166 = tpu.dynamic_rotate %156 by %c32_i32_79 dim 1 : vector<8x256xf32>, i32 -> vector<8x256xf32>
    %c2_80 = arith.constant 2 : index
    %c0_81 = arith.constant 0 : index
    %c0_82 = arith.constant 0 : index
    %167 = vector.load %arg5[%c2_80, %c0_81, %c0_82] : memref<25x8x256xf32, #tpu.memory_space<vmem>>, vector<1x8x256xf32>
    %168 = vector.shape_cast %167 : vector<1x8x256xf32> to vector<8x256xf32>
    %169 = arith.mulf %166, %168 : vector<8x256xf32>
    %170 = arith.addf %165, %169 : vector<8x256xf32>
    %c31_i32_83 = arith.constant 31 : i32
    %171 = tpu.dynamic_rotate %156 by %c31_i32_83 dim 1 : vector<8x256xf32>, i32 -> vector<8x256xf32>
    %c3_84 = arith.constant 3 : index
    %c0_85 = arith.constant 0 : index
    %c0_86 = arith.constant 0 : index
    %172 = vector.load %arg5[%c3_84, %c0_85, %c0_86] : memref<25x8x256xf32, #tpu.memory_space<vmem>>, vector<1x8x256xf32>
    %173 = vector.shape_cast %172 : vector<1x8x256xf32> to vector<8x256xf32>
    %174 = arith.mulf %171, %173 : vector<8x256xf32>
    %175 = arith.addf %170, %174 : vector<8x256xf32>
    %c30_i32_87 = arith.constant 30 : i32
    %176 = tpu.dynamic_rotate %156 by %c30_i32_87 dim 1 : vector<8x256xf32>, i32 -> vector<8x256xf32>
    %c4_88 = arith.constant 4 : index
    %c0_89 = arith.constant 0 : index
    %c0_90 = arith.constant 0 : index
    %177 = vector.load %arg5[%c4_88, %c0_89, %c0_90] : memref<25x8x256xf32, #tpu.memory_space<vmem>>, vector<1x8x256xf32>
    %178 = vector.shape_cast %177 : vector<1x8x256xf32> to vector<8x256xf32>
    %179 = arith.mulf %176, %178 : vector<8x256xf32>
    %180 = arith.addf %175, %179 : vector<8x256xf32>
    %c18_i32_91 = arith.constant 18 : i32
    %181 = tpu.dynamic_rotate %156 by %c18_i32_91 dim 1 : vector<8x256xf32>, i32 -> vector<8x256xf32>
    %c5_92 = arith.constant 5 : index
    %c0_93 = arith.constant 0 : index
    %c0_94 = arith.constant 0 : index
    %182 = vector.load %arg5[%c5_92, %c0_93, %c0_94] : memref<25x8x256xf32, #tpu.memory_space<vmem>>, vector<1x8x256xf32>
    %183 = vector.shape_cast %182 : vector<1x8x256xf32> to vector<8x256xf32>
    %184 = arith.mulf %181, %183 : vector<8x256xf32>
    %185 = arith.addf %180, %184 : vector<8x256xf32>
    %c17_i32_95 = arith.constant 17 : i32
    %186 = tpu.dynamic_rotate %156 by %c17_i32_95 dim 1 : vector<8x256xf32>, i32 -> vector<8x256xf32>
    %c6_96 = arith.constant 6 : index
    %c0_97 = arith.constant 0 : index
    %c0_98 = arith.constant 0 : index
    %187 = vector.load %arg5[%c6_96, %c0_97, %c0_98] : memref<25x8x256xf32, #tpu.memory_space<vmem>>, vector<1x8x256xf32>
    %188 = vector.shape_cast %187 : vector<1x8x256xf32> to vector<8x256xf32>
    %189 = arith.mulf %186, %188 : vector<8x256xf32>
    %190 = arith.addf %185, %189 : vector<8x256xf32>
    %c16_i32_99 = arith.constant 16 : i32
    %191 = tpu.dynamic_rotate %156 by %c16_i32_99 dim 1 : vector<8x256xf32>, i32 -> vector<8x256xf32>
    %c7_100 = arith.constant 7 : index
    %c0_101 = arith.constant 0 : index
    %c0_102 = arith.constant 0 : index
    %192 = vector.load %arg5[%c7_100, %c0_101, %c0_102] : memref<25x8x256xf32, #tpu.memory_space<vmem>>, vector<1x8x256xf32>
    %193 = vector.shape_cast %192 : vector<1x8x256xf32> to vector<8x256xf32>
    %194 = arith.mulf %191, %193 : vector<8x256xf32>
    %195 = arith.addf %190, %194 : vector<8x256xf32>
    %c15_i32_103 = arith.constant 15 : i32
    %196 = tpu.dynamic_rotate %156 by %c15_i32_103 dim 1 : vector<8x256xf32>, i32 -> vector<8x256xf32>
    %c8_104 = arith.constant 8 : index
    %c0_105 = arith.constant 0 : index
    %c0_106 = arith.constant 0 : index
    %197 = vector.load %arg5[%c8_104, %c0_105, %c0_106] : memref<25x8x256xf32, #tpu.memory_space<vmem>>, vector<1x8x256xf32>
    %198 = vector.shape_cast %197 : vector<1x8x256xf32> to vector<8x256xf32>
    %199 = arith.mulf %196, %198 : vector<8x256xf32>
    %200 = arith.addf %195, %199 : vector<8x256xf32>
    %c14_i32_107 = arith.constant 14 : i32
    %201 = tpu.dynamic_rotate %156 by %c14_i32_107 dim 1 : vector<8x256xf32>, i32 -> vector<8x256xf32>
    %c9_108 = arith.constant 9 : index
    %c0_109 = arith.constant 0 : index
    %c0_110 = arith.constant 0 : index
    %202 = vector.load %arg5[%c9_108, %c0_109, %c0_110] : memref<25x8x256xf32, #tpu.memory_space<vmem>>, vector<1x8x256xf32>
    %203 = vector.shape_cast %202 : vector<1x8x256xf32> to vector<8x256xf32>
    %204 = arith.mulf %201, %203 : vector<8x256xf32>
    %205 = arith.addf %200, %204 : vector<8x256xf32>
    %c2_i32_111 = arith.constant 2 : i32
    %206 = tpu.dynamic_rotate %156 by %c2_i32_111 dim 1 : vector<8x256xf32>, i32 -> vector<8x256xf32>
    %c10_112 = arith.constant 10 : index
    %c0_113 = arith.constant 0 : index
    %c0_114 = arith.constant 0 : index
    %207 = vector.load %arg5[%c10_112, %c0_113, %c0_114] : memref<25x8x256xf32, #tpu.memory_space<vmem>>, vector<1x8x256xf32>
    %208 = vector.shape_cast %207 : vector<1x8x256xf32> to vector<8x256xf32>
    %209 = arith.mulf %206, %208 : vector<8x256xf32>
    %210 = arith.addf %205, %209 : vector<8x256xf32>
    %c1_i32_115 = arith.constant 1 : i32
    %211 = tpu.dynamic_rotate %156 by %c1_i32_115 dim 1 : vector<8x256xf32>, i32 -> vector<8x256xf32>
    %c11_116 = arith.constant 11 : index
    %c0_117 = arith.constant 0 : index
    %c0_118 = arith.constant 0 : index
    %212 = vector.load %arg5[%c11_116, %c0_117, %c0_118] : memref<25x8x256xf32, #tpu.memory_space<vmem>>, vector<1x8x256xf32>
    %213 = vector.shape_cast %212 : vector<1x8x256xf32> to vector<8x256xf32>
    %214 = arith.mulf %211, %213 : vector<8x256xf32>
    %215 = arith.addf %210, %214 : vector<8x256xf32>
    %c12_119 = arith.constant 12 : index
    %c0_120 = arith.constant 0 : index
    %c0_121 = arith.constant 0 : index
    %216 = vector.load %arg5[%c12_119, %c0_120, %c0_121] : memref<25x8x256xf32, #tpu.memory_space<vmem>>, vector<1x8x256xf32>
    %217 = vector.shape_cast %216 : vector<1x8x256xf32> to vector<8x256xf32>
    %218 = arith.mulf %156, %217 : vector<8x256xf32>
    %219 = arith.addf %215, %218 : vector<8x256xf32>
    %c255_i32_122 = arith.constant 255 : i32
    %220 = tpu.dynamic_rotate %156 by %c255_i32_122 dim 1 : vector<8x256xf32>, i32 -> vector<8x256xf32>
    %c13_123 = arith.constant 13 : index
    %c0_124 = arith.constant 0 : index
    %c0_125 = arith.constant 0 : index
    %221 = vector.load %arg5[%c13_123, %c0_124, %c0_125] : memref<25x8x256xf32, #tpu.memory_space<vmem>>, vector<1x8x256xf32>
    %222 = vector.shape_cast %221 : vector<1x8x256xf32> to vector<8x256xf32>
    %223 = arith.mulf %220, %222 : vector<8x256xf32>
    %224 = arith.addf %219, %223 : vector<8x256xf32>
    %c254_i32_126 = arith.constant 254 : i32
    %225 = tpu.dynamic_rotate %156 by %c254_i32_126 dim 1 : vector<8x256xf32>, i32 -> vector<8x256xf32>
    %c14_127 = arith.constant 14 : index
    %c0_128 = arith.constant 0 : index
    %c0_129 = arith.constant 0 : index
    %226 = vector.load %arg5[%c14_127, %c0_128, %c0_129] : memref<25x8x256xf32, #tpu.memory_space<vmem>>, vector<1x8x256xf32>
    %227 = vector.shape_cast %226 : vector<1x8x256xf32> to vector<8x256xf32>
    %228 = arith.mulf %225, %227 : vector<8x256xf32>
    %229 = arith.addf %224, %228 : vector<8x256xf32>
    %c242_i32_130 = arith.constant 242 : i32
    %230 = tpu.dynamic_rotate %156 by %c242_i32_130 dim 1 : vector<8x256xf32>, i32 -> vector<8x256xf32>
    %c15_131 = arith.constant 15 : index
    %c0_132 = arith.constant 0 : index
    %c0_133 = arith.constant 0 : index
    %231 = vector.load %arg5[%c15_131, %c0_132, %c0_133] : memref<25x8x256xf32, #tpu.memory_space<vmem>>, vector<1x8x256xf32>
    %232 = vector.shape_cast %231 : vector<1x8x256xf32> to vector<8x256xf32>
    %233 = arith.mulf %230, %232 : vector<8x256xf32>
    %234 = arith.addf %229, %233 : vector<8x256xf32>
    %c241_i32_134 = arith.constant 241 : i32
    %235 = tpu.dynamic_rotate %156 by %c241_i32_134 dim 1 : vector<8x256xf32>, i32 -> vector<8x256xf32>
    %c16_135 = arith.constant 16 : index
    %c0_136 = arith.constant 0 : index
    %c0_137 = arith.constant 0 : index
    %236 = vector.load %arg5[%c16_135, %c0_136, %c0_137] : memref<25x8x256xf32, #tpu.memory_space<vmem>>, vector<1x8x256xf32>
    %237 = vector.shape_cast %236 : vector<1x8x256xf32> to vector<8x256xf32>
    %238 = arith.mulf %235, %237 : vector<8x256xf32>
    %239 = arith.addf %234, %238 : vector<8x256xf32>
    %c240_i32_138 = arith.constant 240 : i32
    %240 = tpu.dynamic_rotate %156 by %c240_i32_138 dim 1 : vector<8x256xf32>, i32 -> vector<8x256xf32>
    %c17_139 = arith.constant 17 : index
    %c0_140 = arith.constant 0 : index
    %c0_141 = arith.constant 0 : index
    %241 = vector.load %arg5[%c17_139, %c0_140, %c0_141] : memref<25x8x256xf32, #tpu.memory_space<vmem>>, vector<1x8x256xf32>
    %242 = vector.shape_cast %241 : vector<1x8x256xf32> to vector<8x256xf32>
    %243 = arith.mulf %240, %242 : vector<8x256xf32>
    %244 = arith.addf %239, %243 : vector<8x256xf32>
    %c239_i32_142 = arith.constant 239 : i32
    %245 = tpu.dynamic_rotate %156 by %c239_i32_142 dim 1 : vector<8x256xf32>, i32 -> vector<8x256xf32>
    %c18_143 = arith.constant 18 : index
    %c0_144 = arith.constant 0 : index
    %c0_145 = arith.constant 0 : index
    %246 = vector.load %arg5[%c18_143, %c0_144, %c0_145] : memref<25x8x256xf32, #tpu.memory_space<vmem>>, vector<1x8x256xf32>
    %247 = vector.shape_cast %246 : vector<1x8x256xf32> to vector<8x256xf32>
    %248 = arith.mulf %245, %247 : vector<8x256xf32>
    %249 = arith.addf %244, %248 : vector<8x256xf32>
    %c238_i32_146 = arith.constant 238 : i32
    %250 = tpu.dynamic_rotate %156 by %c238_i32_146 dim 1 : vector<8x256xf32>, i32 -> vector<8x256xf32>
    %c19_147 = arith.constant 19 : index
    %c0_148 = arith.constant 0 : index
    %c0_149 = arith.constant 0 : index
    %251 = vector.load %arg5[%c19_147, %c0_148, %c0_149] : memref<25x8x256xf32, #tpu.memory_space<vmem>>, vector<1x8x256xf32>
    %252 = vector.shape_cast %251 : vector<1x8x256xf32> to vector<8x256xf32>
    %253 = arith.mulf %250, %252 : vector<8x256xf32>
    %254 = arith.addf %249, %253 : vector<8x256xf32>
    %c226_i32_150 = arith.constant 226 : i32
    %255 = tpu.dynamic_rotate %156 by %c226_i32_150 dim 1 : vector<8x256xf32>, i32 -> vector<8x256xf32>
    %c20_151 = arith.constant 20 : index
    %c0_152 = arith.constant 0 : index
    %c0_153 = arith.constant 0 : index
    %256 = vector.load %arg5[%c20_151, %c0_152, %c0_153] : memref<25x8x256xf32, #tpu.memory_space<vmem>>, vector<1x8x256xf32>
    %257 = vector.shape_cast %256 : vector<1x8x256xf32> to vector<8x256xf32>
    %258 = arith.mulf %255, %257 : vector<8x256xf32>
    %259 = arith.addf %254, %258 : vector<8x256xf32>
    %c225_i32_154 = arith.constant 225 : i32
    %260 = tpu.dynamic_rotate %156 by %c225_i32_154 dim 1 : vector<8x256xf32>, i32 -> vector<8x256xf32>
    %c21_155 = arith.constant 21 : index
    %c0_156 = arith.constant 0 : index
    %c0_157 = arith.constant 0 : index
    %261 = vector.load %arg5[%c21_155, %c0_156, %c0_157] : memref<25x8x256xf32, #tpu.memory_space<vmem>>, vector<1x8x256xf32>
    %262 = vector.shape_cast %261 : vector<1x8x256xf32> to vector<8x256xf32>
    %263 = arith.mulf %260, %262 : vector<8x256xf32>
    %264 = arith.addf %259, %263 : vector<8x256xf32>
    %c224_i32_158 = arith.constant 224 : i32
    %265 = tpu.dynamic_rotate %156 by %c224_i32_158 dim 1 : vector<8x256xf32>, i32 -> vector<8x256xf32>
    %c22_159 = arith.constant 22 : index
    %c0_160 = arith.constant 0 : index
    %c0_161 = arith.constant 0 : index
    %266 = vector.load %arg5[%c22_159, %c0_160, %c0_161] : memref<25x8x256xf32, #tpu.memory_space<vmem>>, vector<1x8x256xf32>
    %267 = vector.shape_cast %266 : vector<1x8x256xf32> to vector<8x256xf32>
    %268 = arith.mulf %265, %267 : vector<8x256xf32>
    %269 = arith.addf %264, %268 : vector<8x256xf32>
    %c223_i32_162 = arith.constant 223 : i32
    %270 = tpu.dynamic_rotate %156 by %c223_i32_162 dim 1 : vector<8x256xf32>, i32 -> vector<8x256xf32>
    %c23_163 = arith.constant 23 : index
    %c0_164 = arith.constant 0 : index
    %c0_165 = arith.constant 0 : index
    %271 = vector.load %arg5[%c23_163, %c0_164, %c0_165] : memref<25x8x256xf32, #tpu.memory_space<vmem>>, vector<1x8x256xf32>
    %272 = vector.shape_cast %271 : vector<1x8x256xf32> to vector<8x256xf32>
    %273 = arith.mulf %270, %272 : vector<8x256xf32>
    %274 = arith.addf %269, %273 : vector<8x256xf32>
    %c222_i32_166 = arith.constant 222 : i32
    %275 = tpu.dynamic_rotate %156 by %c222_i32_166 dim 1 : vector<8x256xf32>, i32 -> vector<8x256xf32>
    %c24_167 = arith.constant 24 : index
    %c0_168 = arith.constant 0 : index
    %c0_169 = arith.constant 0 : index
    %276 = vector.load %arg5[%c24_167, %c0_168, %c0_169] : memref<25x8x256xf32, #tpu.memory_space<vmem>>, vector<1x8x256xf32>
    %277 = vector.shape_cast %276 : vector<1x8x256xf32> to vector<8x256xf32>
    %278 = arith.mulf %275, %277 : vector<8x256xf32>
    %279 = arith.addf %274, %278 : vector<8x256xf32>
    %280 = vector.broadcast %7 : vector<8x1xf32> to vector<8x256xf32>
    %281 = arith.addf %279, %280 : vector<8x256xf32>
    %c0_170 = arith.constant 0 : index
    %c0_171 = arith.constant 0 : index
    %c0_172 = arith.constant 0 : index
    %282 = vector.load %arg1[%c0_170, %c0_171, %c0_172] : memref<2x16x256xf32, #tpu.memory_space<vmem>>, vector<1x8x256xf32>
    %283 = vector.shape_cast %282 : vector<1x8x256xf32> to vector<8x256xf32>
    %284 = arith.addf %156, %283 : vector<8x256xf32>
    %c0_173 = arith.constant 0 : index
    %c0_174 = arith.constant 0 : index
    %c0_175 = arith.constant 0 : index
    %285 = vector.load %arg7[%c0_173, %c0_174, %c0_175] : memref<2x16x256xf32, #tpu.memory_space<vmem>>, vector<1x8x256xf32>
    %286 = vector.shape_cast %285 : vector<1x8x256xf32> to vector<8x256xf32>
    %287 = vector.shape_cast %284 : vector<8x256xf32> to vector<1x8x256xf32>
    tpu.vector_store %arg7[%c0_173, %c0_174, %c0_175], %287 {strides = array<i32>} : memref<2x16x256xf32, #tpu.memory_space<vmem>>, vector<1x8x256xf32>,
    %c0_176 = arith.constant 0 : index
    %c8_177 = arith.constant 8 : index
    %c0_178 = arith.constant 0 : index
    %288 = vector.load %arg1[%c0_176, %c8_177, %c0_178] : memref<2x16x256xf32, #tpu.memory_space<vmem>>, vector<1x8x256xf32>
    %289 = vector.shape_cast %288 : vector<1x8x256xf32> to vector<8x256xf32>
    %290 = arith.addf %281, %289 : vector<8x256xf32>
    %c0_179 = arith.constant 0 : index
    %c8_180 = arith.constant 8 : index
    %c0_181 = arith.constant 0 : index
    %291 = vector.load %arg7[%c0_179, %c8_180, %c0_181] : memref<2x16x256xf32, #tpu.memory_space<vmem>>, vector<1x8x256xf32>
    %292 = vector.shape_cast %291 : vector<1x8x256xf32> to vector<8x256xf32>
    %293 = vector.shape_cast %290 : vector<8x256xf32> to vector<1x8x256xf32>
    tpu.vector_store %arg7[%c0_179, %c8_180, %c0_181], %293 {strides = array<i32>} : memref<2x16x256xf32, #tpu.memory_space<vmem>>, vector<1x8x256xf32>,
    %c1_182 = arith.constant 1 : index
    %c0_183 = arith.constant 0 : index
    %c0_184 = arith.constant 0 : index
    %294 = vector.load %arg1[%c1_182, %c0_183, %c0_184] : memref<2x16x256xf32, #tpu.memory_space<vmem>>, vector<1x16x256xf32>
    %295 = vector.shape_cast %294 : vector<1x16x256xf32> to vector<16x256xf32>
    %cst_185 = arith.constant dense<0.000000e+00> : vector<4x256xf32>
    %296 = tpu.matmul %0, %295, %cst_185 {dimension_numbers = #tpu.dot_dimension_numbers<[1], [0], [0], [1], [0, 0, 1, 1], [], []>, precision = #tpu.contract_precision<fp32>} : vector<4x16xf32>, vector<16x256xf32>, vector<4x256xf32> -> vector<4x256xf32>
    %297 = vector.broadcast %4 : vector<4x1xf32> to vector<4x256xf32>
    %298 = arith.addf %296, %297 : vector<4x256xf32>
    %cst_186 = arith.constant 0.000000e+00 : f32
    %299 = vector.broadcast %cst_186 : f32 to vector<4x256xf32>
    %300 = arith.subf %299, %298 : vector<4x256xf32>
    %301 = math.exp %300 : vector<4x256xf32>
    %cst_187 = arith.constant 1.000000e+00 : f32
    %302 = vector.broadcast %cst_187 : f32 to vector<4x256xf32>
    %303 = arith.addf %302, %301 : vector<4x256xf32>
    %304 = tpu.reciprocal %303 {approx = true} : vector<4x256xf32> -> vector<4x256xf32>
    %305 = arith.mulf %298, %304 : vector<4x256xf32>
    %c34_i32_188 = arith.constant 34 : i32
    %306 = tpu.dynamic_rotate %305 by %c34_i32_188 dim 1 : vector<4x256xf32>, i32 -> vector<4x256xf32>
    %c0_189 = arith.constant 0 : index
    %c0_190 = arith.constant 0 : index
    %c0_191 = arith.constant 0 : index
    %307 = vector.load %arg4[%c0_189, %c0_190, %c0_191] : memref<25x4x256xf32, #tpu.memory_space<vmem>>, vector<1x4x256xf32>
    %308 = vector.shape_cast %307 : vector<1x4x256xf32> to vector<4x256xf32>
    %309 = arith.mulf %306, %308 : vector<4x256xf32>
    %c33_i32_192 = arith.constant 33 : i32
    %310 = tpu.dynamic_rotate %305 by %c33_i32_192 dim 1 : vector<4x256xf32>, i32 -> vector<4x256xf32>
    %c1_193 = arith.constant 1 : index
    %c0_194 = arith.constant 0 : index
    %c0_195 = arith.constant 0 : index
    %311 = vector.load %arg4[%c1_193, %c0_194, %c0_195] : memref<25x4x256xf32, #tpu.memory_space<vmem>>, vector<1x4x256xf32>
    %312 = vector.shape_cast %311 : vector<1x4x256xf32> to vector<4x256xf32>
    %313 = arith.mulf %310, %312 : vector<4x256xf32>
    %314 = arith.addf %309, %313 : vector<4x256xf32>
    %c32_i32_196 = arith.constant 32 : i32
    %315 = tpu.dynamic_rotate %305 by %c32_i32_196 dim 1 : vector<4x256xf32>, i32 -> vector<4x256xf32>
    %c2_197 = arith.constant 2 : index
    %c0_198 = arith.constant 0 : index
    %c0_199 = arith.constant 0 : index
    %316 = vector.load %arg4[%c2_197, %c0_198, %c0_199] : memref<25x4x256xf32, #tpu.memory_space<vmem>>, vector<1x4x256xf32>
    %317 = vector.shape_cast %316 : vector<1x4x256xf32> to vector<4x256xf32>
    %318 = arith.mulf %315, %317 : vector<4x256xf32>
    %319 = arith.addf %314, %318 : vector<4x256xf32>
    %c31_i32_200 = arith.constant 31 : i32
    %320 = tpu.dynamic_rotate %305 by %c31_i32_200 dim 1 : vector<4x256xf32>, i32 -> vector<4x256xf32>
    %c3_201 = arith.constant 3 : index
    %c0_202 = arith.constant 0 : index
    %c0_203 = arith.constant 0 : index
    %321 = vector.load %arg4[%c3_201, %c0_202, %c0_203] : memref<25x4x256xf32, #tpu.memory_space<vmem>>, vector<1x4x256xf32>
    %322 = vector.shape_cast %321 : vector<1x4x256xf32> to vector<4x256xf32>
    %323 = arith.mulf %320, %322 : vector<4x256xf32>
    %324 = arith.addf %319, %323 : vector<4x256xf32>
    %c30_i32_204 = arith.constant 30 : i32
    %325 = tpu.dynamic_rotate %305 by %c30_i32_204 dim 1 : vector<4x256xf32>, i32 -> vector<4x256xf32>
    %c4_205 = arith.constant 4 : index
    %c0_206 = arith.constant 0 : index
    %c0_207 = arith.constant 0 : index
    %326 = vector.load %arg4[%c4_205, %c0_206, %c0_207] : memref<25x4x256xf32, #tpu.memory_space<vmem>>, vector<1x4x256xf32>
    %327 = vector.shape_cast %326 : vector<1x4x256xf32> to vector<4x256xf32>
    %328 = arith.mulf %325, %327 : vector<4x256xf32>
    %329 = arith.addf %324, %328 : vector<4x256xf32>
    %c18_i32_208 = arith.constant 18 : i32
    %330 = tpu.dynamic_rotate %305 by %c18_i32_208 dim 1 : vector<4x256xf32>, i32 -> vector<4x256xf32>
    %c5_209 = arith.constant 5 : index
    %c0_210 = arith.constant 0 : index
    %c0_211 = arith.constant 0 : index
    %331 = vector.load %arg4[%c5_209, %c0_210, %c0_211] : memref<25x4x256xf32, #tpu.memory_space<vmem>>, vector<1x4x256xf32>
    %332 = vector.shape_cast %331 : vector<1x4x256xf32> to vector<4x256xf32>
    %333 = arith.mulf %330, %332 : vector<4x256xf32>
    %334 = arith.addf %329, %333 : vector<4x256xf32>
    %c17_i32_212 = arith.constant 17 : i32
    %335 = tpu.dynamic_rotate %305 by %c17_i32_212 dim 1 : vector<4x256xf32>, i32 -> vector<4x256xf32>
    %c6_213 = arith.constant 6 : index
    %c0_214 = arith.constant 0 : index
    %c0_215 = arith.constant 0 : index
    %336 = vector.load %arg4[%c6_213, %c0_214, %c0_215] : memref<25x4x256xf32, #tpu.memory_space<vmem>>, vector<1x4x256xf32>
    %337 = vector.shape_cast %336 : vector<1x4x256xf32> to vector<4x256xf32>
    %338 = arith.mulf %335, %337 : vector<4x256xf32>
    %339 = arith.addf %334, %338 : vector<4x256xf32>
    %c16_i32_216 = arith.constant 16 : i32
    %340 = tpu.dynamic_rotate %305 by %c16_i32_216 dim 1 : vector<4x256xf32>, i32 -> vector<4x256xf32>
    %c7_217 = arith.constant 7 : index
    %c0_218 = arith.constant 0 : index
    %c0_219 = arith.constant 0 : index
    %341 = vector.load %arg4[%c7_217, %c0_218, %c0_219] : memref<25x4x256xf32, #tpu.memory_space<vmem>>, vector<1x4x256xf32>
    %342 = vector.shape_cast %341 : vector<1x4x256xf32> to vector<4x256xf32>
    %343 = arith.mulf %340, %342 : vector<4x256xf32>
    %344 = arith.addf %339, %343 : vector<4x256xf32>
    %c15_i32_220 = arith.constant 15 : i32
    %345 = tpu.dynamic_rotate %305 by %c15_i32_220 dim 1 : vector<4x256xf32>, i32 -> vector<4x256xf32>
    %c8_221 = arith.constant 8 : index
    %c0_222 = arith.constant 0 : index
    %c0_223 = arith.constant 0 : index
    %346 = vector.load %arg4[%c8_221, %c0_222, %c0_223] : memref<25x4x256xf32, #tpu.memory_space<vmem>>, vector<1x4x256xf32>
    %347 = vector.shape_cast %346 : vector<1x4x256xf32> to vector<4x256xf32>
    %348 = arith.mulf %345, %347 : vector<4x256xf32>
    %349 = arith.addf %344, %348 : vector<4x256xf32>
    %c14_i32_224 = arith.constant 14 : i32
    %350 = tpu.dynamic_rotate %305 by %c14_i32_224 dim 1 : vector<4x256xf32>, i32 -> vector<4x256xf32>
    %c9_225 = arith.constant 9 : index
    %c0_226 = arith.constant 0 : index
    %c0_227 = arith.constant 0 : index
    %351 = vector.load %arg4[%c9_225, %c0_226, %c0_227] : memref<25x4x256xf32, #tpu.memory_space<vmem>>, vector<1x4x256xf32>
    %352 = vector.shape_cast %351 : vector<1x4x256xf32> to vector<4x256xf32>
    %353 = arith.mulf %350, %352 : vector<4x256xf32>
    %354 = arith.addf %349, %353 : vector<4x256xf32>
    %c2_i32_228 = arith.constant 2 : i32
    %355 = tpu.dynamic_rotate %305 by %c2_i32_228 dim 1 : vector<4x256xf32>, i32 -> vector<4x256xf32>
    %c10_229 = arith.constant 10 : index
    %c0_230 = arith.constant 0 : index
    %c0_231 = arith.constant 0 : index
    %356 = vector.load %arg4[%c10_229, %c0_230, %c0_231] : memref<25x4x256xf32, #tpu.memory_space<vmem>>, vector<1x4x256xf32>
    %357 = vector.shape_cast %356 : vector<1x4x256xf32> to vector<4x256xf32>
    %358 = arith.mulf %355, %357 : vector<4x256xf32>
    %359 = arith.addf %354, %358 : vector<4x256xf32>
    %c1_i32_232 = arith.constant 1 : i32
    %360 = tpu.dynamic_rotate %305 by %c1_i32_232 dim 1 : vector<4x256xf32>, i32 -> vector<4x256xf32>
    %c11_233 = arith.constant 11 : index
    %c0_234 = arith.constant 0 : index
    %c0_235 = arith.constant 0 : index
    %361 = vector.load %arg4[%c11_233, %c0_234, %c0_235] : memref<25x4x256xf32, #tpu.memory_space<vmem>>, vector<1x4x256xf32>
    %362 = vector.shape_cast %361 : vector<1x4x256xf32> to vector<4x256xf32>
    %363 = arith.mulf %360, %362 : vector<4x256xf32>
    %364 = arith.addf %359, %363 : vector<4x256xf32>
    %c12_236 = arith.constant 12 : index
    %c0_237 = arith.constant 0 : index
    %c0_238 = arith.constant 0 : index
    %365 = vector.load %arg4[%c12_236, %c0_237, %c0_238] : memref<25x4x256xf32, #tpu.memory_space<vmem>>, vector<1x4x256xf32>
    %366 = vector.shape_cast %365 : vector<1x4x256xf32> to vector<4x256xf32>
    %367 = arith.mulf %305, %366 : vector<4x256xf32>
    %368 = arith.addf %364, %367 : vector<4x256xf32>
    %c255_i32_239 = arith.constant 255 : i32
    %369 = tpu.dynamic_rotate %305 by %c255_i32_239 dim 1 : vector<4x256xf32>, i32 -> vector<4x256xf32>
    %c13_240 = arith.constant 13 : index
    %c0_241 = arith.constant 0 : index
    %c0_242 = arith.constant 0 : index
    %370 = vector.load %arg4[%c13_240, %c0_241, %c0_242] : memref<25x4x256xf32, #tpu.memory_space<vmem>>, vector<1x4x256xf32>
    %371 = vector.shape_cast %370 : vector<1x4x256xf32> to vector<4x256xf32>
    %372 = arith.mulf %369, %371 : vector<4x256xf32>
    %373 = arith.addf %368, %372 : vector<4x256xf32>
    %c254_i32_243 = arith.constant 254 : i32
    %374 = tpu.dynamic_rotate %305 by %c254_i32_243 dim 1 : vector<4x256xf32>, i32 -> vector<4x256xf32>
    %c14_244 = arith.constant 14 : index
    %c0_245 = arith.constant 0 : index
    %c0_246 = arith.constant 0 : index
    %375 = vector.load %arg4[%c14_244, %c0_245, %c0_246] : memref<25x4x256xf32, #tpu.memory_space<vmem>>, vector<1x4x256xf32>
    %376 = vector.shape_cast %375 : vector<1x4x256xf32> to vector<4x256xf32>
    %377 = arith.mulf %374, %376 : vector<4x256xf32>
    %378 = arith.addf %373, %377 : vector<4x256xf32>
    %c242_i32_247 = arith.constant 242 : i32
    %379 = tpu.dynamic_rotate %305 by %c242_i32_247 dim 1 : vector<4x256xf32>, i32 -> vector<4x256xf32>
    %c15_248 = arith.constant 15 : index
    %c0_249 = arith.constant 0 : index
    %c0_250 = arith.constant 0 : index
    %380 = vector.load %arg4[%c15_248, %c0_249, %c0_250] : memref<25x4x256xf32, #tpu.memory_space<vmem>>, vector<1x4x256xf32>
    %381 = vector.shape_cast %380 : vector<1x4x256xf32> to vector<4x256xf32>
    %382 = arith.mulf %379, %381 : vector<4x256xf32>
    %383 = arith.addf %378, %382 : vector<4x256xf32>
    %c241_i32_251 = arith.constant 241 : i32
    %384 = tpu.dynamic_rotate %305 by %c241_i32_251 dim 1 : vector<4x256xf32>, i32 -> vector<4x256xf32>
    %c16_252 = arith.constant 16 : index
    %c0_253 = arith.constant 0 : index
    %c0_254 = arith.constant 0 : index
    %385 = vector.load %arg4[%c16_252, %c0_253, %c0_254] : memref<25x4x256xf32, #tpu.memory_space<vmem>>, vector<1x4x256xf32>
    %386 = vector.shape_cast %385 : vector<1x4x256xf32> to vector<4x256xf32>
    %387 = arith.mulf %384, %386 : vector<4x256xf32>
    %388 = arith.addf %383, %387 : vector<4x256xf32>
    %c240_i32_255 = arith.constant 240 : i32
    %389 = tpu.dynamic_rotate %305 by %c240_i32_255 dim 1 : vector<4x256xf32>, i32 -> vector<4x256xf32>
    %c17_256 = arith.constant 17 : index
    %c0_257 = arith.constant 0 : index
    %c0_258 = arith.constant 0 : index
    %390 = vector.load %arg4[%c17_256, %c0_257, %c0_258] : memref<25x4x256xf32, #tpu.memory_space<vmem>>, vector<1x4x256xf32>
    %391 = vector.shape_cast %390 : vector<1x4x256xf32> to vector<4x256xf32>
    %392 = arith.mulf %389, %391 : vector<4x256xf32>
    %393 = arith.addf %388, %392 : vector<4x256xf32>
    %c239_i32_259 = arith.constant 239 : i32
    %394 = tpu.dynamic_rotate %305 by %c239_i32_259 dim 1 : vector<4x256xf32>, i32 -> vector<4x256xf32>
    %c18_260 = arith.constant 18 : index
    %c0_261 = arith.constant 0 : index
    %c0_262 = arith.constant 0 : index
    %395 = vector.load %arg4[%c18_260, %c0_261, %c0_262] : memref<25x4x256xf32, #tpu.memory_space<vmem>>, vector<1x4x256xf32>
    %396 = vector.shape_cast %395 : vector<1x4x256xf32> to vector<4x256xf32>
    %397 = arith.mulf %394, %396 : vector<4x256xf32>
    %398 = arith.addf %393, %397 : vector<4x256xf32>
    %c238_i32_263 = arith.constant 238 : i32
    %399 = tpu.dynamic_rotate %305 by %c238_i32_263 dim 1 : vector<4x256xf32>, i32 -> vector<4x256xf32>
    %c19_264 = arith.constant 19 : index
    %c0_265 = arith.constant 0 : index
    %c0_266 = arith.constant 0 : index
    %400 = vector.load %arg4[%c19_264, %c0_265, %c0_266] : memref<25x4x256xf32, #tpu.memory_space<vmem>>, vector<1x4x256xf32>
    %401 = vector.shape_cast %400 : vector<1x4x256xf32> to vector<4x256xf32>
    %402 = arith.mulf %399, %401 : vector<4x256xf32>
    %403 = arith.addf %398, %402 : vector<4x256xf32>
    %c226_i32_267 = arith.constant 226 : i32
    %404 = tpu.dynamic_rotate %305 by %c226_i32_267 dim 1 : vector<4x256xf32>, i32 -> vector<4x256xf32>
    %c20_268 = arith.constant 20 : index
    %c0_269 = arith.constant 0 : index
    %c0_270 = arith.constant 0 : index
    %405 = vector.load %arg4[%c20_268, %c0_269, %c0_270] : memref<25x4x256xf32, #tpu.memory_space<vmem>>, vector<1x4x256xf32>
    %406 = vector.shape_cast %405 : vector<1x4x256xf32> to vector<4x256xf32>
    %407 = arith.mulf %404, %406 : vector<4x256xf32>
    %408 = arith.addf %403, %407 : vector<4x256xf32>
    %c225_i32_271 = arith.constant 225 : i32
    %409 = tpu.dynamic_rotate %305 by %c225_i32_271 dim 1 : vector<4x256xf32>, i32 -> vector<4x256xf32>
    %c21_272 = arith.constant 21 : index
    %c0_273 = arith.constant 0 : index
    %c0_274 = arith.constant 0 : index
    %410 = vector.load %arg4[%c21_272, %c0_273, %c0_274] : memref<25x4x256xf32, #tpu.memory_space<vmem>>, vector<1x4x256xf32>
    %411 = vector.shape_cast %410 : vector<1x4x256xf32> to vector<4x256xf32>
    %412 = arith.mulf %409, %411 : vector<4x256xf32>
    %413 = arith.addf %408, %412 : vector<4x256xf32>
    %c224_i32_275 = arith.constant 224 : i32
    %414 = tpu.dynamic_rotate %305 by %c224_i32_275 dim 1 : vector<4x256xf32>, i32 -> vector<4x256xf32>
    %c22_276 = arith.constant 22 : index
    %c0_277 = arith.constant 0 : index
    %c0_278 = arith.constant 0 : index
    %415 = vector.load %arg4[%c22_276, %c0_277, %c0_278] : memref<25x4x256xf32, #tpu.memory_space<vmem>>, vector<1x4x256xf32>
    %416 = vector.shape_cast %415 : vector<1x4x256xf32> to vector<4x256xf32>
    %417 = arith.mulf %414, %416 : vector<4x256xf32>
    %418 = arith.addf %413, %417 : vector<4x256xf32>
    %c223_i32_279 = arith.constant 223 : i32
    %419 = tpu.dynamic_rotate %305 by %c223_i32_279 dim 1 : vector<4x256xf32>, i32 -> vector<4x256xf32>
    %c23_280 = arith.constant 23 : index
    %c0_281 = arith.constant 0 : index
    %c0_282 = arith.constant 0 : index
    %420 = vector.load %arg4[%c23_280, %c0_281, %c0_282] : memref<25x4x256xf32, #tpu.memory_space<vmem>>, vector<1x4x256xf32>
    %421 = vector.shape_cast %420 : vector<1x4x256xf32> to vector<4x256xf32>
    %422 = arith.mulf %419, %421 : vector<4x256xf32>
    %423 = arith.addf %418, %422 : vector<4x256xf32>
    %c222_i32_283 = arith.constant 222 : i32
    %424 = tpu.dynamic_rotate %305 by %c222_i32_283 dim 1 : vector<4x256xf32>, i32 -> vector<4x256xf32>
    %c24_284 = arith.constant 24 : index
    %c0_285 = arith.constant 0 : index
    %c0_286 = arith.constant 0 : index
    %425 = vector.load %arg4[%c24_284, %c0_285, %c0_286] : memref<25x4x256xf32, #tpu.memory_space<vmem>>, vector<1x4x256xf32>
    %426 = vector.shape_cast %425 : vector<1x4x256xf32> to vector<4x256xf32>
    %427 = arith.mulf %424, %426 : vector<4x256xf32>
    %428 = arith.addf %423, %427 : vector<4x256xf32>
    %429 = vector.broadcast %5 : vector<4x1xf32> to vector<4x256xf32>
    %430 = arith.addf %428, %429 : vector<4x256xf32>
    %cst_287 = arith.constant 0.000000e+00 : f32
    %431 = vector.broadcast %cst_287 : f32 to vector<4x256xf32>
    %432 = arith.subf %431, %430 : vector<4x256xf32>
    %433 = math.exp %432 : vector<4x256xf32>
    %cst_288 = arith.constant 1.000000e+00 : f32
    %434 = vector.broadcast %cst_288 : f32 to vector<4x256xf32>
    %435 = arith.addf %434, %433 : vector<4x256xf32>
    %436 = tpu.reciprocal %435 {approx = true} : vector<4x256xf32> -> vector<4x256xf32>
    %437 = arith.mulf %430, %436 : vector<4x256xf32>
    %cst_289 = arith.constant dense<0.000000e+00> : vector<8x256xf32>
    %438 = tpu.matmul %2, %305, %cst_289 {dimension_numbers = #tpu.dot_dimension_numbers<[1], [0], [0], [1], [0, 0, 1, 1], [], []>, precision = #tpu.contract_precision<fp32>} : vector<8x4xf32>, vector<4x256xf32>, vector<8x256xf32> -> vector<8x256xf32>
    %cst_290 = arith.constant dense<0.000000e+00> : vector<8x256xf32>
    %439 = tpu.matmul %3, %437, %cst_290 {dimension_numbers = #tpu.dot_dimension_numbers<[1], [0], [0], [1], [0, 0, 1, 1], [], []>, precision = #tpu.contract_precision<fp32>} : vector<8x4xf32>, vector<4x256xf32>, vector<8x256xf32> -> vector<8x256xf32>
    %440 = vector.broadcast %6 : vector<8x1xf32> to vector<8x256xf32>
    %441 = arith.addf %439, %440 : vector<8x256xf32>
    %442 = arith.addf %438, %441 : vector<8x256xf32>
    %c34_i32_291 = arith.constant 34 : i32
    %443 = tpu.dynamic_rotate %442 by %c34_i32_291 dim 1 : vector<8x256xf32>, i32 -> vector<8x256xf32>
    %c0_292 = arith.constant 0 : index
    %c0_293 = arith.constant 0 : index
    %c0_294 = arith.constant 0 : index
    %444 = vector.load %arg5[%c0_292, %c0_293, %c0_294] : memref<25x8x256xf32, #tpu.memory_space<vmem>>, vector<1x8x256xf32>
    %445 = vector.shape_cast %444 : vector<1x8x256xf32> to vector<8x256xf32>
    %446 = arith.mulf %443, %445 : vector<8x256xf32>
    %c33_i32_295 = arith.constant 33 : i32
    %447 = tpu.dynamic_rotate %442 by %c33_i32_295 dim 1 : vector<8x256xf32>, i32 -> vector<8x256xf32>
    %c1_296 = arith.constant 1 : index
    %c0_297 = arith.constant 0 : index
    %c0_298 = arith.constant 0 : index
    %448 = vector.load %arg5[%c1_296, %c0_297, %c0_298] : memref<25x8x256xf32, #tpu.memory_space<vmem>>, vector<1x8x256xf32>
    %449 = vector.shape_cast %448 : vector<1x8x256xf32> to vector<8x256xf32>
    %450 = arith.mulf %447, %449 : vector<8x256xf32>
    %451 = arith.addf %446, %450 : vector<8x256xf32>
    %c32_i32_299 = arith.constant 32 : i32
    %452 = tpu.dynamic_rotate %442 by %c32_i32_299 dim 1 : vector<8x256xf32>, i32 -> vector<8x256xf32>
    %c2_300 = arith.constant 2 : index
    %c0_301 = arith.constant 0 : index
    %c0_302 = arith.constant 0 : index
    %453 = vector.load %arg5[%c2_300, %c0_301, %c0_302] : memref<25x8x256xf32, #tpu.memory_space<vmem>>, vector<1x8x256xf32>
    %454 = vector.shape_cast %453 : vector<1x8x256xf32> to vector<8x256xf32>
    %455 = arith.mulf %452, %454 : vector<8x256xf32>
    %456 = arith.addf %451, %455 : vector<8x256xf32>
    %c31_i32_303 = arith.constant 31 : i32
    %457 = tpu.dynamic_rotate %442 by %c31_i32_303 dim 1 : vector<8x256xf32>, i32 -> vector<8x256xf32>
    %c3_304 = arith.constant 3 : index
    %c0_305 = arith.constant 0 : index
    %c0_306 = arith.constant 0 : index
    %458 = vector.load %arg5[%c3_304, %c0_305, %c0_306] : memref<25x8x256xf32, #tpu.memory_space<vmem>>, vector<1x8x256xf32>
    %459 = vector.shape_cast %458 : vector<1x8x256xf32> to vector<8x256xf32>
    %460 = arith.mulf %457, %459 : vector<8x256xf32>
    %461 = arith.addf %456, %460 : vector<8x256xf32>
    %c30_i32_307 = arith.constant 30 : i32
    %462 = tpu.dynamic_rotate %442 by %c30_i32_307 dim 1 : vector<8x256xf32>, i32 -> vector<8x256xf32>
    %c4_308 = arith.constant 4 : index
    %c0_309 = arith.constant 0 : index
    %c0_310 = arith.constant 0 : index
    %463 = vector.load %arg5[%c4_308, %c0_309, %c0_310] : memref<25x8x256xf32, #tpu.memory_space<vmem>>, vector<1x8x256xf32>
    %464 = vector.shape_cast %463 : vector<1x8x256xf32> to vector<8x256xf32>
    %465 = arith.mulf %462, %464 : vector<8x256xf32>
    %466 = arith.addf %461, %465 : vector<8x256xf32>
    %c18_i32_311 = arith.constant 18 : i32
    %467 = tpu.dynamic_rotate %442 by %c18_i32_311 dim 1 : vector<8x256xf32>, i32 -> vector<8x256xf32>
    %c5_312 = arith.constant 5 : index
    %c0_313 = arith.constant 0 : index
    %c0_314 = arith.constant 0 : index
    %468 = vector.load %arg5[%c5_312, %c0_313, %c0_314] : memref<25x8x256xf32, #tpu.memory_space<vmem>>, vector<1x8x256xf32>
    %469 = vector.shape_cast %468 : vector<1x8x256xf32> to vector<8x256xf32>
    %470 = arith.mulf %467, %469 : vector<8x256xf32>
    %471 = arith.addf %466, %470 : vector<8x256xf32>
    %c17_i32_315 = arith.constant 17 : i32
    %472 = tpu.dynamic_rotate %442 by %c17_i32_315 dim 1 : vector<8x256xf32>, i32 -> vector<8x256xf32>
    %c6_316 = arith.constant 6 : index
    %c0_317 = arith.constant 0 : index
    %c0_318 = arith.constant 0 : index
    %473 = vector.load %arg5[%c6_316, %c0_317, %c0_318] : memref<25x8x256xf32, #tpu.memory_space<vmem>>, vector<1x8x256xf32>
    %474 = vector.shape_cast %473 : vector<1x8x256xf32> to vector<8x256xf32>
    %475 = arith.mulf %472, %474 : vector<8x256xf32>
    %476 = arith.addf %471, %475 : vector<8x256xf32>
    %c16_i32_319 = arith.constant 16 : i32
    %477 = tpu.dynamic_rotate %442 by %c16_i32_319 dim 1 : vector<8x256xf32>, i32 -> vector<8x256xf32>
    %c7_320 = arith.constant 7 : index
    %c0_321 = arith.constant 0 : index
    %c0_322 = arith.constant 0 : index
    %478 = vector.load %arg5[%c7_320, %c0_321, %c0_322] : memref<25x8x256xf32, #tpu.memory_space<vmem>>, vector<1x8x256xf32>
    %479 = vector.shape_cast %478 : vector<1x8x256xf32> to vector<8x256xf32>
    %480 = arith.mulf %477, %479 : vector<8x256xf32>
    %481 = arith.addf %476, %480 : vector<8x256xf32>
    %c15_i32_323 = arith.constant 15 : i32
    %482 = tpu.dynamic_rotate %442 by %c15_i32_323 dim 1 : vector<8x256xf32>, i32 -> vector<8x256xf32>
    %c8_324 = arith.constant 8 : index
    %c0_325 = arith.constant 0 : index
    %c0_326 = arith.constant 0 : index
    %483 = vector.load %arg5[%c8_324, %c0_325, %c0_326] : memref<25x8x256xf32, #tpu.memory_space<vmem>>, vector<1x8x256xf32>
    %484 = vector.shape_cast %483 : vector<1x8x256xf32> to vector<8x256xf32>
    %485 = arith.mulf %482, %484 : vector<8x256xf32>
    %486 = arith.addf %481, %485 : vector<8x256xf32>
    %c14_i32_327 = arith.constant 14 : i32
    %487 = tpu.dynamic_rotate %442 by %c14_i32_327 dim 1 : vector<8x256xf32>, i32 -> vector<8x256xf32>
    %c9_328 = arith.constant 9 : index
    %c0_329 = arith.constant 0 : index
    %c0_330 = arith.constant 0 : index
    %488 = vector.load %arg5[%c9_328, %c0_329, %c0_330] : memref<25x8x256xf32, #tpu.memory_space<vmem>>, vector<1x8x256xf32>
    %489 = vector.shape_cast %488 : vector<1x8x256xf32> to vector<8x256xf32>
    %490 = arith.mulf %487, %489 : vector<8x256xf32>
    %491 = arith.addf %486, %490 : vector<8x256xf32>
    %c2_i32_331 = arith.constant 2 : i32
    %492 = tpu.dynamic_rotate %442 by %c2_i32_331 dim 1 : vector<8x256xf32>, i32 -> vector<8x256xf32>
    %c10_332 = arith.constant 10 : index
    %c0_333 = arith.constant 0 : index
    %c0_334 = arith.constant 0 : index
    %493 = vector.load %arg5[%c10_332, %c0_333, %c0_334] : memref<25x8x256xf32, #tpu.memory_space<vmem>>, vector<1x8x256xf32>
    %494 = vector.shape_cast %493 : vector<1x8x256xf32> to vector<8x256xf32>
    %495 = arith.mulf %492, %494 : vector<8x256xf32>
    %496 = arith.addf %491, %495 : vector<8x256xf32>
    %c1_i32_335 = arith.constant 1 : i32
    %497 = tpu.dynamic_rotate %442 by %c1_i32_335 dim 1 : vector<8x256xf32>, i32 -> vector<8x256xf32>
    %c11_336 = arith.constant 11 : index
    %c0_337 = arith.constant 0 : index
    %c0_338 = arith.constant 0 : index
    %498 = vector.load %arg5[%c11_336, %c0_337, %c0_338] : memref<25x8x256xf32, #tpu.memory_space<vmem>>, vector<1x8x256xf32>
    %499 = vector.shape_cast %498 : vector<1x8x256xf32> to vector<8x256xf32>
    %500 = arith.mulf %497, %499 : vector<8x256xf32>
    %501 = arith.addf %496, %500 : vector<8x256xf32>
    %c12_339 = arith.constant 12 : index
    %c0_340 = arith.constant 0 : index
    %c0_341 = arith.constant 0 : index
    %502 = vector.load %arg5[%c12_339, %c0_340, %c0_341] : memref<25x8x256xf32, #tpu.memory_space<vmem>>, vector<1x8x256xf32>
    %503 = vector.shape_cast %502 : vector<1x8x256xf32> to vector<8x256xf32>
    %504 = arith.mulf %442, %503 : vector<8x256xf32>
    %505 = arith.addf %501, %504 : vector<8x256xf32>
    %c255_i32_342 = arith.constant 255 : i32
    %506 = tpu.dynamic_rotate %442 by %c255_i32_342 dim 1 : vector<8x256xf32>, i32 -> vector<8x256xf32>
    %c13_343 = arith.constant 13 : index
    %c0_344 = arith.constant 0 : index
    %c0_345 = arith.constant 0 : index
    %507 = vector.load %arg5[%c13_343, %c0_344, %c0_345] : memref<25x8x256xf32, #tpu.memory_space<vmem>>, vector<1x8x256xf32>
    %508 = vector.shape_cast %507 : vector<1x8x256xf32> to vector<8x256xf32>
    %509 = arith.mulf %506, %508 : vector<8x256xf32>
    %510 = arith.addf %505, %509 : vector<8x256xf32>
    %c254_i32_346 = arith.constant 254 : i32
    %511 = tpu.dynamic_rotate %442 by %c254_i32_346 dim 1 : vector<8x256xf32>, i32 -> vector<8x256xf32>
    %c14_347 = arith.constant 14 : index
    %c0_348 = arith.constant 0 : index
    %c0_349 = arith.constant 0 : index
    %512 = vector.load %arg5[%c14_347, %c0_348, %c0_349] : memref<25x8x256xf32, #tpu.memory_space<vmem>>, vector<1x8x256xf32>
    %513 = vector.shape_cast %512 : vector<1x8x256xf32> to vector<8x256xf32>
    %514 = arith.mulf %511, %513 : vector<8x256xf32>
    %515 = arith.addf %510, %514 : vector<8x256xf32>
    %c242_i32_350 = arith.constant 242 : i32
    %516 = tpu.dynamic_rotate %442 by %c242_i32_350 dim 1 : vector<8x256xf32>, i32 -> vector<8x256xf32>
    %c15_351 = arith.constant 15 : index
    %c0_352 = arith.constant 0 : index
    %c0_353 = arith.constant 0 : index
    %517 = vector.load %arg5[%c15_351, %c0_352, %c0_353] : memref<25x8x256xf32, #tpu.memory_space<vmem>>, vector<1x8x256xf32>
    %518 = vector.shape_cast %517 : vector<1x8x256xf32> to vector<8x256xf32>
    %519 = arith.mulf %516, %518 : vector<8x256xf32>
    %520 = arith.addf %515, %519 : vector<8x256xf32>
    %c241_i32_354 = arith.constant 241 : i32
    %521 = tpu.dynamic_rotate %442 by %c241_i32_354 dim 1 : vector<8x256xf32>, i32 -> vector<8x256xf32>
    %c16_355 = arith.constant 16 : index
    %c0_356 = arith.constant 0 : index
    %c0_357 = arith.constant 0 : index
    %522 = vector.load %arg5[%c16_355, %c0_356, %c0_357] : memref<25x8x256xf32, #tpu.memory_space<vmem>>, vector<1x8x256xf32>
    %523 = vector.shape_cast %522 : vector<1x8x256xf32> to vector<8x256xf32>
    %524 = arith.mulf %521, %523 : vector<8x256xf32>
    %525 = arith.addf %520, %524 : vector<8x256xf32>
    %c240_i32_358 = arith.constant 240 : i32
    %526 = tpu.dynamic_rotate %442 by %c240_i32_358 dim 1 : vector<8x256xf32>, i32 -> vector<8x256xf32>
    %c17_359 = arith.constant 17 : index
    %c0_360 = arith.constant 0 : index
    %c0_361 = arith.constant 0 : index
    %527 = vector.load %arg5[%c17_359, %c0_360, %c0_361] : memref<25x8x256xf32, #tpu.memory_space<vmem>>, vector<1x8x256xf32>
    %528 = vector.shape_cast %527 : vector<1x8x256xf32> to vector<8x256xf32>
    %529 = arith.mulf %526, %528 : vector<8x256xf32>
    %530 = arith.addf %525, %529 : vector<8x256xf32>
    %c239_i32_362 = arith.constant 239 : i32
    %531 = tpu.dynamic_rotate %442 by %c239_i32_362 dim 1 : vector<8x256xf32>, i32 -> vector<8x256xf32>
    %c18_363 = arith.constant 18 : index
    %c0_364 = arith.constant 0 : index
    %c0_365 = arith.constant 0 : index
    %532 = vector.load %arg5[%c18_363, %c0_364, %c0_365] : memref<25x8x256xf32, #tpu.memory_space<vmem>>, vector<1x8x256xf32>
    %533 = vector.shape_cast %532 : vector<1x8x256xf32> to vector<8x256xf32>
    %534 = arith.mulf %531, %533 : vector<8x256xf32>
    %535 = arith.addf %530, %534 : vector<8x256xf32>
    %c238_i32_366 = arith.constant 238 : i32
    %536 = tpu.dynamic_rotate %442 by %c238_i32_366 dim 1 : vector<8x256xf32>, i32 -> vector<8x256xf32>
    %c19_367 = arith.constant 19 : index
    %c0_368 = arith.constant 0 : index
    %c0_369 = arith.constant 0 : index
    %537 = vector.load %arg5[%c19_367, %c0_368, %c0_369] : memref<25x8x256xf32, #tpu.memory_space<vmem>>, vector<1x8x256xf32>
    %538 = vector.shape_cast %537 : vector<1x8x256xf32> to vector<8x256xf32>
    %539 = arith.mulf %536, %538 : vector<8x256xf32>
    %540 = arith.addf %535, %539 : vector<8x256xf32>
    %c226_i32_370 = arith.constant 226 : i32
    %541 = tpu.dynamic_rotate %442 by %c226_i32_370 dim 1 : vector<8x256xf32>, i32 -> vector<8x256xf32>
    %c20_371 = arith.constant 20 : index
    %c0_372 = arith.constant 0 : index
    %c0_373 = arith.constant 0 : index
    %542 = vector.load %arg5[%c20_371, %c0_372, %c0_373] : memref<25x8x256xf32, #tpu.memory_space<vmem>>, vector<1x8x256xf32>
    %543 = vector.shape_cast %542 : vector<1x8x256xf32> to vector<8x256xf32>
    %544 = arith.mulf %541, %543 : vector<8x256xf32>
    %545 = arith.addf %540, %544 : vector<8x256xf32>
    %c225_i32_374 = arith.constant 225 : i32
    %546 = tpu.dynamic_rotate %442 by %c225_i32_374 dim 1 : vector<8x256xf32>, i32 -> vector<8x256xf32>
    %c21_375 = arith.constant 21 : index
    %c0_376 = arith.constant 0 : index
    %c0_377 = arith.constant 0 : index
    %547 = vector.load %arg5[%c21_375, %c0_376, %c0_377] : memref<25x8x256xf32, #tpu.memory_space<vmem>>, vector<1x8x256xf32>
    %548 = vector.shape_cast %547 : vector<1x8x256xf32> to vector<8x256xf32>
    %549 = arith.mulf %546, %548 : vector<8x256xf32>
    %550 = arith.addf %545, %549 : vector<8x256xf32>
    %c224_i32_378 = arith.constant 224 : i32
    %551 = tpu.dynamic_rotate %442 by %c224_i32_378 dim 1 : vector<8x256xf32>, i32 -> vector<8x256xf32>
    %c22_379 = arith.constant 22 : index
    %c0_380 = arith.constant 0 : index
    %c0_381 = arith.constant 0 : index
    %552 = vector.load %arg5[%c22_379, %c0_380, %c0_381] : memref<25x8x256xf32, #tpu.memory_space<vmem>>, vector<1x8x256xf32>
    %553 = vector.shape_cast %552 : vector<1x8x256xf32> to vector<8x256xf32>
    %554 = arith.mulf %551, %553 : vector<8x256xf32>
    %555 = arith.addf %550, %554 : vector<8x256xf32>
    %c223_i32_382 = arith.constant 223 : i32
    %556 = tpu.dynamic_rotate %442 by %c223_i32_382 dim 1 : vector<8x256xf32>, i32 -> vector<8x256xf32>
    %c23_383 = arith.constant 23 : index
    %c0_384 = arith.constant 0 : index
    %c0_385 = arith.constant 0 : index
    %557 = vector.load %arg5[%c23_383, %c0_384, %c0_385] : memref<25x8x256xf32, #tpu.memory_space<vmem>>, vector<1x8x256xf32>
    %558 = vector.shape_cast %557 : vector<1x8x256xf32> to vector<8x256xf32>
    %559 = arith.mulf %556, %558 : vector<8x256xf32>
    %560 = arith.addf %555, %559 : vector<8x256xf32>
    %c222_i32_386 = arith.constant 222 : i32
    %561 = tpu.dynamic_rotate %442 by %c222_i32_386 dim 1 : vector<8x256xf32>, i32 -> vector<8x256xf32>
    %c24_387 = arith.constant 24 : index
    %c0_388 = arith.constant 0 : index
    %c0_389 = arith.constant 0 : index
    %562 = vector.load %arg5[%c24_387, %c0_388, %c0_389] : memref<25x8x256xf32, #tpu.memory_space<vmem>>, vector<1x8x256xf32>
    %563 = vector.shape_cast %562 : vector<1x8x256xf32> to vector<8x256xf32>
    %564 = arith.mulf %561, %563 : vector<8x256xf32>
    %565 = arith.addf %560, %564 : vector<8x256xf32>
    %566 = vector.broadcast %7 : vector<8x1xf32> to vector<8x256xf32>
    %567 = arith.addf %565, %566 : vector<8x256xf32>
    %c1_390 = arith.constant 1 : index
    %c0_391 = arith.constant 0 : index
    %c0_392 = arith.constant 0 : index
    %568 = vector.load %arg1[%c1_390, %c0_391, %c0_392] : memref<2x16x256xf32, #tpu.memory_space<vmem>>, vector<1x8x256xf32>
    %569 = vector.shape_cast %568 : vector<1x8x256xf32> to vector<8x256xf32>
    %570 = arith.addf %442, %569 : vector<8x256xf32>
    %c1_393 = arith.constant 1 : index
    %c0_394 = arith.constant 0 : index
    %c0_395 = arith.constant 0 : index
    %571 = vector.load %arg7[%c1_393, %c0_394, %c0_395] : memref<2x16x256xf32, #tpu.memory_space<vmem>>, vector<1x8x256xf32>
    %572 = vector.shape_cast %571 : vector<1x8x256xf32> to vector<8x256xf32>
    %573 = vector.shape_cast %570 : vector<8x256xf32> to vector<1x8x256xf32>
    tpu.vector_store %arg7[%c1_393, %c0_394, %c0_395], %573 {strides = array<i32>} : memref<2x16x256xf32, #tpu.memory_space<vmem>>, vector<1x8x256xf32>,
    %c1_396 = arith.constant 1 : index
    %c8_397 = arith.constant 8 : index
    %c0_398 = arith.constant 0 : index
    %574 = vector.load %arg1[%c1_396, %c8_397, %c0_398] : memref<2x16x256xf32, #tpu.memory_space<vmem>>, vector<1x8x256xf32>
    %575 = vector.shape_cast %574 : vector<1x8x256xf32> to vector<8x256xf32>
    %576 = arith.addf %567, %575 : vector<8x256xf32>
    %c1_399 = arith.constant 1 : index
    %c8_400 = arith.constant 8 : index
    %c0_401 = arith.constant 0 : index
    %577 = vector.load %arg7[%c1_399, %c8_400, %c0_401] : memref<2x16x256xf32, #tpu.memory_space<vmem>>, vector<1x8x256xf32>
    %578 = vector.shape_cast %577 : vector<1x8x256xf32> to vector<8x256xf32>
    %579 = vector.shape_cast %576 : vector<8x256xf32> to vector<1x8x256xf32>
    tpu.vector_store %arg7[%c1_399, %c8_400, %c0_401], %579 {strides = array<i32>} : memref<2x16x256xf32, #tpu.memory_space<vmem>>, vector<1x8x256xf32>,
    return
  }
  func.func @transform_0(%arg0: i32) -> (i32, i32, i32) {
    %c0_i32 = arith.constant 0 : i32
    %c0_i32_0 = arith.constant 0 : i32
    %c0_i32_1 = arith.constant 0 : i32
    return %arg0, %c0_i32, %c0_i32_0 : i32, i32, i32
  }
  func.func @transform_1(%arg0: i32) -> (i32, i32) {
    %c0_i32 = arith.constant 0 : i32
    %c0_i32_0 = arith.constant 0 : i32
    %c0_i32_1 = arith.constant 0 : i32
    return %c0_i32, %c0_i32_0 : i32, i32
  }
  func.func @transform_2(%arg0: i32) -> (i32, i32) {
    %c0_i32 = arith.constant 0 : i32
    %c0_i32_0 = arith.constant 0 : i32
    %c0_i32_1 = arith.constant 0 : i32
    return %c0_i32, %c0_i32_0 : i32, i32
  }
  func.func @transform_3(%arg0: i32) -> (i32, i32, i32) {
    %c0_i32 = arith.constant 0 : i32
    %c0_i32_0 = arith.constant 0 : i32
    %c0_i32_1 = arith.constant 0 : i32
    %c0_i32_2 = arith.constant 0 : i32
    return %c0_i32, %c0_i32_0, %c0_i32_1 : i32, i32, i32
  }
  func.func @transform_4(%arg0: i32) -> (i32, i32, i32) {
    %c0_i32 = arith.constant 0 : i32
    %c0_i32_0 = arith.constant 0 : i32
    %c0_i32_1 = arith.constant 0 : i32
    %c0_i32_2 = arith.constant 0 : i32
    return %c0_i32, %c0_i32_0, %c0_i32_1 : i32, i32, i32
  }
  func.func @transform_5(%arg0: i32) -> (i32, i32) {
    %c0_i32 = arith.constant 0 : i32
    %c0_i32_0 = arith.constant 0 : i32
    %c0_i32_1 = arith.constant 0 : i32
    return %c0_i32, %c0_i32_0 : i32, i32
  }
  func.func @transform_6(%arg0: i32) -> (i32, i32, i32) {
    %c0_i32 = arith.constant 0 : i32
    %c0_i32_0 = arith.constant 0 : i32
    %c0_i32_1 = arith.constant 0 : i32
    return %arg0, %c0_i32, %c0_i32_0 : i32, i32, i32
  }
}

</mosaic_0001>

<bundles_post_ra>
// kernel: tpu_custom_call.1
= control target key start
LH: loop header
LB: loop body
LE: loop exit
PB: predicated region body
PF: predicated region fallthrough
CT: control target
= control target key end

     0   :  { %s7216_s0 = inlined_call_operand.hbm [shape: f32[4,16,256], index: 0, kind: input, shape index: {}]   ;;  %s7217_s1 = inlined_call_operand.vmem [shape: f32[4,16], index: 1, kind: input, shape index: {}]   ;;  %s7218_s2 = inlined_call_operand.vmem [shape: f32[16,4], index: 2, kind: input, shape index: {}]   ;;  %s7219_s3 = inlined_call_operand.hbm [shape: f32[25,4,256], index: 3, kind: input, shape index: {}]   ;;  %s7220_s4 = inlined_call_operand.hbm [shape: f32[25,8,256], index: 4, kind: input, shape index: {}]   ;;  %s7221_s5 = inlined_call_operand.vmem [shape: f32[32,1], index: 5, kind: input, shape index: {}]   ;;  %s7222_s6 = inlined_call_operand.hbm [shape: f32[4,16,256], index: 6, kind: output, shape index: {}]  }
   0x1   :  { %7359 = sst [smem:[#allocation55_spill]] %s7216_s0 }
   0x2   :  { %7360 = sst [smem:[#allocation56_spill]] %s7217_s1 }
   0x3   :  { %7361 = sst [smem:[#allocation57_spill]] %s7218_s2 }
   0x4   :  { %7362 = sst [smem:[#allocation58_spill]] %s7219_s3 }
   0x5   :  { %7363 = sst [smem:[#allocation59_spill]] %s7220_s4 }
   0x6   :  { %7364 = sst [smem:[#allocation60_spill]] %s7222_s6 }
   0x7   :  { %11 = vsyncpa [#allocation3], 0 }
   0x8   :  { %13 = vsyncpa [#allocation3 + $0x1], 0 }
   0x9   :  { %14 = vsyncpa [#allocation6], 0 }
   0xa   :  { %15 = vsyncpa [#allocation4], 0 }
   0xb   :  { %17 = vsyncpa [#allocation4 + $0x1], 0  ;;  %s5287_s21 = smov 0   ;;  %s5289_s22 = smov 0  }
   0xc   :  { %s5291_s23 = smov 0   ;;  %s5293_s24 = smov 0  }
   0xd LB: > { %7365 = sst [smem:[#allocation12_spill]] %s5203_s21  ;;  %s5308_s25 = sadd.s32 4294967295, %s5215_s24   ;;  %s5215_s24 = sphi %s5293_s24, %s7612_s24   ;;  %s5211_s23 = sphi %s5291_s23, %s7615_s23   ;;  %s5207_s22 = sphi %s5289_s22, %s7614_s22   ;;  %s5203_s21 = sphi %s5287_s21, %s7613_s21  }
   0xe   : > { %7366 = sst [smem:[#allocation13_spill]] %s5207_s22  ;;  %s4746_s26 = sadd.s32 4294967294, %s5215_s24  }
   0xf   : > { %7367 = sst [smem:[#allocation14_spill]] %s5211_s23  ;;  %p43_p0 = scmp.ne.s32.totalorder %s5207_s22, %s5203_s21 }
  0x10   : > { %7368 = sst [smem:[#allocation15_spill]] %s5215_s24  ;;  %p7223_p1 = scmp.eq.s32.totalorder %s5308_s25, 0 }
  0x11   : > { %p178_p3 = scmp.eq.s32.totalorder %s4746_s26, 1  ;;  %p4747_p5 = scmp.ge.s32.totalorder %s5215_s24, 1 }
  0x12   : > { %p5317_p4 = por %p7223_p1, %p43_p0  ;;  %p185_p7 = scmp.lt.s32.totalorder %s5215_s24, 3 }
  0x13   : > { %p5322_p6 = por %p178_p3, %p43_p0  ;;  %s5217_s30 = smov [#allocation5]  }
  0x14   : > { %s7369_s27 = scalar_select %p5317_p4, 1, 0 }
  0x15   : > { %s7370_s28 = scalar_select %p5322_p6, 1, 0 }
  0x16   : > { %p5327_p8 = pnand %p4747_p5, %p185_p7  ;;  %s203_s7 = sshll.u32 %s5217_s30, 4  ;;  %s5331_s7 = int_to_ptr.vmem [resolvable:$true] %s203_s7 }
  0x17   : > { %7371 = sst [smem:[#allocation16_spill]] %s7370_s28  ;;  %s5218_s9 = smov [#allocation7]  }
  0x18   : > { %p4914_p9 = pneg %p5327_p8  ;;  %s216_s10 = sshll.u32 %s5218_s9, 4  ;;  %s5342_s10 = int_to_ptr.vmem [resolvable:$true] %s216_s10 }
  0x19   : > { %s7374_s3 = sld [smem:[#allocation58_spill]] }
  0x1a   : > { %p5338_p11 = pnand %p4914_p9, %p7223_p1 }
  0x1c   : > { %p5061_p13 = pneg %p5338_p11 }
  0x1f   : > { %s5059_s13 = scalar_lea.hbm %s7374_s3, 3200 }
  0x20   : > { %p5060_p12 = scmp.ne.s32.totalorder %s7374_s3, %s5059_s13  ;;  %p5066_p5 = scmp.lt.u32.totalorder %s5059_s13, %s7374_s3 }
  0x22   : > { %p5062_p0 = pnand %p5061_p13, %p5060_p12 }
  0x24   : > { %p5063_p3 = pneg %p5062_p0 }
  0x26   : > { %p5068_p7 = pnand %p5066_p5, %p5063_p3 }
  0x28   : > { %5071 = shalt.err (!%p5068_p7)
}
  0x29   : > { %s5072_s18 = scalar_lea.vmem %s5331_s7, 3200  ;;  %p5080_p2 = scmp.lt.s32.totalorder %s5331_s7, %s5331_s7 }
  0x2a   : > { %p5073_p9 = scmp.ne.s32.totalorder %s5331_s7, %s5072_s18  ;;  %p5081_p12 = scmp.lt.s32.totalorder %s5072_s18, %s5072_s18 }
  0x2c   : > { %p5075_p10 = pnand %p5073_p9, %p5061_p13  ;;  %p5082_p0 = por %p5081_p12, %p5080_p2 }
  0x2e   : > { %p5076_p1 = pneg %p5075_p10 }
  0x30   : > { %p5083_p6 = pnand %p5082_p0, %p5076_p1 }
  0x32   : > { %5086 = shalt.err (!%p5083_p6)
}
  0x33   : > { %s5219_s19 = smov 128   ;;  %s5220_s20 = smov 8  }
  0x34   : > { %4917 = dma.hbm_to_vmem [thread:$0]  (!%p5338_p11), %s7374_s3, 3200, %s5331_s7, [#allocation6], %s5219_s19, %s5219_s19, %s5220_s20  }
  0x35   : > { %s7375_s4 = sld [smem:[#allocation59_spill]] }
  0x3b   : > { %s5087_s12 = scalar_lea.hbm %s7375_s4, 6400 }
  0x3c   : > { %p5088_p2 = scmp.ne.s32.totalorder %s7375_s4, %s5087_s12  ;;  %p5094_p10 = scmp.lt.u32.totalorder %s5087_s12, %s7375_s4 }
  0x3e   : > { %p5090_p1 = pnand %p5088_p2, %p5061_p13 }
  0x40   : > { %p5091_p6 = pneg %p5090_p1 }
  0x42   : > { %p5096_p3 = pnand %p5094_p10, %p5091_p6 }
  0x44   : > { %5099 = shalt.err (!%p5096_p3)
}
  0x45   : > { %s5100_s7 = scalar_lea.vmem %s5342_s10, 6400  ;;  %p5108_p12 = scmp.lt.s32.totalorder %s5342_s10, %s5342_s10 }
  0x46   : > { %p5101_p5 = scmp.ne.s32.totalorder %s5342_s10, %s5100_s7  ;;  %p5109_p0 = scmp.lt.s32.totalorder %s5100_s7, %s5100_s7 }
  0x48   : > { %p5103_p7 = pnand %p5101_p5, %p5061_p13  ;;  %p5110_p2 = por %p5109_p0, %p5108_p12 }
  0x4a   : > { %p5104_p9 = pneg %p5103_p7 }
  0x4c   : > { %p5111_p1 = pnand %p5110_p2, %p5104_p9 }
  0x4e   : > { %5114 = shalt.err (!%p5111_p1)
}
  0x4f   : > { %s5221_s17 = smov 256   ;;  %s5222_s18 = smov 16  }
  0x50   : > { %4920 = dma.hbm_to_vmem [thread:$0]  (!%p5338_p11), %s7375_s4, 6400, %s5342_s10, [#allocation6], %s5221_s17, %s5221_s17, %s5222_s18  }
  0x51   : > { %s5400_s26 = sadd.s32 1, %s5215_s24   ;;  %s30_s9 = sadd.s32 1, %s5211_s23 }
  0x52   : > { %7376 = sst [smem:[#allocation17_spill]] %s5400_s26  ;;  %s27_s30 = ssub.s32 %s5215_s24, %s5400_s26 }
  0x53   : > { %p28_p13 = scmp.eq.s32.totalorder %s27_s30, 0  ;;  %p37_p6 = scmp.ne.s32.totalorder %s5211_s23, %s5207_s22 }
  0x54   : > { %p38_p10 = scmp.eq.s32.totalorder %s5215_s24, 0  ;;  %p7378_p5 = scmp.eq.s32.totalorder %s5308_s25, 1 }
  0x55   : > { %s5409_s11 = scalar_select %p28_p13, %s5211_s23, %s30_s9  }
  0x56   : > { %p39_p3 = por %p38_p10, %p37_p6  ;;  %p5413_p7 = por %p7378_p5, %p37_p6 }
  0x57   : > { %7377 = sst [smem:[#allocation18_spill]] %s5409_s11  ;;  %p4931_p9 = scmp.lt.s32.totalorder %s5215_s24, 2 }
  0x58   : > { %s7379_s8 = scalar_select %p5413_p7, 1, 0 }
  0x59   : > { %s233_s12 = sand.u32 1, %s5211_s23   ;;  %s4779_s10 = sshll.u32 %s5215_s24, 10 }
  0x5a   : > { %7380 = sst [smem:[#allocation19_spill]] %s7379_s8  ;;  %s4751_s13 = sshll.u32 %s233_s12, 6 }
  0x5b   : > { %s7381_s0 = sld [smem:[#allocation55_spill]]  ;;  %s237_s7 = scalar_lea.vmem [#allocation2], %s4751_s13 }
  0x5c   : > { %s245_s19 = sshll.u32 %s237_s7, 4  ;;  %p5427_p11 = pnand %p4931_p9, %p39_p3  ;;  %s5425_s19 = int_to_ptr.vmem [resolvable:$true] %s245_s19 }
  0x5d   : > { %s5431_s30 = scalar_lea.sflag [#allocation3], %s233_s12 }
  0x5e   : > { %p5117_p0 = pneg %p5427_p11 }
  0x61   : > { %s5423_s16 = scalar_lea.hbm %s7381_s0, %s4779_s10  ;;  %s5120_s14 = scalar_lea.hbm %s7381_s0, 2048 }
  0x62   : > { %s5115_s9 = scalar_lea.hbm %s5423_s16, 1024  ;;  %p5121_p13 = scmp.lt.u32.totalorder %s5423_s16, %s7381_s0 }
  0x63   : > { %p5116_p12 = scmp.ne.s32.totalorder %s5423_s16, %s5115_s9  ;;  %p5122_p6 = scmp.lt.u32.totalorder %s5120_s14, %s5115_s9 }
  0x64   : > { %p5124_p3 = scmp.lt.u32.totalorder %s5115_s9, %s5423_s16 }
  0x65   : > { %p5118_p2 = pnand %p5117_p0, %p5116_p12  ;;  %p5123_p10 = por %p5122_p6, %p5121_p13 }
  0x67   : > { %p5119_p1 = pneg %p5118_p2  ;;  %p5125_p5 = por %p5124_p3, %p5123_p10 }
  0x69   : > { %p5126_p9 = pnand %p5125_p5, %p5119_p1 }
  0x6b   : > { %5129 = shalt.err (!%p5126_p9)
}
  0x6c   : > { %s5130_s12 = scalar_lea.vmem %s5425_s19, 1024  ;;  %s5223_s13 = smov [#allocation2]  }
  0x6d   : > { %p5131_p12 = scmp.ne.s32.totalorder %s5425_s19, %s5130_s12  ;;  %s5135_s10 = sshll.u32 %s5223_s13, 4  ;;  %s5136_s10 = int_to_ptr.vmem [resolvable:$false] %s5135_s10 }
  0x6e   : > { %s5137_s15 = scalar_lea.vmem %s5136_s10, 2048  ;;  %p5138_p4 = scmp.lt.s32.totalorder %s5425_s19, %s5136_s10 }
  0x6f   : > { %p5133_p2 = pnand %p5131_p12, %p5117_p0  ;;  %p5139_p13 = scmp.lt.s32.totalorder %s5137_s15, %s5130_s12 }
  0x71   : > { %p5134_p7 = pneg %p5133_p2  ;;  %p5140_p6 = por %p5139_p13, %p5138_p4 }
  0x73   : > { %p5141_p10 = pnand %p5140_p6, %p5134_p7 }
  0x75   : > { %5144 = shalt.err (!%p5141_p10)
}
  0x76   : > { %4924 = dma.hbm_to_vmem [thread:$0]  (!%p5427_p11), %s5423_s16, 1024, %s5425_s19, %s5431_s30, %s5221_s17, %s5221_s17, %s5222_s18  }
  0x77   : > { %257 = sbr.rel (%p5327_p8) target bundleno = 1816 (0x718), region = 44 }
  0x7e   : > { %s5465_s9 = sand.u32 1, %s5207_s22   ;;  %p7383_p4 = scmp.ne.s32.totalorder %s7369_s27, 0 }
  0x7f   : > { %s7226_s14 = sshll.u32 %s5465_s9, 6  ;;  %s260_s7 = scalar_lea.sflag [#allocation3], %s5465_s9 }
  0x80   : > { %s5471_s20 = scalar_lea.vmem [#allocation2], %s7226_s14 }
  0x81   : > { %5190 = dma.done.wait (%p7383_p4), %s260_s7, 1024  }
  0x82   : > { %5192 = vsyncadd (%p7383_p4), %s260_s7, 4294966272  ;;  %p7384_p7 = scmp.eq.s32.totalorder %s5308_s25, 0 }
  0x84   : > { %5194 = dma.done.wait (%p7384_p7), [#allocation6], 9600   ;;  %p7385_p8 = pmov %p7384_p7 }
  0x85   : > { %v7253_v0 = vmov 0.0   ;;  %v5225_v1 = vmov 0   ;;  %vm318_vm0 = vcmask 130048   ;;  %v310_v2 = vld [vmem:[%s5471_s20 + $0x8] sm:$0xff]  ;;  %v312_v3 = vld [vmem:[%s5471_s20 + $0x18] sm:$0xff]  ;;  %v309_v4 = vld [vmem:[%s5471_s20] sm:$0xff] }
  0x86   : > { %5196 = vsyncadd (%p7385_p8), [#allocation6], 4294957696  ;;  %390 = vmatprep.mubr.f32.mxu0 %v7253_v0  ;;  %5000 = vset.pattern.permute.xlu0 %v5225_v1  ;;  %v322_v5 = vand.u32 4294901760, %v310_v2  ;;  %v326_v6 = vand.u32 4294901760, %v312_v3  ;;  %v311_v7 = vld [vmem:[%s5471_s20 + $0x10] sm:$0xff]  ;;  %v324_v8 = vand.u32 4294901760, %v309_v4 }
  0x87   : > { %1792 = vmatprep.mubr.f32.mxu1 %v7253_v0  ;;  %5001 = vset.pattern.permute.xlu1 %v5225_v1  ;;  %s7386_s1 = sld [smem:[#allocation56_spill]]  ;;  %v328_v10 = vand.u32 4294901760, %v311_v7  ;;  %v305_v12 = vld [vmem:[%s7221_s5] sm:$0xf]  ;;  %s7387_s2 = sld [smem:[#allocation57_spill]]  ;;  %vm1241_vm1 = vcmask 31744  }
  0x88   : > { %v4782_v13 = vpack.c.bf16 %v326_v6, %v322_v5  ;;  %v403_v14 = vsub.f32 %v310_v2, %v322_v5  ;;  %v415_v15 = vsub.f32 %v312_v3, %v326_v6  ;;  %v409_v16 = vsub.f32 %v309_v4, %v324_v8  ;;  %315 = vperm.xlu0 %5000, %v305_v12   ;;  %s7305_s30 = smov 33   ;;  %s7307_s12 = smov 34  }
  0x89   : > { %v4784_v17 = vpack.c.bf16 %v328_v10, %v324_v8  ;;  %v421_v18 = vsub.f32 %v311_v7, %v328_v10  ;;  %vm1245_vm2 = vcmask 1043456   ;;  %s7303_s13 = smov 32   ;;  %s7301_s10 = smov 31  }
  0x8a   : > { %4783 = vmatprep.subr.bf16.mxu0 %v4782_v13  ;;  %v404_v20 = vand.u32 4294901760, %v403_v14  ;;  %v416_v21 = vand.u32 4294901760, %v415_v15  ;;  %v410_v22 = vand.u32 4294901760, %v409_v16  ;;  %v4790_v38 = vpack.c.bf16 %v415_v15, %v403_v14  ;;  %s7299_s15 = smov 30   ;;  %s7293_s7 = smov 18  }
  0x8b   : > { %4785 = vmatpush1.bf16.msra.mxu0 %v4784_v17  ;;  %v422_v24 = vand.u32 4294901760, %v421_v18  ;;  %v4792_v39 = vpack.c.bf16 %v421_v18, %v409_v16  ;;  %s7295_s27 = smov 17   ;;  %s7297_s29 = smov 16  }
  0x8c   : > { %v405_v25 = vsub.f32 %v403_v14, %v404_v20  ;;  %v417_v26 = vsub.f32 %v415_v15, %v416_v21  ;;  %v411_v27 = vsub.f32 %v409_v16, %v410_v22  ;;  %v4798_v40 = vpack.c.bf16 %v416_v21, %v404_v20  ;;  %s7249_s17 = smov 15   ;;  %s7227_s18 = smov 14   ;;  %v306_v15 = vld [vmem:[%s7221_s5 + $0x8] sm:$0xf] }
  0x8d   : > { %v302_v9 = vld [vmem:[%s7386_s1] sm:$0xf]  ;;  %v423_v29 = vsub.f32 %v421_v18, %v422_v24  ;;  %v4800_v41 = vpack.c.bf16 %v422_v24, %v410_v22  ;;  %s7229_s16 = smov 2   ;;  %s7231_s19 = smov 1  }
  0x8e   : > { %v320_v11 = vsel %vm318_vm0, %v302_v9, 0  ;;  %v406_v30 = vand.u32 4294901760, %v405_v25  ;;  %v418_v31 = vand.u32 4294901760, %v417_v26  ;;  %v412_v32 = vand.u32 4294901760, %v411_v27  ;;  %v303_v51 = vld [vmem:[%s7387_s2] sm:$0xff]  ;;  %s7233_s14 = smov 127  }
  0x8f   : > { %v5493_v19 = vand.u32 4294901760, %v320_v11  ;;  %v424_v34 = vand.u32 4294901760, %v423_v29  ;;  %v1718_v52 = vsel %vm1241_vm1, %v303_v51, 0  ;;  %s7435_s0 = smov 96   ;;  %s7436_s1 = smov 95  }
  0x90   : > { %v4786_v35 = vpack.c.bf16 %v418_v31, %v406_v30  ;;  %v5525_v57 = vand.u32 4294901760, %v1718_v52  ;;  %s7487_s3 = smov 34   ;;  %s7488_s4 = sshll.u32 %s5465_s9, 6 }
  0x91   : > { %v5496_v23 = vsub.f32 %v320_v11, %v5493_v19  ;;  %v4788_v37 = vpack.c.bf16 %v424_v34, %v412_v32  ;;  %s6406_s11 = scalar_lea.vmem [#allocation8], %s7488_s4  ;;  %s7489_s23 = smov 33  }
  0x92   : > { %4787 = vmatprep.subr.bf16.mxu0 %v4786_v35  ;;  %7388 = vst [vmem:[#allocation20_spill] sm:$0xff] %v5525_v57  ;;  %v5528_v58 = vsub.f32 %v1718_v52, %v5525_v57  ;;  %v5701_v52 = vld [vmem:[#allocation5 + $0x18] sm:$0xff]  ;;  %s7490_s22 = smov 32   ;;  %s7491_s4 = smov 31  }
  0x93   : > { %v5499_v28 = vand.u32 4294901760, %v5496_v23  ;;  %s7492_s26 = smov 30   ;;  %s7493_s24 = smov 18  }
  0x94   : > { %7389 = vst [vmem:[#allocation21_spill] sm:$0xff] %v5528_v58  ;;  %v5531_v59 = vand.u32 4294901760, %v5528_v58  ;;  %s7495_s28 = smov 17   ;;  %s7497_s21 = smov 16  }
  0x95   : > { %v394_v33 = vsub.f32 %v5496_v23, %v5499_v28  ;;  %s5250_s8 = smov [#allocation8]  }
  0x96   : > { %7390 = vst [vmem:[#allocation22_spill] sm:$0xff] %v5531_v59  ;;  %v1796_v63 = vsub.f32 %v5528_v58, %v5531_v59 }
  0x97   : > { %v5503_v36 = vand.u32 4294901760, %v394_v33 }
  0x98   : > { %v5547_v6 = vand.u32 4294901760, %v1796_v63  ;;  %v5723_v63 = vld [vmem:[#allocation5 + $0x20] sm:$0xff] }
  0x99   : > { %396 = vmatmul.mubr.f32.vlgmr.msra.gmra.mrb[0].mxu0 %v5503_v36 }
  0x9a   : > { %4789 = vmatpush1.bf16.msra.mxu0 %v4788_v37  ;;  %486 = vmatprep.mubr.f32.mxu0 %v7253_v0  ;;  %7391 = vst [vmem:[#allocation23_spill] sm:$0xff] %v5547_v6 }
  0x9b   : > { %4791 = vmatprep.subr.bf16.mxu0 %v4790_v38  ;;  %v829_v38 = vlaneseq }
  0xa1   : > { %488 = vmatmul.mubr.f32.vlgmr.msra.gmra.mrb[0].mxu0 %v5493_v19 }
  0xa2   : > { %4793 = vmatpush1.bf16.msra.mxu0 %v4792_v39  ;;  %566 = vmatprep.mubr.f32.mxu0 %v7253_v0 }
  0xa3   : > { %4795 = vmatprep.subr.bf16.mxu0 %v4782_v13 }
  0xa9   : > { %569 = vmatmul.mubr.f32.vlgmr.msra.gmra.mrb[0].mxu0 %v5496_v23 }
  0xaa   : > { %4797 = vmatpush1.bf16.msra.mxu0 %v4784_v17  ;;  %643 = vmatprep.mubr.f32.mxu0 %v7253_v0 }
  0xab   : > { %4799 = vmatprep.subr.bf16.mxu0 %v4798_v40 }
  0xb1   : > { %647 = vmatmul.mubr.f32.vlgmr.msra.gmra.mrb[0].mxu0 %v5499_v28 }
  0xb2   : > { %4801 = vmatpush1.bf16.msra.mxu0 %v4800_v41  ;;  %729 = vmatprep.mubr.f32.mxu0 %v7253_v0  ;;  %v5678_v41 = vand.u32 127, %v829_v38 }
  0xb3   : > { %4803 = vmatprep.subr.bf16.mxu0 %v4782_v13 }
  0xb4   : > { %vm844_vm3 = vcmp.lt.s32.totalorder %v5678_v41, 33  ;;  %vm860_vm4 = vcmp.lt.s32.totalorder %v5678_v41, 32  ;;  %vm831_vm5 = vcmp.lt.s32.totalorder %v5678_v41, 34  ;;  %vm876_vm6 = vcmp.lt.s32.totalorder %v5678_v41, 31 }
  0xb5   : > { %vm892_vm7 = vcmp.lt.s32.totalorder %v5678_v41, 30  ;;  %vm908_vm8 = vcmp.lt.s32.totalorder %v5678_v41, 18  ;;  %vm924_vm9 = vcmp.lt.s32.totalorder %v5678_v41, 17  ;;  %vm940_vm10 = vcmp.lt.s32.totalorder %v5678_v41, 16 }
  0xb6   : > { %vm956_vm11 = vcmp.lt.s32.totalorder %v5678_v41, 15  ;;  %vm7322_vm12 = vcmp.lt.s32.totalorder %v5678_v41, 14  ;;  %vm7324_vm13 = vcmp.lt.s32.totalorder %v5678_v41, 2  ;;  %vm7260_vm14 = vcmp.lt.s32.totalorder %v5678_v41, 1 }
  0xb7   : > { %vm7261_vm15 = vcmp.lt.s32.totalorder %v5678_v41, 127  ;;  %vm7323_vm0 = vcmp.lt.s32.totalorder %v5678_v41, 126 }
  0xb9   : > { %731 = vmatmul.mubr.f32.vlgmr.msra.gmra.mrb[0].mxu0 %v5493_v19 }
  0xba   : > { %4805 = vmatpush1.bf16.msra.mxu0 %v4784_v17  ;;  %805 = vmatprep.mubr.f32.mxu0 %v7253_v0 }
  0xc1   : > { %807 = vmatmul.mubr.f32.vlgmr.msra.gmra.mrb[0].mxu0 %v5493_v19 }
  0xc2   : > { %1318 = vmatprep.mubr.f32.mxu0 %v7253_v0 }
 0x107   : > { %v5517_v42 = vpop.permute.xlu0 %315 }
 0x194   : > { %v808_v43 = vpop.f32.mrb[0].mxu0 }
 0x195   : > { %v4830_v44 = vadd.f32 %v808_v43, %v5517_v42  ;;  %v810_v45 = vpop.f32.mrb[1].mxu0 }
 0x196   : > { %v4831_v46 = vadd.f32 %v810_v45, %v5517_v42 }
 0x197   : > { %v813_v47 = vsub.f32 0.0, %v4830_v44 }
 0x198   : > { %v814_v48 = vsub.f32 0.0, %v4831_v46 }
 0x199   : > { %v815_v49 = vmul.f32 1.442695, %v813_v47 }
 0x19a   : > { %v817_v50 = vmul.f32 1.442695, %v814_v48  ;;  %v5693_v48 = vld [vmem:[#allocation5 + $0x10] sm:$0xff] }
 0x19b   : > { %5027 = vpow2.f32 %v815_v49 }
 0x19c   : > { %5029 = vpow2.f32 %v817_v50 }
 0x1a5   : > { %v5028_v53 = vpop.eup %5027 }
 0x1a6   : > { %v5030_v54 = vpop.eup %5029  ;;  %v819_v55 = vadd.f32 1.0, %v5028_v53 }
 0x1a7   : > { %v820_v56 = vadd.f32 1.0, %v5030_v54 }
 0x1a8   : > { %5031 = vrcp.f32 %v819_v55  ;;  %v5713_v55 = vcombine.high %v5693_v48, %v5693_v48 }
 0x1a9   : > { %5033 = vrcp.f32 %v820_v56 }
 0x1b2   : > { %v5032_v60 = vpop.eup %5031 }
 0x1b3   : > { %v5034_v61 = vpop.eup %5033  ;;  %v5533_v62 = vmul.f32 %v5032_v60, %v4830_v44  ;;  %v5682_v44 = vld [vmem:[#allocation5 + $0x8] sm:$0xff] }
 0x1b4   : > { %v5537_v1 = vmul.f32 %v5034_v61, %v4831_v46  ;;  %v5687_v46 = vld [vmem:[#allocation5] sm:$0xff]  ;;  %v5691_v47 = vcombine.high %v5682_v44, %v5682_v44  ;;  %v5720_v61 = vcombine.high %v5701_v52, %v5701_v52 }
 0x1b5   : > { %840 = vrot.lane.b32.xlu1 %v5533_v62, %s7305_s30  ;;  %825 = vrot.lane.b32.xlu0 %v5533_v62, %s7307_s12  ;;  %v1721_v2 = vsel %vm1245_vm2, %v5533_v62, 0  ;;  %v5709_v54 = vcombine.high %v5687_v46, %v5687_v46 }
 0x1b6   : > { %v1724_v3 = vsel %vm1245_vm2, %v5537_v1, 0  ;;  %v1728_v4 = vand.u32 4294901760, %v1721_v2 }
 0x1b7   : > { %v1726_v5 = vand.u32 4294901760, %v1724_v3 }
 0x1b8   : > { %v1811_v7 = vsub.f32 %v1721_v2, %v1728_v4  ;;  %v5725_v2 = vld [vmem:[#allocation5 + $0x28] sm:$0xff] }
 0x1b9   : > { %1727 = vmatprep.subr.mxu1 %v1726_v5  ;;  %856 = vrot.lane.b32.xlu1 %v5533_v62, %s7303_s13  ;;  %v1805_v8 = vsub.f32 %v1724_v3, %v1726_v5 }
 0x1ba   : > { %842 = vrot.lane.b32.xlu0 %v5537_v1, %s7305_s30  ;;  %1729 = vmatpush1.msra.mxu1 %v1728_v4  ;;  %v1812_v9 = vand.u32 4294901760, %v1811_v7 }
 0x1bb   : > { %1798 = vmatmul.mubr.f32.vlgmr.msra.gmra.mrb[0].mxu1 %v5547_v6  ;;  %v1806_v10 = vand.u32 4294901760, %v1805_v8 }
 0x1bc   : > { %v1813_v11 = vsub.f32 %v1811_v7, %v1812_v9  ;;  %1878 = vmatprep.mubr.f32.mxu1 %v7253_v0 }
 0x1bd   : > { %872 = vrot.lane.b32.xlu1 %v5533_v62, %s7301_s10  ;;  %v1807_v12 = vsub.f32 %v1805_v8, %v1806_v10 }
 0x1be   : > { %858 = vrot.lane.b32.xlu0 %v5537_v1, %s7303_s13  ;;  %v1814_v14 = vand.u32 4294901760, %v1813_v11 }
 0x1bf   : > { %v1808_v13 = vand.u32 4294901760, %v1807_v12 }
 0x1c1   : > { %888 = vrot.lane.b32.xlu1 %v5533_v62, %s7299_s15  ;;  %1809 = vmatprep.subr.mxu1 %v1808_v13 }
 0x1c2   : > { %874 = vrot.lane.b32.xlu0 %v5537_v1, %s7301_s10  ;;  %1815 = vmatpush1.msra.mxu1 %v1814_v14  ;;  %v5745_v14 = vcombine.high %v5723_v63, %v5723_v63 }
 0x1c3   : > { %1880 = vmatmul.mubr.f32.vlgmr.msra.gmra.mrb[0].mxu1 %v5525_v57  ;;  %1888 = vmatprep.subr.mxu1 %v1805_v8 }
 0x1c4   : > { %1891 = vmatpush1.msra.mxu1 %v1811_v7  ;;  %1954 = vmatprep.mubr.f32.mxu1 %v7253_v0 }
 0x1c5   : > { %904 = vrot.lane.b32.xlu1 %v5533_v62, %s7293_s7  ;;  %1964 = vmatprep.subr.mxu1 %v1726_v5 }
 0x1c6   : > { %890 = vrot.lane.b32.xlu0 %v5537_v1, %s7299_s15 }
 0x1c9   : > { %920 = vrot.lane.b32.xlu1 %v5533_v62, %s7295_s27 }
 0x1ca   : > { %906 = vrot.lane.b32.xlu0 %v5537_v1, %s7293_s7 }
 0x1cb   : > { %1957 = vmatmul.mubr.f32.vlgmr.msra.gmra.mrb[0].mxu1 %v5528_v58 }
 0x1cc   : > { %1966 = vmatpush1.msra.mxu1 %v1728_v4  ;;  %2029 = vmatprep.mubr.f32.mxu1 %v7253_v0 }
 0x1cd   : > { %2042 = vmatprep.subr.mxu1 %v1806_v10  ;;  %936 = vrot.lane.b32.xlu1 %v5533_v62, %s7297_s29 }
 0x1ce   : > { %922 = vrot.lane.b32.xlu0 %v5537_v1, %s7295_s27 }
 0x1d1   : > { %952 = vrot.lane.b32.xlu1 %v5533_v62, %s7249_s17 }
 0x1d2   : > { %938 = vrot.lane.b32.xlu0 %v5537_v1, %s7297_s29 }
 0x1d3   : > { %2033 = vmatmul.mubr.f32.vlgmr.msra.gmra.mrb[0].mxu1 %v5531_v59 }
 0x1d4   : > { %2046 = vmatpush1.msra.mxu1 %v1812_v9  ;;  %2109 = vmatprep.mubr.f32.mxu1 %v7253_v0 }
 0x1d5   : > { %2118 = vmatprep.subr.mxu1 %v1726_v5  ;;  %968 = vrot.lane.b32.xlu1 %v5533_v62, %s7227_s18 }
 0x1d6   : > { %954 = vrot.lane.b32.xlu0 %v5537_v1, %s7249_s17  ;;  %s7422_s17 = smov 15  }
 0x1d9   : > { %984 = vrot.lane.b32.xlu1 %v5533_v62, %s7229_s16 }
 0x1da   : > { %970 = vrot.lane.b32.xlu0 %v5537_v1, %s7227_s18  ;;  %s7235_s18 = smov 126  }
 0x1db   : > { %2111 = vmatmul.mubr.f32.vlgmr.msra.gmra.mrb[0].mxu1 %v5525_v57 }
 0x1dc   : > { %2120 = vmatpush1.msra.mxu1 %v1728_v4  ;;  %2183 = vmatprep.mubr.f32.mxu1 %v7253_v0 }
 0x1dd   : > { %1000 = vrot.lane.b32.xlu1 %v5533_v62, %s7231_s19 }
 0x1de   : > { %986 = vrot.lane.b32.xlu0 %v5537_v1, %s7229_s16  ;;  %s7237_s16 = smov 114  }
 0x1e1   : > { %1025 = vrot.lane.b32.xlu1 %v5533_v62, %s7233_s14 }
 0x1e2   : > { %1002 = vrot.lane.b32.xlu0 %v5537_v1, %s7231_s19  ;;  %s7239_s19 = smov 113  }
 0x1e3   : > { %2185 = vmatmul.mubr.f32.vlgmr.msra.gmra.mrb[0].mxu1 %v5525_v57  ;;  %v5864_v57 = vld [vmem:[#allocation5 + $0x60] sm:$0xff] }
 0x1e4   : > { %3462 = vmatprep.mubr.f32.mxu1 %v7253_v0 }
 0x1e5   : > { %827 = vrot.lane.b32.xlu1 %v5537_v1, %s7307_s12 }
 0x1e6   : > { %1027 = vrot.lane.b32.xlu0 %v5537_v1, %s7233_s14  ;;  %s7241_s14 = smov 112  }
 0x1e9   : > { %1041 = vrot.lane.b32.xlu1 %v5533_v62, %s7235_s18 }
 0x1ea   : > { %1043 = vrot.lane.b32.xlu0 %v5537_v1, %s7235_s18  ;;  %s7243_s18 = smov 111  }
 0x1ed   : > { %1057 = vrot.lane.b32.xlu1 %v5533_v62, %s7237_s16 }
 0x1ee   : > { %1059 = vrot.lane.b32.xlu0 %v5537_v1, %s7237_s16  ;;  %s7245_s16 = smov 110  }
 0x1f1   : > { %1073 = vrot.lane.b32.xlu1 %v5533_v62, %s7239_s19 }
 0x1f2   : > { %1075 = vrot.lane.b32.xlu0 %v5537_v1, %s7239_s19  ;;  %s7247_s19 = smov 98  }
 0x1f5   : > { %1089 = vrot.lane.b32.xlu1 %v5533_v62, %s7241_s14 }
 0x1f6   : > { %1091 = vrot.lane.b32.xlu0 %v5537_v1, %s7241_s14  ;;  %s7251_s14 = smov 97  }
 0x1f9   : > { %1105 = vrot.lane.b32.xlu1 %v5533_v62, %s7243_s18 }
 0x1fa   : > { %1107 = vrot.lane.b32.xlu0 %v5537_v1, %s7243_s18  ;;  %s7313_s18 = smov 96  }
 0x1fd   : > { %1121 = vrot.lane.b32.xlu1 %v5533_v62, %s7245_s16 }
 0x1fe   : > { %1123 = vrot.lane.b32.xlu0 %v5537_v1, %s7245_s16  ;;  %s7311_s16 = smov 95  }
 0x201   : > { %1137 = vrot.lane.b32.xlu1 %v5533_v62, %s7247_s19 }
 0x202   : > { %1139 = vrot.lane.b32.xlu0 %v5537_v1, %s7247_s19  ;;  %s7423_s19 = smov 14  }
 0x205   : > { %1153 = vrot.lane.b32.xlu1 %v5533_v62, %s7251_s14 }
 0x206   : > { %1155 = vrot.lane.b32.xlu0 %v5537_v1, %s7251_s14  ;;  %s7309_s14 = smov 94  }
 0x209   : > { %1169 = vrot.lane.b32.xlu1 %v5533_v62, %s7313_s18 }
 0x20a   : > { %1171 = vrot.lane.b32.xlu0 %v5537_v1, %s7313_s18  ;;  %s7434_s18 = smov 97  }
 0x20d   : > { %1185 = vrot.lane.b32.xlu1 %v5533_v62, %s7311_s16 }
 0x20e   : > { %1187 = vrot.lane.b32.xlu0 %v5537_v1, %s7311_s16  ;;  %s7433_s16 = smov 98  }
 0x211   : > { %1219 = vperm.xlu1 %5001, %v306_v15   ;;  %v5750_v15 = vcombine.high %v5725_v2, %v5725_v2 }
 0x212   : > { %1201 = vrot.lane.b32.xlu0 %v5533_v62, %s7309_s14 }
 0x215   : > { %1203 = vrot.lane.b32.xlu1 %v5537_v1, %s7309_s14  ;;  %s7432_s14 = smov 110  }
 0x227   : > { %v841_v16 = vpop.permute.xlu1 %840  ;;  %v826_v17 = vpop.permute.xlu0 %825 }
 0x22b   : > { %v857_v18 = vpop.permute.xlu1 %856 }
 0x22c   : > { %v843_v20 = vpop.permute.xlu0 %842 }
 0x22d   : > { %v845_v50 = vsel %vm844_vm3, %v841_v16, %v843_v20  ;;  %v846_v51 = vsel %vm844_vm3, %v843_v20, %v841_v16  ;;  %v5757_v20 = vld [vmem:[#allocation5 + $0x38] sm:$0xff] }
 0x22e   : > { %v852_v56 = vmul.f32 %v5682_v44, %v846_v51  ;;  %v853_v60 = vmul.f32 %v5691_v47, %v845_v50 }
 0x22f   : > { %v873_v21 = vpop.permute.xlu1 %872 }
 0x230   : > { %v859_v22 = vpop.permute.xlu0 %858 }
 0x231   : > { %v861_v4 = vsel %vm860_vm4, %v857_v18, %v859_v22  ;;  %v862_v5 = vsel %vm860_vm4, %v859_v22, %v857_v18  ;;  %v5755_v18 = vld [vmem:[#allocation5 + $0x30] sm:$0xff] }
 0x232   : > { %v868_v16 = vmul.f32 %v5693_v48, %v862_v5 }
 0x233   : > { %v5656_v24 = vpop.permute.xlu1 %888 }
 0x234   : > { %v875_v25 = vpop.permute.xlu0 %874 }
 0x235   : > { %v877_v10 = vsel %vm876_vm6, %v873_v21, %v875_v25  ;;  %v878_v11 = vsel %vm876_vm6, %v875_v25, %v873_v21 }
 0x236   : > { %v884_v38 = vmul.f32 %v5701_v52, %v878_v11  ;;  %v885_v50 = vmul.f32 %v5720_v61, %v877_v10  ;;  %v5789_v11 = vld [vmem:[#allocation5 + $0x40] sm:$0xff] }
 0x237   : > { %v5658_v26 = vpop.permute.xlu1 %904 }
 0x238   : > { %v891_v27 = vpop.permute.xlu0 %890 }
 0x239   : > { %v893_v51 = vsel %vm892_vm7, %v5656_v24, %v891_v27 }
 0x23a   : > { %v901_v10 = vmul.f32 %v5745_v14, %v893_v51 }
 0x23b   : > { %v5660_v29 = vpop.permute.xlu1 %920 }
 0x23c   : > { %v907_v30 = vpop.permute.xlu0 %906 }
 0x23f   : > { %v5662_v31 = vpop.permute.xlu1 %936 }
 0x240   : > { %v5664_v32 = vpop.permute.xlu0 %922 }
 0x243   : > { %v5666_v33 = vpop.permute.xlu1 %952 }
 0x244   : > { %v5668_v34 = vpop.permute.xlu0 %938 }
 0x247   : > { %v5670_v35 = vpop.permute.xlu1 %968 }
 0x248   : > { %v5672_v37 = vpop.permute.xlu0 %954 }
 0x249   : > { %v957_v0 = vsel %vm956_vm11, %v5666_v33, %v5672_v37 }
 0x24b   : > { %v5674_v39 = vpop.permute.xlu1 %984 }
 0x24c   : > { %v5676_v40 = vpop.permute.xlu0 %970 }
 0x24f   : > { %v5680_v43 = vpop.permute.xlu1 %1000 }
 0x250   : > { %v5684_v45 = vpop.permute.xlu0 %986 }
 0x253   : > { %v5695_v49 = vpop.permute.xlu1 %1025 }
 0x254   : > { %v5703_v53 = vpop.permute.xlu0 %1002 }
 0x257   : > { %v828_v3 = vpop.permute.xlu1 %827 }
 0x258   : > { %v832_v7 = vsel %vm831_vm5, %v826_v17, %v828_v3  ;;  %v833_v8 = vsel %vm831_vm5, %v828_v3, %v826_v17  ;;  %v5735_v9 = vpop.permute.xlu0 %1027  ;;  %v869_v17 = vmul.f32 %v5713_v55, %v861_v4  ;;  %v894_v3 = vsel %vm892_vm7, %v891_v27, %v5656_v24 }
 0x259   : > { %v838_v12 = vmul.f32 %v5687_v46, %v833_v8  ;;  %v839_v13 = vmul.f32 %v5709_v54, %v832_v7  ;;  %v5779_v8 = vcombine.high %v5755_v18, %v5755_v18  ;;  %v5784_v24 = vcombine.high %v5757_v20, %v5757_v20 }
 0x25a   : > { %v900_v27 = vmul.f32 %v5723_v63, %v894_v3 }
 0x25b   : > { %v854_v21 = vadd.f32 %v852_v56, %v838_v12  ;;  %v855_v22 = vadd.f32 %v853_v60, %v839_v13  ;;  %v5759_v25 = vpop.permute.xlu1 %1041  ;;  %v909_v56 = vsel %vm908_vm8, %v5658_v26, %v907_v30  ;;  %v910_v60 = vsel %vm908_vm8, %v907_v30, %v5658_v26  ;;  %v5791_v26 = vld [vmem:[#allocation5 + $0x48] sm:$0xff] }
 0x25c   : > { %v5769_v4 = vpop.permute.xlu0 %1043 }
 0x25d   : > { %v870_v5 = vadd.f32 %v868_v16, %v854_v21  ;;  %v871_v7 = vadd.f32 %v869_v17, %v855_v22  ;;  %v916_v16 = vmul.f32 %v5725_v2, %v910_v60  ;;  %v917_v17 = vmul.f32 %v5750_v15, %v909_v56 }
 0x25e   : > { %v925_v21 = vsel %vm924_vm9, %v5660_v29, %v5664_v32  ;;  %v926_v22 = vsel %vm924_vm9, %v5664_v32, %v5660_v29  ;;  %v5817_v60 = vcombine.high %v5789_v11, %v5789_v11  ;;  %v5822_v29 = vcombine.high %v5791_v26, %v5791_v26 }
 0x25f   : > { %v886_v30 = vadd.f32 %v884_v38, %v870_v5  ;;  %v887_v12 = vadd.f32 %v885_v50, %v871_v7  ;;  %v5793_v13 = vpop.permute.xlu1 %1057  ;;  %v941_v38 = vsel %vm940_vm10, %v5662_v31, %v5668_v34  ;;  %v942_v50 = vsel %vm940_vm10, %v5668_v34, %v5662_v31  ;;  %v5827_v7 = vld [vmem:[#allocation5 + $0x50] sm:$0xff]  ;;  %v5829_v31 = vld [vmem:[#allocation5 + $0x58] sm:$0xff] }
 0x260   : > { %v5805_v51 = vpop.permute.xlu0 %1059  ;;  %v932_v32 = vmul.f32 %v5755_v18, %v926_v22  ;;  %v933_v5 = vmul.f32 %v5779_v8, %v925_v21  ;;  %v958_v21 = vsel %vm956_vm11, %v5672_v37, %v5666_v33  ;;  %v5860_v33 = vcombine.high %v5829_v31, %v5829_v31 }
 0x261   : > { %v902_v3 = vadd.f32 %v900_v27, %v886_v30  ;;  %v903_v56 = vadd.f32 %v901_v10, %v887_v12  ;;  %v948_v30 = vmul.f32 %v5757_v20, %v942_v50  ;;  %v949_v12 = vmul.f32 %v5784_v24, %v941_v38 }
 0x262   : > { %v964_v37 = vmul.f32 %v5789_v11, %v958_v21  ;;  %v5886_v21 = vld [vmem:[#allocation5 + $0x68] sm:$0xff] }
 0x263   : > { %v918_v34 = vadd.f32 %v916_v16, %v902_v3  ;;  %v919_v27 = vadd.f32 %v917_v17, %v903_v56  ;;  %v5831_v10 = vpop.permute.xlu1 %1073  ;;  %v973_v16 = vsel %vm7322_vm12, %v5670_v35, %v5676_v40  ;;  %v974_v17 = vsel %vm7322_vm12, %v5676_v40, %v5670_v35 }
 0x264   : > { %v5843_v22 = vpop.permute.xlu0 %1075  ;;  %v5855_v3 = vcombine.high %v5827_v7, %v5827_v7  ;;  %v965_v56 = vmul.f32 %v5817_v60, %v957_v0  ;;  %v980_v35 = vmul.f32 %v5791_v26, %v974_v17  ;;  %v981_v40 = vmul.f32 %v5822_v29, %v973_v16 }
 0x265   : > { %v934_v38 = vadd.f32 %v932_v32, %v918_v34  ;;  %v935_v50 = vadd.f32 %v933_v5, %v919_v27  ;;  %v989_v32 = vsel %vm7324_vm13, %v5674_v39, %v5684_v45  ;;  %v990_v5 = vsel %vm7324_vm13, %v5684_v45, %v5674_v39 }
 0x266   : > { %v1005_v0 = vsel %vm7260_vm14, %v5680_v43, %v5703_v53  ;;  %v1006_v27 = vsel %vm7260_vm14, %v5703_v53, %v5680_v43  ;;  %v5890_v16 = vcombine.high %v5864_v57, %v5864_v57  ;;  %v996_v45 = vmul.f32 %v5827_v7, %v990_v5  ;;  %v5902_v43 = vld [vmem:[#allocation5 + $0x70] sm:$0xff]  ;;  %v5904_v53 = vld [vmem:[#allocation5 + $0x78] sm:$0xff] }
 0x267   : > { %v950_v59 = vadd.f32 %v948_v30, %v934_v38  ;;  %v951_v58 = vadd.f32 %v949_v12, %v935_v50  ;;  %v5876_v34 = vpop.permute.xlu1 %1089  ;;  %v997_v17 = vmul.f32 %v5855_v3, %v989_v32  ;;  %v1012_v6 = vmul.f32 %v5829_v31, %v1006_v27  ;;  %7392 = vst [vmem:[#allocation24_spill] sm:$0xff] %v5902_v43 }
 0x268   : > { %v1092_v39 = vpop.permute.xlu0 %1091  ;;  %7393 = vst [vmem:[#allocation25_spill] sm:$0xff] %v5904_v53  ;;  %v1022_v32 = vmul.f32 %v5890_v16, %v5537_v1  ;;  %v1021_v5 = vmul.f32 %v5864_v57, %v5533_v62  ;;  %vm7262_vm14 = vcmp.lt.s32.totalorder %v5678_v41, 114  ;;  %v1046_v62 = vsel %vm7323_vm0, %v5759_v25, %v5769_v4 }
 0x269   : > { %v966_v30 = vadd.f32 %v964_v37, %v950_v59  ;;  %v967_v12 = vadd.f32 %v965_v56, %v951_v58  ;;  %v1013_v59 = vmul.f32 %v5860_v33, %v1005_v0  ;;  %v5899_v58 = vcombine.high %v5886_v21, %v5886_v21 }
 0x26b   : > { %v982_v38 = vadd.f32 %v980_v35, %v966_v30  ;;  %v983_v50 = vadd.f32 %v981_v40, %v967_v12  ;;  %v1030_v35 = vsel %vm7261_vm15, %v5695_v49, %v5735_v9  ;;  %v1031_v40 = vsel %vm7261_vm15, %v5735_v9, %v5695_v49  ;;  %v1106_v0 = vpop.permute.xlu1 %1105 }
 0x26c   : > { %v5921_v12 = vcombine.high %v5902_v43, %v5902_v43  ;;  %v1037_v49 = vmul.f32 %v5886_v21, %v1030_v35  ;;  %v1038_v1 = vmul.f32 %v5899_v58, %v1031_v40  ;;  %v1108_v9 = vpop.permute.xlu0 %1107  ;;  %vm7263_vm15 = vcmp.lt.s32.totalorder %v5678_v41, 113 }
 0x26d   : > { %v998_v37 = vadd.f32 %v996_v45, %v982_v38  ;;  %v999_v56 = vadd.f32 %v997_v17, %v983_v50  ;;  %v5925_v45 = vcombine.high %v5904_v53, %v5904_v53  ;;  %v1062_v50 = vsel %vm7262_vm14, %v5793_v13, %v5805_v51 }
 0x26e   : > { %7394 = vst [vmem:[#allocation26_spill] sm:$0xff] %v5921_v12  ;;  %v1069_v40 = vmul.f32 %v5904_v53, %v1062_v50 }
 0x26f   : > { %v1014_v27 = vadd.f32 %v1012_v6, %v998_v37  ;;  %v1015_v30 = vadd.f32 %v1013_v59, %v999_v56  ;;  %7395 = vst [vmem:[#allocation27_spill] sm:$0xff] %v5925_v45  ;;  %v1047_v6 = vsel %vm7323_vm0, %v5769_v4, %v5759_v25  ;;  %v1063_v59 = vsel %vm7262_vm14, %v5805_v51, %v5793_v13  ;;  %v5945_v37 = vld [vmem:[#allocation5 + $0x80] sm:$0xff] }
 0x270   : > { %7396 = vst [vmem:[#allocation28_spill] sm:$0xff] %v5945_v37  ;;  %v1053_v25 = vmul.f32 %v5902_v43, %v1046_v62  ;;  %v1054_v4 = vmul.f32 %v5921_v12, %v1047_v6  ;;  %vm7264_vm14 = vcmp.lt.s32.totalorder %v5678_v41, 112  ;;  %v1124_v62 = vpop.permute.xlu0 %1123 }
 0x271   : > { %v1024_v17 = vadd.f32 %v1022_v32, %v1015_v30  ;;  %v1023_v38 = vadd.f32 %v1021_v5, %v1014_v27  ;;  %v1070_v32 = vmul.f32 %v5925_v45, %v1063_v59  ;;  %v5954_v5 = vcombine.high %v5945_v37, %v5945_v37  ;;  %v1122_v27 = vpop.permute.xlu1 %1121 }
 0x272   : > { %v1078_v30 = vsel %vm7263_vm15, %v5831_v10, %v5843_v22 }
 0x273   : > { %v1039_v56 = vadd.f32 %v1037_v49, %v1023_v38  ;;  %v1040_v35 = vadd.f32 %v1038_v1, %v1024_v17  ;;  %7397 = vst [vmem:[#allocation29_spill] sm:$0xff] %v5954_v5  ;;  %v1079_v49 = vsel %vm7263_vm15, %v5843_v22, %v5831_v10  ;;  %v5964_v1 = vld [vmem:[#allocation5 + $0x88] sm:$0xff]  ;;  %v1085_v38 = vmul.f32 %v5945_v37, %v1078_v30  ;;  %v5979_v22 = vld [vmem:[#allocation5 + $0x90] sm:$0xff] }
 0x274   : > { %7398 = vst [vmem:[#allocation30_spill] sm:$0xff] %v5964_v1  ;;  %v1086_v50 = vmul.f32 %v5954_v5, %v1079_v49  ;;  %v5971_v59 = vcombine.high %v5964_v1, %v5964_v1  ;;  %v1095_v10 = vsel %vm7264_vm14, %v1092_v39, %v5876_v34  ;;  %7400 = vst [vmem:[#allocation32_spill] sm:$0xff] %v5979_v22  ;;  %vm7265_vm15 = vcmp.lt.s32.totalorder %v5678_v41, 111 }
 0x275   : > { %v1055_v13 = vadd.f32 %v1053_v25, %v1039_v56  ;;  %v1056_v51 = vadd.f32 %v1054_v4, %v1040_v35  ;;  %v1094_v56 = vsel %vm7264_vm14, %v5876_v34, %v1092_v39  ;;  %v1138_v4 = vpop.permute.xlu1 %1137  ;;  %v1110_v30 = vsel %vm7265_vm15, %v1106_v0, %v1108_v9  ;;  %v5992_v39 = vld [vmem:[#allocation5 + $0x98] sm:$0xff] }
 0x276   : > { %7399 = vst [vmem:[#allocation31_spill] sm:$0xff] %v5971_v59  ;;  %v1111_v34 = vsel %vm7265_vm15, %v1108_v9, %v1106_v0  ;;  %7402 = vst [vmem:[#allocation34_spill] sm:$0xff] %v5992_v39  ;;  %vm7267_vm14 = vcmp.lt.s32.totalorder %v5678_v41, 110  ;;  %v6005_v9 = vld [vmem:[#allocation5 + $0xa0] sm:$0xff]  ;;  %vm7270_vm15 = vcmp.lt.s32.totalorder %v5678_v41, 98 }
 0x277   : > { %v1071_v6 = vadd.f32 %v1069_v40, %v1055_v13  ;;  %v1072_v17 = vadd.f32 %v1070_v32, %v1056_v51  ;;  %v1101_v40 = vmul.f32 %v5964_v1, %v1094_v56  ;;  %v1102_v32 = vmul.f32 %v5971_v59, %v1095_v10  ;;  %v1140_v51 = vpop.permute.xlu0 %1139  ;;  %7404 = vst [vmem:[#allocation36_spill] sm:$0xff] %v6005_v9 }
 0x278   : > { %v5986_v13 = vcombine.high %v5979_v22, %v5979_v22  ;;  %v1126_v10 = vsel %vm7267_vm14, %v1122_v27, %v1124_v62  ;;  %v1127_v0 = vsel %vm7267_vm14, %v1124_v62, %v1122_v27  ;;  %v1143_v27 = vsel %vm7270_vm15, %v1140_v51, %v1138_v4  ;;  %v6018_v62 = vld [vmem:[#allocation5 + $0xa8] sm:$0xff] }
 0x279   : > { %v1087_v35 = vadd.f32 %v1085_v38, %v1071_v6  ;;  %v1088_v25 = vadd.f32 %v1086_v50, %v1072_v17  ;;  %v1117_v17 = vmul.f32 %v5979_v22, %v1110_v30  ;;  %v5999_v50 = vcombine.high %v5992_v39, %v5992_v39  ;;  %v1154_v56 = vpop.permute.xlu1 %1153  ;;  %7406 = vst [vmem:[#allocation38_spill] sm:$0xff] %v6018_v62 }
 0x27a   : > { %7401 = vst [vmem:[#allocation33_spill] sm:$0xff] %v5986_v13  ;;  %v1118_v38 = vmul.f32 %v5986_v13, %v1111_v34  ;;  %v6012_v34 = vcombine.high %v6005_v9, %v6005_v9  ;;  %v1142_v13 = vsel %vm7270_vm15, %v1138_v4, %v1140_v51  ;;  %vm7272_vm14 = vcmp.lt.s32.totalorder %v5678_v41, 97  ;;  %v6031_v51 = vld [vmem:[#allocation5 + $0xb0] sm:$0xff] }
 0x27b   : > { %v1103_v49 = vadd.f32 %v1101_v40, %v1087_v35  ;;  %v1104_v6 = vadd.f32 %v1102_v32, %v1088_v25  ;;  %7403 = vst [vmem:[#allocation35_spill] sm:$0xff] %v5999_v50  ;;  %v1156_v40 = vpop.permute.xlu0 %1155  ;;  %v1133_v32 = vmul.f32 %v5992_v39, %v1126_v10  ;;  %v1134_v30 = vmul.f32 %v5999_v50, %v1127_v0 }
 0x27c   : > { %7405 = vst [vmem:[#allocation37_spill] sm:$0xff] %v6012_v34  ;;  %v1150_v10 = vmul.f32 %v6012_v34, %v1143_v27  ;;  %v6025_v0 = vcombine.high %v6018_v62, %v6018_v62  ;;  %v1158_v39 = vsel %vm7272_vm14, %v1154_v56, %v1156_v40  ;;  %v1159_v4 = vsel %vm7272_vm14, %v1156_v40, %v1154_v56  ;;  %v6044_v40 = vld [vmem:[#allocation5 + $0xb8] sm:$0xff] }
 0x27d   : > { %v1119_v35 = vadd.f32 %v1117_v17, %v1103_v49  ;;  %v1120_v25 = vadd.f32 %v1118_v38, %v1104_v6  ;;  %v1170_v17 = vpop.permute.xlu1 %1169  ;;  %v1149_v38 = vmul.f32 %v6005_v9, %v1142_v13  ;;  %7408 = vst [vmem:[#allocation40_spill] sm:$0xff] %v6031_v51  ;;  %vm7275_vm15 = vcmp.lt.s32.totalorder %v5678_v41, 96  ;;  %7410 = vst [vmem:[#allocation42_spill] sm:$0xff] %v6044_v40 }
 0x27e   : > { %7407 = vst [vmem:[#allocation39_spill] sm:$0xff] %v6025_v0  ;;  %v1165_v13 = vmul.f32 %v6018_v62, %v1158_v39  ;;  %vm1189_vm14 = vcmp.lt.s32.totalorder %v5678_v41, 95 }
 0x27f   : > { %v1135_v49 = vadd.f32 %v1133_v32, %v1119_v35  ;;  %v1136_v6 = vadd.f32 %v1134_v30, %v1120_v25  ;;  %v1172_v50 = vpop.permute.xlu0 %1171  ;;  %v1166_v32 = vmul.f32 %v6025_v0, %v1159_v4  ;;  %v6038_v30 = vcombine.high %v6031_v51, %v6031_v51 }
 0x280   : > { %v1174_v34 = vsel %vm7275_vm15, %v1170_v17, %v1172_v50  ;;  %v1175_v56 = vsel %vm7275_vm15, %v1172_v50, %v1170_v17  ;;  %v6053_v0 = vcombine.high %v6044_v40, %v6044_v40  ;;  %vm1205_vm15 = vcmp.lt.s32.totalorder %v5678_v41, 94 }
 0x281   : > { %v1151_v35 = vadd.f32 %v1149_v38, %v1135_v49  ;;  %v1152_v25 = vadd.f32 %v1150_v10, %v1136_v6  ;;  %7409 = vst [vmem:[#allocation41_spill] sm:$0xff] %v6038_v30  ;;  %v1186_v27 = vpop.permute.xlu1 %1185  ;;  %v6047_v38 = vld [vmem:[#allocation5 + $0xc0] sm:$0xff]  ;;  %v1181_v10 = vmul.f32 %v6031_v51, %v1174_v34  ;;  %v1182_v4 = vmul.f32 %v6038_v30, %v1175_v56 }
 0x282   : > { %7411 = vst [vmem:[#allocation43_spill] sm:$0xff] %v6047_v38  ;;  %7412 = vst [vmem:[#allocation44_spill] sm:$0xff] %v6053_v0  ;;  %v6064_v34 = vcombine.high %v6047_v38, %v6047_v38 }
 0x283   : > { %v1167_v49 = vadd.f32 %v1165_v13, %v1151_v35  ;;  %v1168_v6 = vadd.f32 %v1166_v32, %v1152_v25  ;;  %v1188_v39 = vpop.permute.xlu0 %1187 }
 0x284   : > { %v1190_v50 = vsel %vm1189_vm14, %v1186_v27, %v1188_v39  ;;  %v1191_v17 = vsel %vm1189_vm14, %v1188_v39, %v1186_v27  ;;  %7414 = vst [vmem:[#allocation46_spill] sm:$0xff] %v6064_v34 }
 0x285   : > { %v1183_v35 = vadd.f32 %v1181_v10, %v1167_v49  ;;  %v1184_v25 = vadd.f32 %v1182_v4, %v1168_v6  ;;  %v1197_v13 = vmul.f32 %v6044_v40, %v1190_v50  ;;  %v1198_v32 = vmul.f32 %v6053_v0, %v1191_v17 }
 0x287   : > { %v1202_v56 = vpop.permute.xlu0 %1201  ;;  %v1199_v49 = vadd.f32 %v1197_v13, %v1183_v35  ;;  %v1200_v6 = vadd.f32 %v1198_v32, %v1184_v25 }
 0x290   : > { %v6055_v62 = vpop.permute.xlu1 %1219 }
 0x291   : > { %7413 = vst [vmem:[#allocation45_spill] sm:$0xff] %v6055_v62 }
 0x294   : > { %v1204_v30 = vpop.permute.xlu1 %1203 }
 0x295   : > { %v1206_v51 = vsel %vm1205_vm15, %v1202_v56, %v1204_v30  ;;  %v1207_v27 = vsel %vm1205_vm15, %v1204_v30, %v1202_v56  ;;  %v304_v30 = vld [vmem:[%s7387_s2 + $0x8] sm:$0xff]  ;;  %s7437_s2 = smov 94  }
 0x296   : > { %v1213_v39 = vmul.f32 %v6047_v38, %v1206_v51  ;;  %v1214_v10 = vmul.f32 %v6064_v34, %v1207_v27  ;;  %v1243_v51 = vsel %vm1241_vm1, %v304_v30, 0  ;;  %vm7440_vm1 = vcmp.lt.s32.totalorder %v5678_v41, 1 }
 0x297   : > { %v6080_v32 = vand.u32 4294901760, %v1243_v51 }
 0x298   : > { %v1215_v4 = vadd.f32 %v1213_v39, %v1199_v49  ;;  %v1216_v9 = vadd.f32 %v1214_v10, %v1200_v6 }
 0x299   : > { %7415 = vst [vmem:[#allocation47_spill] sm:$0xff] %v6080_v32 }
 0x29a   : > { %v1222_v50 = vadd.f32 %v6055_v62, %v1215_v4  ;;  %v1223_v17 = vadd.f32 %v6055_v62, %v1216_v9  ;;  %v6083_v9 = vsub.f32 %v1243_v51, %v6080_v32 }
 0x29c   : > { %v1224_v0 = vsub.f32 0.0, %v1222_v50  ;;  %v1225_v40 = vsub.f32 0.0, %v1223_v17  ;;  %7416 = vst [vmem:[#allocation48_spill] sm:$0xff] %v6083_v9 }
 0x29e   : > { %v1226_v22 = vmul.f32 1.442695, %v1224_v0  ;;  %v1228_v59 = vmul.f32 1.442695, %v1225_v40 }
 0x2a0   : > { %5035 = vpow2.f32 %v1226_v22  ;;  %v6086_v22 = vand.u32 4294901760, %v6083_v9 }
 0x2a1   : > { %5037 = vpow2.f32 %v1228_v59 }
 0x2a2   : > { %7417 = vst [vmem:[#allocation49_spill] sm:$0xff] %v6086_v22  ;;  %v1322_v27 = vsub.f32 %v6083_v9, %v6086_v22 }
 0x2a4   : > { %v6092_v30 = vand.u32 4294901760, %v1322_v27  ;;  %v4763_v27 = vld [vmem:[%s5471_s20 + $0x38] sm:$0xff] }
 0x2a6   : > { %7418 = vst [vmem:[#allocation50_spill] sm:$0xff] %v6092_v30 }
 0x2aa   : > { %v5036_v35 = vpop.eup %5035 }
 0x2ab   : > { %v5038_v25 = vpop.eup %5037  ;;  %v1230_v13 = vadd.f32 1.0, %v5036_v35 }
 0x2ac   : > { %v1231_v56 = vadd.f32 1.0, %v5038_v25 }
 0x2ad   : > { %5039 = vrcp.f32 %v1230_v13 }
 0x2ae   : > { %5041 = vrcp.f32 %v1231_v56 }
 0x2b7   : > { %v5040_v59 = vpop.eup %5039 }
 0x2b8   : > { %v5042_v0 = vpop.eup %5041  ;;  %v1234_v40 = vmul.f32 %v5040_v59, %v1222_v50 }
 0x2b9   : > { %v1235_v49 = vmul.f32 %v5042_v0, %v1223_v17  ;;  %v7419_v17 = vmov 0.0  }
 0x2ba   : > { %v1247_v6 = vsel %vm1245_vm2, %v1234_v40, 0  ;;  %v4761_v40 = vld [vmem:[%s5471_s20 + $0x28] sm:$0xff] }
 0x2bb   : > { %v1250_v39 = vsel %vm1245_vm2, %v1235_v49, 0  ;;  %v1254_v10 = vand.u32 4294901760, %v1247_v6  ;;  %v2531_v49 = vand.u32 4294901760, %v4761_v40 }
 0x2bc   : > { %v1252_v4 = vand.u32 4294901760, %v1250_v39 }
 0x2bd   : > { %v1337_v51 = vsub.f32 %v1247_v6, %v1254_v10  ;;  %v2535_v6 = vand.u32 4294901760, %v4763_v27 }
 0x2be   : > { %1253 = vmatprep.subr.mxu0 %v1252_v4  ;;  %v1331_v35 = vsub.f32 %v1250_v39, %v1252_v4  ;;  %v4760_v39 = vld [vmem:[%s5471_s20 + $0x20] sm:$0xff] }
 0x2bf   : > { %1255 = vmatpush1.msra.mxu0 %v1254_v10  ;;  %v1338_v25 = vand.u32 4294901760, %v1337_v51  ;;  %v4806_v38 = vpack.c.bf16 %v2535_v6, %v2531_v49 }
 0x2c0   : > { %1324 = vmatmul.mubr.f32.vlgmr.msra.gmra.mrb[2].mxu0 %v6092_v30  ;;  %v1332_v50 = vand.u32 4294901760, %v1331_v35 }
 0x2c1   : > { %v1339_v13 = vsub.f32 %v1337_v51, %v1338_v25  ;;  %1404 = vmatprep.mubr.f32.mxu0 %v7419_v17 }
 0x2c2   : > { %v1333_v56 = vsub.f32 %v1331_v35, %v1332_v50 }
 0x2c3   : > { %v1340_v59 = vand.u32 4294901760, %v1339_v13  ;;  %v4762_v13 = vld [vmem:[%s5471_s20 + $0x30] sm:$0xff] }
 0x2c4   : > { %v1334_v0 = vand.u32 4294901760, %v1333_v56  ;;  %v2533_v56 = vand.u32 4294901760, %v4760_v39 }
 0x2c6   : > { %1335 = vmatprep.subr.mxu0 %v1334_v0  ;;  %v2612_v0 = vsub.f32 %v4761_v40, %v2531_v49 }
 0x2c7   : > { %1341 = vmatpush1.msra.mxu0 %v1340_v59  ;;  %v2537_v59 = vand.u32 4294901760, %v4762_v13 }
 0x2c8   : > { %1406 = vmatmul.mubr.f32.vlgmr.msra.gmra.mrb[2].mxu0 %v6080_v32  ;;  %1414 = vmatprep.subr.mxu0 %v1331_v35  ;;  %v2624_v35 = vsub.f32 %v4763_v27, %v2535_v6 }
 0x2c9   : > { %1417 = vmatpush1.msra.mxu0 %v1337_v51  ;;  %1480 = vmatprep.mubr.f32.mxu0 %v7419_v17  ;;  %v2618_v51 = vsub.f32 %v4760_v39, %v2533_v56  ;;  %v2630_v30 = vsub.f32 %v4762_v13, %v2537_v59  ;;  %v4808_v39 = vpack.c.bf16 %v2537_v59, %v2533_v56 }
 0x2ca   : > { %1490 = vmatprep.subr.mxu0 %v1252_v4  ;;  %v2625_v62 = vand.u32 4294901760, %v2624_v35  ;;  %v4814_v6 = vpack.c.bf16 %v2624_v35, %v2612_v0 }
 0x2cb   : > { %v2619_v34 = vand.u32 4294901760, %v2618_v51 }
 0x2cc   : > { %v2626_v5 = vsub.f32 %v2624_v35, %v2625_v62 }
 0x2cd   : > { %v2620_v40 = vsub.f32 %v2618_v51, %v2619_v34 }
 0x2cf   : > { %v2621_v13 = vand.u32 4294901760, %v2620_v40 }
 0x2d0   : > { %1483 = vmatmul.mubr.f32.vlgmr.msra.gmra.mrb[2].mxu0 %v6083_v9  ;;  %v2613_v9 = vand.u32 4294901760, %v2612_v0 }
 0x2d1   : > { %1492 = vmatpush1.msra.mxu0 %v1254_v10  ;;  %1555 = vmatprep.mubr.f32.mxu0 %v7419_v17 }
 0x2d2   : > { %1568 = vmatprep.subr.mxu0 %v1332_v50  ;;  %v2631_v50 = vand.u32 4294901760, %v2630_v30  ;;  %v2614_v1 = vsub.f32 %v2612_v0, %v2613_v9 }
 0x2d4   : > { %v2632_v27 = vsub.f32 %v2630_v30, %v2631_v50 }
 0x2d8   : > { %1559 = vmatmul.mubr.f32.vlgmr.msra.gmra.mrb[2].mxu0 %v6086_v22  ;;  %v2627_v22 = vand.u32 4294901760, %v2626_v5  ;;  %v4822_v5 = vpack.c.bf16 %v2625_v62, %v2613_v9 }
 0x2d9   : > { %1572 = vmatpush1.msra.mxu0 %v1338_v25  ;;  %1635 = vmatprep.mubr.f32.mxu0 %v7419_v17  ;;  %v2615_v25 = vand.u32 4294901760, %v2614_v1  ;;  %v4816_v1 = vpack.c.bf16 %v2630_v30, %v2618_v51 }
 0x2da   : > { %1644 = vmatprep.subr.mxu0 %v1252_v4  ;;  %v2633_v4 = vand.u32 4294901760, %v2632_v27  ;;  %v6230_v27 = vpop.f32.mrb[0].mxu1 }
 0x2db   : > { %v4810_v37 = vpack.c.bf16 %v2627_v22, %v2615_v25  ;;  %7438 = vst [vmem:[#allocation53_spill] sm:$0xff] %v6230_v27  ;;  %v6232_v25 = vpop.f32.mrb[1].mxu1 }
 0x2dc   : > { %v4812_v49 = vpack.c.bf16 %v2633_v4, %v2621_v13  ;;  %7439 = vst [vmem:[#allocation54_spill] sm:$0xff] %v6232_v25 }
 0x2e0   : > { %1637 = vmatmul.mubr.f32.vlgmr.msra.gmra.mrb[2].mxu0 %v6080_v32 }
 0x2e1   : > { %1646 = vmatpush1.msra.mxu0 %v1254_v10  ;;  %1709 = vmatprep.mubr.f32.mxu0 %v7419_v17 }
 0x2e2   : > { %4807 = vmatprep.subr.bf16.mxu0 %v4806_v38 }
 0x2e8   : > { %1711 = vmatmul.mubr.f32.vlgmr.msra.gmra.mrb[2].mxu0 %v6080_v32 }
 0x2e9   : > { %4809 = vmatpush1.bf16.msra.mxu0 %v4808_v39  ;;  %2599 = vmatprep.mubr.f32.mxu0 %v7419_v17 }
 0x2ea   : > { %4811 = vmatprep.subr.bf16.mxu0 %v4810_v37  ;;  %v4824_v37 = vpack.c.bf16 %v2631_v50, %v2619_v34 }
 0x2ec   : > { %2605 = vmatmul.mubr.f32.vlgmr.msra.gmra.mrb[4].mxu0 %v5503_v36 }
 0x2ed   : > { %4813 = vmatpush1.bf16.msra.mxu0 %v4812_v49  ;;  %2695 = vmatprep.mubr.f32.mxu0 %v7419_v17 }
 0x2ee   : > { %4815 = vmatprep.subr.bf16.mxu0 %v4814_v6 }
 0x2f4   : > { %2697 = vmatmul.mubr.f32.vlgmr.msra.gmra.mrb[4].mxu0 %v5493_v19 }
 0x2f5   : > { %4817 = vmatpush1.bf16.msra.mxu0 %v4816_v1  ;;  %2775 = vmatprep.mubr.f32.mxu0 %v7419_v17 }
 0x2f6   : > { %4819 = vmatprep.subr.bf16.mxu0 %v4806_v38 }
 0x2fc   : > { %2778 = vmatmul.mubr.f32.vlgmr.msra.gmra.mrb[4].mxu0 %v5496_v23 }
 0x2fd   : > { %4821 = vmatpush1.bf16.msra.mxu0 %v4808_v39  ;;  %2852 = vmatprep.mubr.f32.mxu0 %v7419_v17 }
 0x2fe   : > { %4823 = vmatprep.subr.bf16.mxu0 %v4822_v5 }
 0x304   : > { %2856 = vmatmul.mubr.f32.vlgmr.msra.gmra.mrb[4].mxu0 %v5499_v28 }
 0x305   : > { %4825 = vmatpush1.bf16.msra.mxu0 %v4824_v37  ;;  %2938 = vmatprep.mubr.f32.mxu0 %v7419_v17 }
 0x306   : > { %4827 = vmatprep.subr.bf16.mxu0 %v4806_v38 }
 0x30c   : > { %2940 = vmatmul.mubr.f32.vlgmr.msra.gmra.mrb[4].mxu0 %v5493_v19 }
 0x30d   : > { %4829 = vmatpush1.bf16.msra.mxu0 %v4808_v39  ;;  %3014 = vmatprep.mubr.f32.mxu0 %v7419_v17 }
 0x314   : > { %3016 = vmatmul.mubr.f32.vlgmr.msra.gmra.mrb[4].mxu0 %v5493_v19 }
 0x3bb   : > { %v6121_v36 = vpop.f32.mrb[2].mxu0 }
 0x3bc   : > { %7420 = vst [vmem:[#allocation51_spill] sm:$0xff] %v6121_v36  ;;  %v6123_v23 = vpop.f32.mrb[3].mxu0 }
 0x3bd   : > { %7421 = vst [vmem:[#allocation52_spill] sm:$0xff] %v6123_v23 }
 0x3e7   : > { %v3017_v62 = vpop.f32.mrb[4].mxu0 }
 0x3e8   : > { %v4836_v34 = vadd.f32 %v3017_v62, %v5517_v42  ;;  %v3019_v9 = vpop.f32.mrb[5].mxu0 }
 0x3e9   : > { %v4837_v28 = vadd.f32 %v3019_v9, %v5517_v42  ;;  %v307_v42 = vld [vmem:[%s7221_s5 + $0x10] sm:$0xff] }
 0x3ea   : > { %v3022_v22 = vsub.f32 0.0, %v4836_v34 }
 0x3eb   : > { %v3023_v10 = vsub.f32 0.0, %v4837_v28 }
 0x3ec   : > { %v3024_v38 = vmul.f32 1.442695, %v3022_v22 }
 0x3ed   : > { %v3026_v30 = vmul.f32 1.442695, %v3023_v10 }
 0x3ee   : > { %5043 = vpow2.f32 %v3024_v38 }
 0x3ef   : > { %5045 = vpow2.f32 %v3026_v30 }
 0x3f8   : > { %v5044_v56 = vpop.eup %5043 }
 0x3f9   : > { %v5046_v59 = vpop.eup %5045  ;;  %v3028_v0 = vadd.f32 1.0, %v5044_v56 }
 0x3fa   : > { %v3029_v19 = vadd.f32 1.0, %v5046_v59 }
 0x3fb   : > { %5047 = vrcp.f32 %v3028_v0 }
 0x3fc   : > { %5049 = vrcp.f32 %v3029_v19 }
 0x405   : > { %v5048_v35 = vpop.eup %5047 }
 0x406   : > { %v5050_v51 = vpop.eup %5049  ;;  %v6127_v50 = vmul.f32 %v5048_v35, %v4836_v34 }
 0x407   : > { %v6129_v40 = vmul.f32 %v5050_v51, %v4837_v28 }
 0x408   : > { %3034 = vrot.lane.b32.xlu0 %v6127_v50, %s7307_s12 }
 0x409   : > { %3036 = vrot.lane.b32.xlu1 %v6129_v40, %s7307_s12  ;;  %s7431_s12 = smov 111  }
 0x40c   : > { %3046 = vrot.lane.b32.xlu0 %v6127_v50, %s7305_s30 }
 0x40d   : > { %3048 = vrot.lane.b32.xlu1 %v6129_v40, %s7305_s30  ;;  %s7430_s30 = smov 112  }
 0x410   : > { %3060 = vrot.lane.b32.xlu0 %v6127_v50, %s7303_s13 }
 0x411   : > { %3062 = vrot.lane.b32.xlu1 %v6129_v40, %s7303_s13  ;;  %s7429_s13 = smov 113  }
 0x414   : > { %3074 = vrot.lane.b32.xlu0 %v6127_v50, %s7301_s10 }
 0x415   : > { %3076 = vrot.lane.b32.xlu1 %v6129_v40, %s7301_s10  ;;  %s7428_s10 = smov 114  }
 0x418   : > { %3088 = vrot.lane.b32.xlu0 %v6127_v50, %s7299_s15 }
 0x419   : > { %3090 = vrot.lane.b32.xlu1 %v6129_v40, %s7299_s15  ;;  %s7427_s15 = smov 126  }
 0x41c   : > { %3102 = vrot.lane.b32.xlu0 %v6127_v50, %s7293_s7 }
 0x41d   : > { %3104 = vrot.lane.b32.xlu1 %v6129_v40, %s7293_s7  ;;  %s7424_s7 = smov 2  }
 0x420   : > { %3116 = vrot.lane.b32.xlu0 %v6127_v50, %s7295_s27 }
 0x421   : > { %3118 = vrot.lane.b32.xlu1 %v6129_v40, %s7295_s27  ;;  %s7425_s27 = smov 1  }
 0x424   : > { %3130 = vrot.lane.b32.xlu0 %v6127_v50, %s7297_s29 }
 0x425   : > { %3132 = vrot.lane.b32.xlu1 %v6129_v40, %s7297_s29  ;;  %s7426_s29 = smov 127  }
 0x428   : > { %3144 = vrot.lane.b32.xlu0 %v6127_v50, %s7422_s17 }
 0x429   : > { %3146 = vrot.lane.b32.xlu1 %v6129_v40, %s7422_s17 }
 0x42c   : > { %3158 = vrot.lane.b32.xlu0 %v6127_v50, %s7423_s19 }
 0x42d   : > { %3160 = vrot.lane.b32.xlu1 %v6129_v40, %s7423_s19 }
 0x430   : > { %3172 = vrot.lane.b32.xlu0 %v6127_v50, %s7424_s7 }
 0x431   : > { %3174 = vrot.lane.b32.xlu1 %v6129_v40, %s7424_s7 }
 0x434   : > { %3186 = vrot.lane.b32.xlu0 %v6127_v50, %s7425_s27 }
 0x435   : > { %3188 = vrot.lane.b32.xlu1 %v6129_v40, %s7425_s27 }
 0x438   : > { %3208 = vrot.lane.b32.xlu0 %v6127_v50, %s7426_s29 }
 0x439   : > { %3210 = vrot.lane.b32.xlu1 %v6129_v40, %s7426_s29 }
 0x43c   : > { %3222 = vrot.lane.b32.xlu0 %v6127_v50, %s7427_s15 }
 0x43d   : > { %3224 = vrot.lane.b32.xlu1 %v6129_v40, %s7427_s15 }
 0x440   : > { %3236 = vrot.lane.b32.xlu0 %v6127_v50, %s7428_s10 }
 0x441   : > { %3238 = vrot.lane.b32.xlu1 %v6129_v40, %s7428_s10 }
 0x444   : > { %3250 = vrot.lane.b32.xlu0 %v6127_v50, %s7429_s13 }
 0x445   : > { %3252 = vrot.lane.b32.xlu1 %v6129_v40, %s7429_s13 }
 0x448   : > { %3264 = vrot.lane.b32.xlu0 %v6127_v50, %s7430_s30 }
 0x449   : > { %3266 = vrot.lane.b32.xlu1 %v6129_v40, %s7430_s30 }
 0x44c   : > { %3278 = vrot.lane.b32.xlu0 %v6127_v50, %s7431_s12 }
 0x44d   : > { %3280 = vrot.lane.b32.xlu1 %v6129_v40, %s7431_s12 }
 0x450   : > { %3292 = vrot.lane.b32.xlu0 %v6127_v50, %s7432_s14 }
 0x451   : > { %3294 = vrot.lane.b32.xlu1 %v6129_v40, %s7432_s14 }
 0x454   : > { %3306 = vrot.lane.b32.xlu0 %v6127_v50, %s7433_s16 }
 0x455   : > { %3308 = vrot.lane.b32.xlu1 %v6129_v40, %s7433_s16 }
 0x458   : > { %3320 = vrot.lane.b32.xlu0 %v6127_v50, %s7434_s18 }
 0x459   : > { %3322 = vrot.lane.b32.xlu1 %v6129_v40, %s7434_s18 }
 0x45c   : > { %3334 = vrot.lane.b32.xlu0 %v6127_v50, %s7435_s0 }
 0x45d   : > { %3336 = vrot.lane.b32.xlu1 %v6129_v40, %s7435_s0 }
 0x460   : > { %3348 = vrot.lane.b32.xlu0 %v6127_v50, %s7436_s1 }
 0x461   : > { %3350 = vrot.lane.b32.xlu1 %v6129_v40, %s7436_s1 }
 0x464   : > { %3362 = vrot.lane.b32.xlu0 %v6127_v50, %s7437_s2 }
 0x465   : > { %3364 = vrot.lane.b32.xlu1 %v6129_v40, %s7437_s2 }
 0x468   : > { %1238 = vperm.xlu0 %5000, %v307_v42  }
 0x47a   : > { %v3035_v39 = vpop.permute.xlu0 %3034 }
 0x47b   : > { %v3037_v13 = vpop.permute.xlu1 %3036 }
 0x47c   : > { %v3038_v17 = vsel %vm831_vm5, %v3035_v39, %v3037_v13  ;;  %v3039_v25 = vsel %vm831_vm5, %v3037_v13, %v3035_v39 }
 0x47d   : > { %v3044_v12 = vmul.f32 %v3039_v25, %v5687_v46  ;;  %v3045_v39 = vmul.f32 %v3038_v17, %v5709_v54 }
 0x47e   : > { %v3047_v4 = vpop.permute.xlu0 %3046 }
 0x47f   : > { %v3049_v49 = vpop.permute.xlu1 %3048 }
 0x480   : > { %v3050_v35 = vsel %vm844_vm3, %v3047_v4, %v3049_v49  ;;  %v3051_v51 = vsel %vm844_vm3, %v3049_v49, %v3047_v4 }
 0x481   : > { %v3056_v36 = vmul.f32 %v3051_v51, %v5682_v44  ;;  %v3057_v45 = vmul.f32 %v3050_v35, %v5691_v47 }
 0x482   : > { %v3061_v6 = vpop.permute.xlu0 %3060 }
 0x483   : > { %v3063_v1 = vpop.permute.xlu1 %3062  ;;  %v3059_v35 = vadd.f32 %v3057_v45, %v3045_v39 }
 0x484   : > { %v3064_v27 = vsel %vm860_vm4, %v3061_v6, %v3063_v1  ;;  %v3065_v23 = vsel %vm860_vm4, %v3063_v1, %v3061_v6  ;;  %v3058_v1 = vadd.f32 %v3056_v36, %v3044_v12 }
 0x485   : > { %v3070_v13 = vmul.f32 %v3065_v23, %v5693_v48  ;;  %v3071_v43 = vmul.f32 %v3064_v27, %v5713_v55 }
 0x486   : > { %v3075_v5 = vpop.permute.xlu0 %3074 }
 0x487   : > { %v3077_v37 = vpop.permute.xlu1 %3076  ;;  %v3072_v55 = vadd.f32 %v3070_v13, %v3058_v1  ;;  %v3073_v17 = vadd.f32 %v3071_v43, %v3059_v35 }
 0x488   : > { %v3078_v4 = vsel %vm876_vm6, %v3075_v5, %v3077_v37  ;;  %v3079_v49 = vsel %vm876_vm6, %v3077_v37, %v3075_v5 }
 0x489   : > { %v3084_v5 = vmul.f32 %v3079_v49, %v5701_v52  ;;  %v3085_v37 = vmul.f32 %v3078_v4, %v5720_v61 }
 0x48a   : > { %v3089_v62 = vpop.permute.xlu0 %3088 }
 0x48b   : > { %v3091_v34 = vpop.permute.xlu1 %3090  ;;  %v3086_v61 = vadd.f32 %v3084_v5, %v3072_v55  ;;  %v3087_v45 = vadd.f32 %v3085_v37, %v3073_v17 }
 0x48c   : > { %v3092_v44 = vsel %vm892_vm7, %v3089_v62, %v3091_v34  ;;  %v3093_v47 = vsel %vm892_vm7, %v3091_v34, %v3089_v62 }
 0x48d   : > { %v3098_v23 = vmul.f32 %v3093_v47, %v5723_v63  ;;  %v3099_v27 = vmul.f32 %v3092_v44, %v5745_v14 }
 0x48e   : > { %v3103_v9 = vpop.permute.xlu0 %3102 }
 0x48f   : > { %v3105_v28 = vpop.permute.xlu1 %3104  ;;  %v3100_v34 = vadd.f32 %v3098_v23, %v3086_v61  ;;  %v3204_v61 = vmul.f32 %v6127_v50, %v5864_v57 }
 0x490   : > { %v3106_v46 = vsel %vm908_vm8, %v3103_v9, %v3105_v28  ;;  %v3107_v48 = vsel %vm908_vm8, %v3105_v28, %v3103_v9  ;;  %v3101_v9 = vadd.f32 %v3099_v27, %v3087_v45 }
 0x491   : > { %v3112_v36 = vmul.f32 %v3107_v48, %v5725_v2  ;;  %v3113_v62 = vmul.f32 %v3106_v46, %v5750_v15 }
 0x492   : > { %v3117_v22 = vpop.permute.xlu0 %3116 }
 0x493   : > { %v3119_v10 = vpop.permute.xlu1 %3118  ;;  %v3114_v15 = vadd.f32 %v3112_v36, %v3100_v34  ;;  %v3115_v4 = vadd.f32 %v3113_v62, %v3101_v9  ;;  %v7446_v34 = vld [vmem:[#allocation24_spill] sm:$0xff] }
 0x494   : > { %v3120_v12 = vsel %vm924_vm9, %v3117_v22, %v3119_v10  ;;  %v3121_v52 = vsel %vm924_vm9, %v3119_v10, %v3117_v22 }
 0x495   : > { %v3126_v28 = vmul.f32 %v3121_v52, %v5755_v18  ;;  %v3127_v51 = vmul.f32 %v3120_v12, %v5779_v8 }
 0x496   : > { %v3131_v38 = vpop.permute.xlu0 %3130 }
 0x497   : > { %v3133_v30 = vpop.permute.xlu1 %3132  ;;  %v3128_v39 = vadd.f32 %v3126_v28, %v3114_v15  ;;  %v3129_v13 = vadd.f32 %v3127_v51, %v3115_v4  ;;  %v7447_v28 = vld [vmem:[#allocation26_spill] sm:$0xff]  ;;  %v7451_v4 = vld [vmem:[#allocation27_spill] sm:$0xff] }
 0x498   : > { %v3134_v43 = vsel %vm940_vm10, %v3131_v38, %v3133_v30  ;;  %v3135_v63 = vsel %vm940_vm10, %v3133_v30, %v3131_v38 }
 0x499   : > { %v3140_v49 = vmul.f32 %v3135_v63, %v5757_v20  ;;  %v3141_v38 = vmul.f32 %v3134_v43, %v5784_v24 }
 0x49a   : > { %v3145_v56 = vpop.permute.xlu0 %3144 }
 0x49b   : > { %v3147_v59 = vpop.permute.xlu1 %3146  ;;  %v3142_v24 = vadd.f32 %v3140_v49, %v3128_v39  ;;  %v3143_v1 = vadd.f32 %v3141_v38, %v3129_v13  ;;  %v7454_v13 = vld [vmem:[#allocation28_spill] sm:$0xff] }
 0x49c   : > { %v3148_v10 = vsel %vm956_vm11, %v3145_v56, %v3147_v59  ;;  %v3149_v2 = vsel %vm956_vm11, %v3147_v59, %v3145_v56 }
 0x49d   : > { %v3154_v44 = vmul.f32 %v3149_v2, %v5789_v11  ;;  %v3155_v47 = vmul.f32 %v3148_v10, %v5817_v60  ;;  %v7450_v2 = vld [vmem:[#allocation25_spill] sm:$0xff] }
 0x49e   : > { %v3159_v0 = vpop.permute.xlu0 %3158 }
 0x49f   : > { %v3161_v19 = vpop.permute.xlu1 %3160  ;;  %v3156_v5 = vadd.f32 %v3154_v44, %v3142_v24  ;;  %v3157_v37 = vadd.f32 %v3155_v47, %v3143_v1  ;;  %v7455_v47 = vld [vmem:[#allocation29_spill] sm:$0xff] }
 0x4a0   : > { %v3162_v30 = vsel %vm7322_vm12, %v3159_v0, %v3161_v19  ;;  %v3163_v18 = vsel %vm7322_vm12, %v3161_v19, %v3159_v0  ;;  %vm7441_vm12 = vmmov %vm7440_vm1 }
 0x4a1   : > { %v3168_v35 = vmul.f32 %v3163_v18, %v5791_v26  ;;  %v3169_v0 = vmul.f32 %v3162_v30, %v5822_v29 }
 0x4a2   : > { %v3173_v42 = vpop.permute.xlu0 %3172 }
 0x4a3   : > { %v3175_v32 = vpop.permute.xlu1 %3174  ;;  %v3171_v55 = vadd.f32 %v3169_v0, %v3157_v37  ;;  %v7458_v0 = vld [vmem:[#allocation30_spill] sm:$0xff] }
 0x4a4   : > { %v3176_v59 = vsel %vm7324_vm13, %v3173_v42, %v3175_v32  ;;  %v3177_v20 = vsel %vm7324_vm13, %v3175_v32, %v3173_v42  ;;  %v3170_v42 = vadd.f32 %v3168_v35, %v3156_v5 }
 0x4a5   : > { %v3182_v46 = vmul.f32 %v3177_v20, %v5827_v7  ;;  %v3183_v48 = vmul.f32 %v3176_v59, %v5855_v3 }
 0x4a6   : > { %v3187_v53 = vpop.permute.xlu0 %3186 }
 0x4a7   : > { %v3189_v6 = vpop.permute.xlu1 %3188  ;;  %v3184_v23 = vadd.f32 %v3182_v46, %v3170_v42  ;;  %v3185_v27 = vadd.f32 %v3183_v48, %v3171_v55  ;;  %v7462_v42 = vld [vmem:[#allocation32_spill] sm:$0xff] }
 0x4a8   : > { %v3190_v19 = vsel %vm7440_vm1, %v3187_v53, %v3189_v6  ;;  %v3191_v11 = vsel %vm7441_vm12, %v3189_v6, %v3187_v53  ;;  %vm7442_vm12 = vcmp.lt.s32.totalorder %v5678_v41, 127 }
 0x4a9   : > { %v3196_v26 = vmul.f32 %v3191_v11, %v5829_v31  ;;  %v3197_v29 = vmul.f32 %v3190_v19, %v5860_v33  ;;  %vm7443_vm1 = vmmov %vm7442_vm12  ;;  %v3205_v31 = vmul.f32 %v6129_v40, %v5890_v16  ;;  %v7459_v11 = vld [vmem:[#allocation31_spill] sm:$0xff] }
 0x4aa   : > { %v3209_v54 = vpop.permute.xlu0 %3208 }
 0x4ab   : > { %v3211_v25 = vpop.permute.xlu1 %3210  ;;  %v3198_v52 = vadd.f32 %v3196_v26, %v3184_v23  ;;  %v3199_v53 = vadd.f32 %v3197_v29, %v3185_v27  ;;  %v7463_v26 = vld [vmem:[#allocation33_spill] sm:$0xff] }
 0x4ac   : > { %v3212_v6 = vsel %vm7442_vm12, %v3209_v54, %v3211_v25  ;;  %v3213_v7 = vsel %vm7443_vm1, %v3211_v25, %v3209_v54  ;;  %vm7444_vm12 = vcmp.lt.s32.totalorder %v5678_v41, 114 }
 0x4ad   : > { %v3206_v62 = vadd.f32 %v3204_v61, %v3198_v52  ;;  %v3207_v43 = vadd.f32 %v3205_v31, %v3199_v53  ;;  %v3218_v63 = vmul.f32 %v3212_v6, %v5886_v21  ;;  %v3219_v54 = vmul.f32 %v3213_v7, %v5899_v58  ;;  %vm7445_vm1 = vmmov %vm7444_vm12  ;;  %v7466_v53 = vld [vmem:[#allocation34_spill] sm:$0xff]  ;;  %v7467_v7 = vld [vmem:[#allocation35_spill] sm:$0xff] }
 0x4ae   : > { %v3223_v14 = vpop.permute.xlu0 %3222 }
 0x4af   : > { %v3225_v22 = vpop.permute.xlu1 %3224  ;;  %v3221_v58 = vadd.f32 %v3219_v54, %v3207_v43 }
 0x4b0   : > { %v3226_v45 = vsel %vm7323_vm0, %v3223_v14, %v3225_v22  ;;  %v3227_v36 = vsel %vm7323_vm0, %v3225_v22, %v3223_v14  ;;  %vm7448_vm0 = vcmp.lt.s32.totalorder %v5678_v41, 113  ;;  %v3220_v22 = vadd.f32 %v3218_v63, %v3206_v62  ;;  %v7470_v62 = vld [vmem:[#allocation36_spill] sm:$0xff]  ;;  %v7471_v63 = vld [vmem:[#allocation37_spill] sm:$0xff] }
 0x4b1   : > { %v3232_v9 = vmul.f32 %v3226_v45, %v7446_v34  ;;  %v3233_v51 = vmul.f32 %v3227_v36, %v7447_v28  ;;  %vm7449_vm13 = vmmov %vm7448_vm0  ;;  %v7474_v28 = vld [vmem:[#allocation38_spill] sm:$0xff] }
 0x4b2   : > { %v3237_v8 = vpop.permute.xlu0 %3236 }
 0x4b3   : > { %v3239_v56 = vpop.permute.xlu1 %3238  ;;  %v3235_v39 = vadd.f32 %v3233_v51, %v3221_v58 }
 0x4b4   : > { %v3240_v25 = vsel %vm7444_vm12, %v3237_v8, %v3239_v56  ;;  %v3241_v57 = vsel %vm7445_vm1, %v3239_v56, %v3237_v8  ;;  %vm7452_vm12 = vcmp.lt.s32.totalorder %v5678_v41, 112  ;;  %v3234_v8 = vadd.f32 %v3232_v9, %v3220_v22 }
 0x4b5   : > { %v3246_v15 = vmul.f32 %v3240_v25, %v7450_v2  ;;  %v3247_v49 = vmul.f32 %v3241_v57, %v7451_v4  ;;  %vm7453_vm1 = vmmov %vm7452_vm12  ;;  %v7476_v2 = vld [vmem:[#allocation40_spill] sm:$0xff]  ;;  %v7477_v4 = vld [vmem:[#allocation41_spill] sm:$0xff] }
 0x4b6   : > { %v3251_v60 = vpop.permute.xlu0 %3250 }
 0x4b7   : > { %v3253_v32 = vpop.permute.xlu1 %3252  ;;  %v3248_v1 = vadd.f32 %v3246_v15, %v3234_v8  ;;  %v3249_v35 = vadd.f32 %v3247_v49, %v3235_v39 }
 0x4b8   : > { %v3254_v14 = vsel %vm7448_vm0, %v3251_v60, %v3253_v32  ;;  %v3255_v21 = vsel %vm7449_vm13, %v3253_v32, %v3251_v60  ;;  %vm7456_vm13 = vcmp.lt.s32.totalorder %v5678_v41, 111 }
 0x4b9   : > { %v3260_v44 = vmul.f32 %v3254_v14, %v7454_v13  ;;  %v3261_v56 = vmul.f32 %v3255_v21, %v7455_v47  ;;  %vm7457_vm0 = vmmov %vm7456_vm13  ;;  %v7478_v13 = vld [vmem:[#allocation42_spill] sm:$0xff]  ;;  %v7479_v47 = vld [vmem:[#allocation44_spill] sm:$0xff] }
 0x4ba   : > { %v3265_v17 = vpop.permute.xlu0 %3264 }
 0x4bb   : > { %v3267_v12 = vpop.permute.xlu1 %3266  ;;  %v3262_v48 = vadd.f32 %v3260_v44, %v3248_v1  ;;  %v3263_v32 = vadd.f32 %v3261_v56, %v3249_v35 }
 0x4bc   : > { %v3268_v38 = vsel %vm7452_vm12, %v3265_v17, %v3267_v12  ;;  %v3269_v30 = vsel %vm7453_vm1, %v3267_v12, %v3265_v17  ;;  %vm7460_vm12 = vcmp.lt.s32.totalorder %v5678_v41, 110 }
 0x4bd   : > { %v3274_v19 = vmul.f32 %v3268_v38, %v7458_v0  ;;  %v3275_v60 = vmul.f32 %v3269_v30, %v7459_v11  ;;  %vm7461_vm1 = vmmov %vm7460_vm12 }
 0x4be   : > { %v3279_v3 = vpop.permute.xlu0 %3278 }
 0x4bf   : > { %v3281_v33 = vpop.permute.xlu1 %3280  ;;  %v3276_v12 = vadd.f32 %v3274_v19, %v3262_v48  ;;  %v3277_v52 = vadd.f32 %v3275_v60, %v3263_v32  ;;  %v7480_v60 = vld [vmem:[#allocation43_spill] sm:$0xff] }
 0x4c0   : > { %v3282_v20 = vsel %vm7456_vm13, %v3279_v3, %v3281_v33  ;;  %v3283_v24 = vsel %vm7457_vm0, %v3281_v33, %v3279_v3  ;;  %vm7464_vm13 = vcmp.lt.s32.totalorder %v5678_v41, 98 }
 0x4c1   : > { %v3288_v55 = vmul.f32 %v3282_v20, %v7462_v42  ;;  %v3289_v29 = vmul.f32 %v3283_v24, %v7463_v26  ;;  %vm7465_vm0 = vmmov %vm7464_vm13  ;;  %v7482_v42 = vld [vmem:[#allocation45_spill] sm:$0xff] }
 0x4c2   : > { %v3293_v16 = vpop.permute.xlu0 %3292 }
 0x4c3   : > { %v3295_v10 = vpop.permute.xlu1 %3294  ;;  %v3290_v45 = vadd.f32 %v3288_v55, %v3276_v12  ;;  %v3291_v36 = vadd.f32 %v3289_v29, %v3277_v52  ;;  %v7483_v52 = vld [vmem:[#allocation51_spill] sm:$0xff] }
 0x4c4   : > { %v3296_v5 = vsel %vm7460_vm12, %v3293_v16, %v3295_v10  ;;  %v3297_v37 = vsel %vm7461_vm1, %v3295_v10, %v3293_v16  ;;  %vm7468_vm12 = vcmp.lt.s32.totalorder %v5678_v41, 97  ;;  %v7475_v10 = vld [vmem:[#allocation39_spill] sm:$0xff] }
 0x4c5   : > { %v3302_v6 = vmul.f32 %v3296_v5, %v7466_v53  ;;  %v3303_v3 = vmul.f32 %v3297_v37, %v7467_v7  ;;  %vm7469_vm1 = vmmov %vm7468_vm12  ;;  %v7481_v37 = vld [vmem:[#allocation46_spill] sm:$0xff] }
 0x4c6   : > { %v3307_v18 = vpop.permute.xlu0 %3306 }
 0x4c7   : > { %v3309_v59 = vpop.permute.xlu1 %3308  ;;  %v3304_v34 = vadd.f32 %v3302_v6, %v3290_v45  ;;  %v3305_v9 = vadd.f32 %v3303_v3, %v3291_v36  ;;  %v7484_v6 = vld [vmem:[#allocation52_spill] sm:$0xff]  ;;  %v2514_v3 = vld [vmem:[%s5471_s20] sm:$0xff]  ;;  %v2515_v36 = vld [vmem:[%s5471_s20 + $0x8] sm:$0xff] }
 0x4c8   : > { %v3310_v23 = vsel %vm7464_vm13, %v3307_v18, %v3309_v59  ;;  %v3311_v27 = vsel %vm7465_vm0, %v3309_v59, %v3307_v18  ;;  %vm7472_vm13 = vcmp.lt.s32.totalorder %v5678_v41, 96 }
 0x4c9   : > { %v3316_v43 = vmul.f32 %v3310_v23, %v7470_v62  ;;  %v3317_v54 = vmul.f32 %v3311_v27, %v7471_v63  ;;  %vm7473_vm0 = vmmov %vm7472_vm13 }
 0x4ca   : > { %v3321_v46 = vpop.permute.xlu0 %3320 }
 0x4cb   : > { %v3323_v17 = vpop.permute.xlu1 %3322  ;;  %v3318_v22 = vadd.f32 %v3316_v43, %v3304_v34  ;;  %v3319_v58 = vadd.f32 %v3317_v54, %v3305_v9 }
 0x4cc   : > { %v3324_v61 = vsel %vm7468_vm12, %v3321_v46, %v3323_v17  ;;  %v3325_v31 = vsel %vm7469_vm1, %v3323_v17, %v3321_v46  ;;  %vm7508_vm1 = vcmp.lt.s32.totalorder %v5678_v41, 2 }
 0x4cd   : > { %v3330_v51 = vmul.f32 %v3324_v61, %v7474_v28  ;;  %v3331_v14 = vmul.f32 %v3325_v31, %v7475_v10  ;;  %v7485_v61 = vld [vmem:[#allocation53_spill] sm:$0xff] }
 0x4ce   : > { %v3335_v33 = vpop.permute.xlu0 %3334 }
 0x4cf   : > { %v3337_v25 = vpop.permute.xlu1 %3336  ;;  %v3332_v8 = vadd.f32 %v3330_v51, %v3318_v22  ;;  %v3333_v39 = vadd.f32 %v3331_v14, %v3319_v58 }
 0x4d0   : > { %v3338_v57 = vsel %vm7472_vm13, %v3335_v33, %v3337_v25  ;;  %v3339_v16 = vsel %vm7473_vm0, %v3337_v25, %v3335_v33  ;;  %v7486_v33 = vld [vmem:[#allocation54_spill] sm:$0xff]  ;;  %vm7509_vm13 = vmmov %vm7508_vm1  ;;  %vm7510_vm0 = vcmp.lt.s32.totalorder %v5678_v41, 1 }
 0x4d1   : > { %v3344_v15 = vmul.f32 %v3338_v57, %v7476_v2  ;;  %v3345_v49 = vmul.f32 %v3339_v16, %v7477_v4 }
 0x4d2   : > { %v3349_v21 = vpop.permute.xlu0 %3348 }
 0x4d3   : > { %v3351_v38 = vpop.permute.xlu1 %3350  ;;  %v3346_v20 = vadd.f32 %v3344_v15, %v3332_v8  ;;  %v3347_v24 = vadd.f32 %v3345_v49, %v3333_v39  ;;  %v7494_v15 = vld [vmem:[#allocation50_spill] sm:$0xff]  ;;  %v7498_v39 = vld [vmem:[#allocation47_spill] sm:$0xff] }
 0x4d4   : > { %v3352_v30 = vsel %vm1189_vm14, %v3349_v21, %v3351_v38  ;;  %v3353_v18 = vsel %vm1189_vm14, %v3351_v38, %v3349_v21 }
 0x4d5   : > { %v3358_v44 = vmul.f32 %v3352_v30, %v7478_v13  ;;  %v3359_v56 = vmul.f32 %v3353_v18, %v7479_v47  ;;  %v7496_v30 = vmov 0.0   ;;  %v7499_v13 = vld [vmem:[#allocation48_spill] sm:$0xff]  ;;  %v7500_v47 = vld [vmem:[#allocation49_spill] sm:$0xff] }
 0x4d6   : > { %v3363_v59 = vpop.permute.xlu0 %3362 }
 0x4d7   : > { %v3365_v1 = vpop.permute.xlu1 %3364  ;;  %v3360_v19 = vadd.f32 %v3358_v44, %v3346_v20  ;;  %v3361_v11 = vadd.f32 %v3359_v56, %v3347_v24  ;;  %v3865_v44 = vsel %vm1245_vm2, %v6129_v40, 0 }
 0x4d8   : > { %v3366_v35 = vsel %vm1205_vm15, %v3363_v59, %v3365_v1  ;;  %v3367_v0 = vsel %vm1205_vm15, %v3365_v1, %v3363_v59  ;;  %v3867_v56 = vand.u32 4294901760, %v3865_v44  ;;  %v3862_v59 = vsel %vm1245_vm2, %v6127_v50, 0 }
 0x4d9   : > { %v3372_v5 = vmul.f32 %v3366_v35, %v7480_v60  ;;  %v3373_v46 = vmul.f32 %v3367_v0, %v7481_v37  ;;  %v3869_v20 = vand.u32 4294901760, %v3862_v59  ;;  %v7501_v60 = vld [vmem:[#allocation23_spill] sm:$0xff]  ;;  %v7503_v37 = vld [vmem:[#allocation21_spill] sm:$0xff] }
 0x4da   : > { %v3946_v40 = vsub.f32 %v3865_v44, %v3867_v56 }
 0x4db   : > { %v3374_v48 = vadd.f32 %v3372_v5, %v3360_v19  ;;  %v3375_v32 = vadd.f32 %v3373_v46, %v3361_v11  ;;  %v3952_v50 = vsub.f32 %v3862_v59, %v3869_v20  ;;  %v7502_v5 = vld [vmem:[#allocation20_spill] sm:$0xff] }
 0x4dc   : > { %v3947_v24 = vand.u32 4294901760, %v3946_v40  ;;  %v308_v46 = vld [vmem:[%s7221_s5 + $0x18] sm:$0xff] }
 0x4dd   : > { %v3376_v55 = vadd.f32 %v3374_v48, %v7482_v42  ;;  %v3377_v26 = vadd.f32 %v3375_v32, %v7482_v42  ;;  %v3953_v35 = vand.u32 4294901760, %v3952_v50  ;;  %v7504_v48 = vld [vmem:[#allocation22_spill] sm:$0xff]  ;;  %v6598_v59 = vld [vmem:[#allocation7 + $0x30] sm:$0xff] }
 0x4de   : > { %v3948_v1 = vsub.f32 %v3946_v40, %v3947_v24 }
 0x4df   : > { %v3378_v29 = vsub.f32 0.0, %v3376_v55  ;;  %v3379_v17 = vsub.f32 0.0, %v3377_v26  ;;  %v3954_v19 = vsub.f32 %v3952_v50, %v3953_v35 }
 0x4e0   : > { %v3949_v0 = vand.u32 4294901760, %v3948_v1 }
 0x4e1   : > { %v3380_v23 = vmul.f32 1.442695, %v3378_v29  ;;  %v3382_v27 = vmul.f32 1.442695, %v3379_v17  ;;  %v3955_v11 = vand.u32 4294901760, %v3954_v19 }
 0x4e3   : > { %5051 = vpow2.f32 %v3380_v23 }
 0x4e4   : > { %5053 = vpow2.f32 %v3382_v27 }
 0x4e7   : > { %v6384_v12 = vpop.permute.xlu0 %1238 }
 0x4e8   : > { %v4832_v53 = vadd.f32 %v7483_v52, %v6384_v12  ;;  %v4834_v7 = vadd.f32 %v7484_v6, %v6384_v12 }
 0x4ea   : > { %v6392_v31 = vadd.f32 %v4832_v53, %v7485_v61  ;;  %v6395_v45 = vadd.f32 %v4834_v7, %v7486_v33 }
 0x4ec   : > { %2193 = vrot.lane.b32.xlu0 %v6395_v45, %s7487_s3  ;;  %2191 = vrot.lane.b32.xlu1 %v6392_v31, %s7487_s3  ;;  %v2516_v62 = vadd.f32 %v6392_v31, %v2514_v3  ;;  %v2517_v63 = vadd.f32 %v6395_v45, %v2515_v36 }
 0x4ed   : > { %v5052_v43 = vpop.eup %5051 }
 0x4ee   : > { %v5054_v54 = vpop.eup %5053  ;;  %v3384_v25 = vadd.f32 1.0, %v5052_v43  ;;  %2518 = vst [vmem:[%s6406_s11] sm:$0xff] %v2516_v62  ;;  %2519 = vst [vmem:[%s6406_s11 + $0x8] sm:$0xff] %v2517_v63 }
 0x4ef   : > { %v3385_v57 = vadd.f32 1.0, %v5054_v54 }
 0x4f0   : > { %5055 = vrcp.f32 %v3384_v25  ;;  %2203 = vrot.lane.b32.xlu0 %v6395_v45, %s7489_s23  ;;  %2201 = vrot.lane.b32.xlu1 %v6392_v31, %s7489_s23 }
 0x4f1   : > { %5057 = vrcp.f32 %v3385_v57 }
 0x4f4   : > { %2216 = vrot.lane.b32.xlu0 %v6395_v45, %s7490_s22  ;;  %2214 = vrot.lane.b32.xlu1 %v6392_v31, %s7490_s22 }
 0x4f8   : > { %2229 = vrot.lane.b32.xlu0 %v6395_v45, %s7491_s4  ;;  %2227 = vrot.lane.b32.xlu1 %v6392_v31, %s7491_s4 }
 0x4fa   : > { %v5056_v16 = vpop.eup %5055 }
 0x4fb   : > { %v5058_v34 = vpop.eup %5057  ;;  %v3388_v9 = vmul.f32 %v5056_v16, %v3376_v55 }
 0x4fc   : > { %2242 = vrot.lane.b32.xlu0 %v6395_v45, %s7492_s26  ;;  %2240 = vrot.lane.b32.xlu1 %v6392_v31, %s7492_s26  ;;  %v3389_v28 = vmul.f32 %v5058_v34, %v3377_v26 }
 0x4fd   : > { %v3391_v51 = vsel %vm1245_vm2, %v3388_v9, 0 }
 0x4fe   : > { %v3394_v10 = vsel %vm1245_vm2, %v3389_v28, 0  ;;  %v3398_v14 = vand.u32 4294901760, %v3391_v51  ;;  %vm7506_vm2 = vcmp.lt.s32.totalorder %v5678_v41, 14 }
 0x4ff   : > { %v3396_v21 = vand.u32 4294901760, %v3394_v10  ;;  %vm7507_vm12 = vmmov %vm7506_vm2 }
 0x500   : > { %2255 = vrot.lane.b32.xlu0 %v6395_v45, %s7493_s24  ;;  %2253 = vrot.lane.b32.xlu1 %v6392_v31, %s7493_s24  ;;  %v3481_v22 = vsub.f32 %v3391_v51, %v3398_v14 }
 0x501   : > { %3397 = vmatprep.subr.mxu1 %v3396_v21  ;;  %v3475_v58 = vsub.f32 %v3394_v10, %v3396_v21 }
 0x502   : > { %3399 = vmatpush1.msra.mxu1 %v3398_v14  ;;  %v3482_v2 = vand.u32 4294901760, %v3481_v22 }
 0x503   : > { %3468 = vmatmul.mubr.f32.vlgmr.msra.gmra.mrb[2].mxu1 %v7494_v15  ;;  %v3476_v4 = vand.u32 4294901760, %v3475_v58 }
 0x504   : > { %2268 = vrot.lane.b32.xlu0 %v6395_v45, %s7495_s28  ;;  %2266 = vrot.lane.b32.xlu1 %v6392_v31, %s7495_s28  ;;  %v3483_v49 = vsub.f32 %v3481_v22, %v3482_v2 }
 0x505   : > { %v3477_v38 = vsub.f32 %v3475_v58, %v3476_v4  ;;  %3548 = vmatprep.mubr.f32.mxu1 %v7496_v30 }
 0x506   : > { %v3484_v18 = vand.u32 4294901760, %v3483_v49  ;;  %v6580_v49 = vld [vmem:[#allocation7 + $0x8] sm:$0xff] }
 0x507   : > { %v3478_v8 = vand.u32 4294901760, %v3477_v38 }
 0x508   : > { %2281 = vrot.lane.b32.xlu0 %v6395_v45, %s7497_s21  ;;  %2279 = vrot.lane.b32.xlu1 %v6392_v31, %s7497_s21 }
 0x509   : > { %3479 = vmatprep.subr.mxu1 %v3478_v8  ;;  %v6588_v8 = vld [vmem:[#allocation7 + $0x28] sm:$0xff] }
 0x50a   : > { %3485 = vmatpush1.msra.mxu1 %v3484_v18  ;;  %v6586_v18 = vld [vmem:[#allocation7 + $0x20] sm:$0xff] }
 0x50b   : > { %3550 = vmatmul.mubr.f32.vlgmr.msra.gmra.mrb[2].mxu1 %v7498_v39  ;;  %3558 = vmatprep.subr.mxu1 %v3475_v58 }
 0x50c   : > { %3561 = vmatpush1.msra.mxu1 %v3481_v22  ;;  %2294 = vrot.lane.b32.xlu0 %v6395_v45, %s7422_s17  ;;  %v6570_v22 = vld [vmem:[#allocation7 + $0x18] sm:$0xff] }
 0x50d   : > { %2292 = vrot.lane.b32.xlu1 %v6392_v31, %s7422_s17  ;;  %3634 = vmatprep.subr.mxu1 %v3396_v21 }
 0x50e   : > { %3624 = vmatprep.mubr.f32.mxu1 %v7496_v30 }
 0x510   : > { %2307 = vrot.lane.b32.xlu0 %v6395_v45, %s7423_s19 }
 0x511   : > { %2305 = vrot.lane.b32.xlu1 %v6392_v31, %s7423_s19 }
 0x513   : > { %3627 = vmatmul.mubr.f32.vlgmr.msra.gmra.mrb[2].mxu1 %v7499_v13 }
 0x514   : > { %3636 = vmatpush1.msra.mxu1 %v3398_v14  ;;  %2320 = vrot.lane.b32.xlu0 %v6395_v45, %s7424_s7 }
 0x515   : > { %3712 = vmatprep.subr.mxu1 %v3476_v4  ;;  %2318 = vrot.lane.b32.xlu1 %v6392_v31, %s7424_s7  ;;  %v6578_v4 = vld [vmem:[#allocation7] sm:$0xff] }
 0x516   : > { %3699 = vmatprep.mubr.f32.mxu1 %v7496_v30 }
 0x518   : > { %2333 = vrot.lane.b32.xlu0 %v6395_v45, %s7425_s27 }
 0x519   : > { %2331 = vrot.lane.b32.xlu1 %v6392_v31, %s7425_s27 }
 0x51b   : > { %3703 = vmatmul.mubr.f32.vlgmr.msra.gmra.mrb[2].mxu1 %v7500_v47 }
 0x51c   : > { %3716 = vmatpush1.msra.mxu1 %v3482_v2  ;;  %2353 = vrot.lane.b32.xlu0 %v6395_v45, %s7426_s29 }
 0x51d   : > { %3788 = vmatprep.subr.mxu1 %v3396_v21  ;;  %2351 = vrot.lane.b32.xlu1 %v6392_v31, %s7426_s29  ;;  %v6568_v21 = vld [vmem:[#allocation7 + $0x10] sm:$0xff] }
 0x51e   : > { %3779 = vmatprep.mubr.f32.mxu1 %v7496_v30 }
 0x520   : > { %2366 = vrot.lane.b32.xlu0 %v6395_v45, %s7427_s15 }
 0x521   : > { %2364 = vrot.lane.b32.xlu1 %v6392_v31, %s7427_s15 }
 0x523   : > { %3781 = vmatmul.mubr.f32.vlgmr.msra.gmra.mrb[2].mxu1 %v7498_v39 }
 0x524   : > { %3790 = vmatpush1.msra.mxu1 %v3398_v14  ;;  %2379 = vrot.lane.b32.xlu0 %v6395_v45, %s7428_s10 }
 0x525   : > { %3868 = vmatprep.subr.mxu1 %v3867_v56  ;;  %2377 = vrot.lane.b32.xlu1 %v6392_v31, %s7428_s10 }
 0x526   : > { %3853 = vmatprep.mubr.f32.mxu1 %v7496_v30 }
 0x528   : > { %2392 = vrot.lane.b32.xlu0 %v6395_v45, %s7429_s13 }
 0x529   : > { %2390 = vrot.lane.b32.xlu1 %v6392_v31, %s7429_s13 }
 0x52b   : > { %3855 = vmatmul.mubr.f32.vlgmr.msra.gmra.mrb[2].mxu1 %v7498_v39 }
 0x52c   : > { %3870 = vmatpush1.msra.mxu1 %v3869_v20  ;;  %2405 = vrot.lane.b32.xlu0 %v6395_v45, %s7430_s30 }
 0x52d   : > { %3950 = vmatprep.subr.mxu1 %v3949_v0  ;;  %2403 = vrot.lane.b32.xlu1 %v6392_v31, %s7430_s30 }
 0x52e   : > { %3933 = vmatprep.mubr.f32.mxu1 %v7496_v30 }
 0x530   : > { %2418 = vrot.lane.b32.xlu0 %v6395_v45, %s7431_s12 }
 0x531   : > { %2416 = vrot.lane.b32.xlu1 %v6392_v31, %s7431_s12 }
 0x533   : > { %3939 = vmatmul.mubr.f32.vlgmr.msra.gmra.mrb[2].mxu1 %v7501_v60  ;;  %v6614_v60 = vld [vmem:[#allocation7 + $0x48] sm:$0xff] }
 0x534   : > { %3956 = vmatpush1.msra.mxu1 %v3955_v11  ;;  %2431 = vrot.lane.b32.xlu0 %v6395_v45, %s7432_s14  ;;  %v6612_v11 = vld [vmem:[#allocation7 + $0x40] sm:$0xff] }
 0x535   : > { %4029 = vmatprep.subr.mxu1 %v3946_v40  ;;  %2429 = vrot.lane.b32.xlu1 %v6392_v31, %s7432_s14  ;;  %v6600_v40 = vld [vmem:[#allocation7 + $0x38] sm:$0xff] }
 0x536   : > { %4019 = vmatprep.mubr.f32.mxu1 %v7496_v30 }
 0x538   : > { %2444 = vrot.lane.b32.xlu0 %v6395_v45, %s7433_s16 }
 0x539   : > { %2442 = vrot.lane.b32.xlu1 %v6392_v31, %s7433_s16 }
 0x53b   : > { %4021 = vmatmul.mubr.f32.vlgmr.msra.gmra.mrb[2].mxu1 %v7502_v5 }
 0x53c   : > { %4032 = vmatpush1.msra.mxu1 %v3952_v50  ;;  %2457 = vrot.lane.b32.xlu0 %v6395_v45, %s7434_s18 }
 0x53d   : > { %4105 = vmatprep.subr.mxu1 %v3867_v56  ;;  %2455 = vrot.lane.b32.xlu1 %v6392_v31, %s7434_s18 }
 0x53e   : > { %4095 = vmatprep.mubr.f32.mxu1 %v7496_v30 }
 0x540   : > { %2470 = vrot.lane.b32.xlu0 %v6395_v45, %s7435_s0 }
 0x541   : > { %2468 = vrot.lane.b32.xlu1 %v6392_v31, %s7435_s0 }
 0x543   : > { %4098 = vmatmul.mubr.f32.vlgmr.msra.gmra.mrb[2].mxu1 %v7503_v37 }
 0x544   : > { %4107 = vmatpush1.msra.mxu1 %v3869_v20  ;;  %2483 = vrot.lane.b32.xlu0 %v6395_v45, %s7436_s1 }
 0x545   : > { %4183 = vmatprep.subr.mxu1 %v3947_v24  ;;  %2481 = vrot.lane.b32.xlu1 %v6392_v31, %s7436_s1 }
 0x546   : > { %4170 = vmatprep.mubr.f32.mxu1 %v7496_v30 }
 0x548   : > { %2494 = vrot.lane.b32.xlu0 %v6392_v31, %s7437_s2 }
 0x549   : > { %2509 = vperm.xlu1 %5001, %v308_v46  }
 0x54b   : > { %4174 = vmatmul.mubr.f32.vlgmr.msra.gmra.mrb[2].mxu1 %v7504_v48 }
 0x54c   : > { %4187 = vmatpush1.msra.mxu1 %v3953_v35  ;;  %4250 = vmatprep.mubr.f32.mxu1 %v7496_v30 }
 0x54d   : > { %4259 = vmatprep.subr.mxu1 %v3867_v56  ;;  %2496 = vrot.lane.b32.xlu1 %v6395_v45, %s7437_s2 }
 0x553   : > { %4252 = vmatmul.mubr.f32.vlgmr.msra.gmra.mrb[2].mxu1 %v7502_v5 }
 0x554   : > { %4261 = vmatpush1.msra.mxu1 %v3869_v20  ;;  %4324 = vmatprep.mubr.f32.mxu1 %v7496_v30 }
 0x55b   : > { %4326 = vmatmul.mubr.f32.vlgmr.msra.gmra.mrb[2].mxu1 %v7502_v5 }
 0x55e   : > { %v2194_v32 = vpop.permute.xlu0 %2193  ;;  %v2192_v42 = vpop.permute.xlu1 %2191 }
 0x55f   : > { %v2195_v38 = vsel %vm831_vm5, %v2192_v42, %v2194_v32  ;;  %v2196_v30 = vsel %vm831_vm5, %v2194_v32, %v2192_v42 }
 0x560   : > { %v2199_v1 = vmul.f32 %v6578_v4, %v2196_v30  ;;  %v2200_v35 = vmul.f32 %v6580_v49, %v2195_v38  ;;  %v6636_v38 = vld [vmem:[#allocation7 + $0x60] sm:$0xff]  ;;  %v6638_v30 = vld [vmem:[#allocation7 + $0x68] sm:$0xff] }
 0x562   : > { %v2204_v55 = vpop.permute.xlu0 %2203  ;;  %v2202_v26 = vpop.permute.xlu1 %2201 }
 0x563   : > { %v2205_v58 = vsel %vm844_vm3, %v2202_v26, %v2204_v55  ;;  %v2206_v2 = vsel %vm844_vm3, %v2204_v55, %v2202_v26  ;;  %v6622_v55 = vld [vmem:[#allocation7 + $0x50] sm:$0xff]  ;;  %v6624_v26 = vld [vmem:[#allocation7 + $0x58] sm:$0xff] }
 0x564   : > { %v2210_v44 = vmul.f32 %v6568_v21, %v2206_v2  ;;  %v2211_v47 = vmul.f32 %v6570_v22, %v2205_v58 }
 0x566   : > { %v2217_v29 = vpop.permute.xlu0 %2216  ;;  %v2215_v17 = vpop.permute.xlu1 %2214  ;;  %v2212_v46 = vadd.f32 %v2210_v44, %v2199_v1  ;;  %v2213_v48 = vadd.f32 %v2211_v47, %v2200_v35 }
 0x567   : > { %v2218_v39 = vsel %vm860_vm4, %v2215_v17, %v2217_v29  ;;  %v2219_v13 = vsel %vm860_vm4, %v2217_v29, %v2215_v17 }
 0x568   : > { %v2223_v0 = vmul.f32 %v6586_v18, %v2219_v13  ;;  %v2224_v19 = vmul.f32 %v6588_v8, %v2218_v39 }
 0x56a   : > { %v2230_v23 = vpop.permute.xlu0 %2229  ;;  %v2228_v27 = vpop.permute.xlu1 %2227 }
 0x56b   : > { %v2231_v20 = vsel %vm876_vm6, %v2228_v27, %v2230_v23  ;;  %v2232_v24 = vsel %vm876_vm6, %v2230_v23, %v2228_v27  ;;  %v2225_v23 = vadd.f32 %v2223_v0, %v2212_v46  ;;  %v2226_v27 = vadd.f32 %v2224_v19, %v2213_v48 }
 0x56c   : > { %v2236_v32 = vmul.f32 %v6598_v59, %v2232_v24  ;;  %v2237_v42 = vmul.f32 %v6600_v40, %v2231_v20  ;;  %v6650_v20 = vld [vmem:[#allocation7 + $0x70] sm:$0xff]  ;;  %v6652_v24 = vld [vmem:[#allocation7 + $0x78] sm:$0xff] }
 0x56e   : > { %v2243_v52 = vpop.permute.xlu0 %2242  ;;  %v2241_v53 = vpop.permute.xlu1 %2240  ;;  %v2239_v13 = vadd.f32 %v2237_v42, %v2226_v27  ;;  %v6684_v27 = vld [vmem:[#allocation7 + $0x98] sm:$0xff] }
 0x56f   : > { %v2244_v5 = vsel %vm892_vm7, %v2241_v53, %v2243_v52  ;;  %v2245_v37 = vsel %vm892_vm7, %v2243_v52, %v2241_v53  ;;  %7505 = vst [vmem:[#allocation24_spill] sm:$0xff] %v6684_v27 }
 0x570   : > { %v2249_v52 = vmul.f32 %v6612_v11, %v2245_v37  ;;  %v2250_v53 = vmul.f32 %v6614_v60, %v2244_v5  ;;  %v6664_v5 = vld [vmem:[#allocation7 + $0x80] sm:$0xff]  ;;  %v6666_v37 = vld [vmem:[#allocation7 + $0x88] sm:$0xff] }
 0x572   : > { %v2256_v6 = vpop.permute.xlu0 %2255  ;;  %v2254_v7 = vpop.permute.xlu1 %2253  ;;  %v2252_v35 = vadd.f32 %v2250_v53, %v2239_v13  ;;  %v6698_v13 = vld [vmem:[#allocation7 + $0xa8] sm:$0xff] }
 0x573   : > { %v2257_v29 = vsel %vm908_vm8, %v2254_v7, %v2256_v6  ;;  %v2258_v17 = vsel %vm908_vm8, %v2256_v6, %v2254_v7  ;;  %v2238_v7 = vadd.f32 %v2236_v32, %v2225_v23  ;;  %v6682_v23 = vld [vmem:[#allocation7 + $0x90] sm:$0xff] }
 0x574   : > { %v2262_v44 = vmul.f32 %v6622_v55, %v2258_v17  ;;  %v2263_v47 = vmul.f32 %v6624_v26, %v2257_v29 }
 0x576   : > { %v6534_v3 = vpop.permute.xlu0 %2268  ;;  %v6536_v61 = vpop.permute.xlu1 %2266  ;;  %v2265_v48 = vadd.f32 %v2263_v47, %v2252_v35  ;;  %v6712_v35 = vld [vmem:[#allocation7 + $0xb8] sm:$0xff] }
 0x577   : > { %v2270_v39 = vsel %vm924_vm9, %v6536_v61, %v6534_v3  ;;  %v2271_v6 = vsel %vm924_vm9, %v6534_v3, %v6536_v61  ;;  %v2251_v61 = vadd.f32 %v2249_v52, %v2238_v7  ;;  %v6696_v7 = vld [vmem:[#allocation7 + $0xa0] sm:$0xff] }
 0x578   : > { %v2275_v0 = vmul.f32 %v6636_v38, %v2271_v6  ;;  %v2276_v19 = vmul.f32 %v6638_v30, %v2270_v39 }
 0x57a   : > { %v6538_v33 = vpop.permute.xlu0 %2281  ;;  %v6540_v36 = vpop.permute.xlu1 %2279  ;;  %v2278_v53 = vadd.f32 %v2276_v19, %v2265_v48 }
 0x57b   : > { %v2283_v1 = vsel %vm940_vm10, %v6540_v36, %v6538_v33  ;;  %v2284_v3 = vsel %vm940_vm10, %v6538_v33, %v6540_v36  ;;  %v2264_v36 = vadd.f32 %v2262_v44, %v2251_v61  ;;  %v6710_v61 = vld [vmem:[#allocation7 + $0xb0] sm:$0xff] }
 0x57c   : > { %v2288_v32 = vmul.f32 %v6650_v20, %v2284_v3  ;;  %v2289_v42 = vmul.f32 %v6652_v24, %v2283_v1 }
 0x57e   : > { %v6542_v62 = vpop.permute.xlu0 %2294  ;;  %v2291_v47 = vadd.f32 %v2289_v42, %v2278_v53 }
 0x57f   : > { %v6544_v43 = vpop.permute.xlu1 %2292 }
 0x580   : > { %v2296_v46 = vsel %vm956_vm11, %v6544_v43, %v6542_v62  ;;  %v2297_v33 = vsel %vm956_vm11, %v6542_v62, %v6544_v43  ;;  %v2277_v43 = vadd.f32 %v2275_v0, %v2264_v36 }
 0x581   : > { %v2301_v39 = vmul.f32 %v6664_v5, %v2297_v33  ;;  %v2302_v6 = vmul.f32 %v6666_v37, %v2296_v46 }
 0x582   : > { %v6546_v63 = vpop.permute.xlu0 %2307 }
 0x583   : > { %v6548_v54 = vpop.permute.xlu1 %2305  ;;  %v2304_v19 = vadd.f32 %v2302_v6, %v2291_v47 }
 0x584   : > { %v2309_v52 = vsel %vm7506_vm2, %v6548_v54, %v6546_v63  ;;  %v2310_v62 = vsel %vm7507_vm12, %v6546_v63, %v6548_v54  ;;  %v2290_v54 = vadd.f32 %v2288_v32, %v2277_v43  ;;  %vm7511_vm2 = vmmov %vm7510_vm0  ;;  %vm7512_vm12 = vcmp.lt.s32.totalorder %v5678_v41, 127 }
 0x585   : > { %v2314_v1 = vmul.f32 %v6682_v23, %v2310_v62  ;;  %v2315_v3 = vmul.f32 %v6684_v27, %v2309_v52  ;;  %v6730_v27 = vld [vmem:[#allocation7 + $0xc0] sm:$0xff] }
 0x586   : > { %v6550_v25 = vpop.permute.xlu0 %2320 }
 0x587   : > { %v6552_v57 = vpop.permute.xlu1 %2318  ;;  %v2317_v42 = vadd.f32 %v2315_v3, %v2304_v19 }
 0x588   : > { %v2322_v44 = vsel %vm7508_vm1, %v6552_v57, %v6550_v25  ;;  %v2323_v63 = vsel %vm7509_vm13, %v6550_v25, %v6552_v57  ;;  %v2303_v57 = vadd.f32 %v2301_v39, %v2290_v54  ;;  %v6736_v54 = vld [vmem:[#allocation7 + $0xd8] sm:$0xff]  ;;  %vm7513_vm1 = vmmov %vm7512_vm12  ;;  %vm7514_vm13 = vcmp.lt.s32.totalorder %v5678_v41, 126 }
 0x589   : > { %v2327_v46 = vmul.f32 %v6696_v7, %v2323_v63  ;;  %v2328_v33 = vmul.f32 %v6698_v13, %v2322_v44  ;;  %v6734_v63 = vld [vmem:[#allocation7 + $0xd0] sm:$0xff] }
 0x58a   : > { %v6554_v16 = vpop.permute.xlu0 %2333  ;;  %v2316_v32 = vadd.f32 %v2314_v1, %v2303_v57  ;;  %v6752_v57 = vld [vmem:[#allocation7 + $0xe8] sm:$0xff] }
 0x58b   : > { %v6556_v34 = vpop.permute.xlu1 %2331  ;;  %v2330_v53 = vadd.f32 %v2328_v33, %v2317_v42  ;;  %v6764_v33 = vld [vmem:[#allocation7 + $0xf0] sm:$0xff] }
 0x58c   : > { %v2335_v0 = vsel %vm7510_vm0, %v6556_v34, %v6554_v16  ;;  %v2336_v25 = vsel %vm7511_vm2, %v6554_v16, %v6556_v34  ;;  %v2329_v43 = vadd.f32 %v2327_v46, %v2316_v32  ;;  %v6732_v16 = vld [vmem:[#allocation7 + $0xc8] sm:$0xff]  ;;  %vm7515_vm0 = vmmov %vm7514_vm13  ;;  %v6766_v32 = vld [vmem:[#allocation7 + $0xf8] sm:$0xff]  ;;  %vm7517_vm2 = vcmp.lt.s32.totalorder %v5678_v41, 114 }
 0x58d   : > { %v2340_v52 = vmul.f32 %v6710_v61, %v2336_v25  ;;  %v2341_v62 = vmul.f32 %v6712_v35, %v2335_v0  ;;  %v2348_v3 = vmul.f32 %v6395_v45, %v6732_v16  ;;  %v2347_v0 = vmul.f32 %v6392_v31, %v6730_v27  ;;  %v6750_v25 = vld [vmem:[#allocation7 + $0xe0] sm:$0xff]  ;;  %7516 = vst [vmem:[#allocation26_spill] sm:$0xff] %v6766_v32 }
 0x58e   : > { %v6558_v9 = vpop.permute.xlu0 %2353 }
 0x58f   : > { %v6560_v28 = vpop.permute.xlu1 %2351  ;;  %v2342_v34 = vadd.f32 %v2340_v52, %v2329_v43  ;;  %v2343_v39 = vadd.f32 %v2341_v62, %v2330_v53  ;;  %v6778_v53 = vld [vmem:[#allocation7 + $0x100] sm:$0xff] }
 0x590   : > { %v2355_v47 = vsel %vm7512_vm12, %v6560_v28, %v6558_v9  ;;  %v2356_v1 = vsel %vm7513_vm1, %v6558_v9, %v6560_v28  ;;  %vm7518_vm12 = vmmov %vm7517_vm2  ;;  %7519 = vst [vmem:[#allocation25_spill] sm:$0xff] %v6778_v53  ;;  %vm7521_vm1 = vcmp.lt.s32.totalorder %v5678_v41, 113 }
 0x591   : > { %v2350_v28 = vadd.f32 %v2348_v3, %v2343_v39  ;;  %v2349_v46 = vadd.f32 %v2347_v0, %v2342_v34  ;;  %v2360_v45 = vmul.f32 %v6734_v63, %v2355_v47  ;;  %v2361_v31 = vmul.f32 %v6736_v54, %v2356_v1  ;;  %v6780_v34 = vld [vmem:[#allocation7 + $0x108] sm:$0xff]  ;;  %v6792_v0 = vld [vmem:[#allocation7 + $0x110] sm:$0xff] }
 0x592   : > { %v6562_v51 = vpop.permute.xlu0 %2366  ;;  %7520 = vst [vmem:[#allocation27_spill] sm:$0xff] %v6780_v34  ;;  %7523 = vst [vmem:[#allocation28_spill] sm:$0xff] %v6792_v0 }
 0x593   : > { %v6564_v10 = vpop.permute.xlu1 %2364  ;;  %v2363_v47 = vadd.f32 %v2361_v31, %v2350_v28  ;;  %v6806_v31 = vld [vmem:[#allocation7 + $0x120] sm:$0xff] }
 0x594   : > { %v2368_v19 = vsel %vm7514_vm13, %v6564_v10, %v6562_v51  ;;  %v2369_v9 = vsel %vm7515_vm0, %v6562_v51, %v6564_v10  ;;  %vm7522_vm13 = vmmov %vm7521_vm1  ;;  %vm7525_vm0 = vcmp.lt.s32.totalorder %v5678_v41, 112  ;;  %7527 = vst [vmem:[#allocation30_spill] sm:$0xff] %v6806_v31 }
 0x595   : > { %v2373_v10 = vmul.f32 %v6750_v25, %v2368_v19  ;;  %v2374_v52 = vmul.f32 %v6752_v57, %v2369_v9  ;;  %v6794_v19 = vld [vmem:[#allocation7 + $0x118] sm:$0xff] }
 0x596   : > { %v6566_v14 = vpop.permute.xlu0 %2379  ;;  %7524 = vst [vmem:[#allocation29_spill] sm:$0xff] %v6794_v19 }
 0x597   : > { %v6576_v15 = vpop.permute.xlu1 %2377  ;;  %v2376_v28 = vadd.f32 %v2374_v52, %v2363_v47  ;;  %v6820_v47 = vld [vmem:[#allocation7 + $0x130] sm:$0xff] }
 0x598   : > { %v2381_v42 = vsel %vm7517_vm2, %v6576_v15, %v6566_v14  ;;  %v2382_v51 = vsel %vm7518_vm12, %v6566_v14, %v6576_v15  ;;  %v2362_v15 = vadd.f32 %v2360_v45, %v2349_v46  ;;  %vm7526_vm2 = vmmov %vm7525_vm0  ;;  %vm7529_vm12 = vcmp.lt.s32.totalorder %v5678_v41, 111  ;;  %7531 = vst [vmem:[#allocation32_spill] sm:$0xff] %v6820_v47 }
 0x599   : > { %v2386_v1 = vmul.f32 %v6764_v33, %v2381_v42  ;;  %v2387_v3 = vmul.f32 %v6766_v32, %v2382_v51  ;;  %v6808_v42 = vld [vmem:[#allocation7 + $0x128] sm:$0xff] }
 0x59a   : > { %v6596_v56 = vpop.permute.xlu0 %2392  ;;  %7528 = vst [vmem:[#allocation31_spill] sm:$0xff] %v6808_v42 }
 0x59b   : > { %v6606_v50 = vpop.permute.xlu1 %2390 }
 0x59c   : > { %v2394_v39 = vsel %vm7521_vm1, %v6606_v50, %v6596_v56  ;;  %v2395_v14 = vsel %vm7522_vm13, %v6596_v56, %v6606_v50  ;;  %v2375_v50 = vadd.f32 %v2373_v10, %v2362_v15  ;;  %vm7530_vm1 = vmmov %vm7529_vm12  ;;  %v2389_v10 = vadd.f32 %v2387_v3, %v2376_v28 }
 0x59d   : > { %v2399_v46 = vmul.f32 %v6778_v53, %v2394_v39  ;;  %v2400_v45 = vmul.f32 %v6780_v34, %v2395_v14  ;;  %v6822_v34 = vld [vmem:[#allocation7 + $0x138] sm:$0xff]  ;;  %vm7533_vm13 = vcmp.lt.s32.totalorder %v5678_v41, 110 }
 0x59e   : > { %v6632_v58 = vpop.permute.xlu0 %2405  ;;  %7532 = vst [vmem:[#allocation33_spill] sm:$0xff] %v6822_v34 }
 0x59f   : > { %v6634_v2 = vpop.permute.xlu1 %2403 }
 0x5a0   : > { %v2407_v9 = vsel %vm7525_vm0, %v6634_v2, %v6632_v58  ;;  %v2408_v56 = vsel %vm7526_vm2, %v6632_v58, %v6634_v2  ;;  %v2388_v2 = vadd.f32 %v2386_v1, %v2375_v50  ;;  %vm7534_vm0 = vmmov %vm7533_vm13  ;;  %v2402_v1 = vadd.f32 %v2400_v45, %v2389_v10  ;;  %v6836_v50 = vld [vmem:[#allocation7 + $0x148] sm:$0xff]  ;;  %v6846_v45 = vld [vmem:[#allocation7 + $0x158] sm:$0xff] }
 0x5a1   : > { %v2412_v52 = vmul.f32 %v6792_v0, %v2407_v9  ;;  %v2413_v39 = vmul.f32 %v6794_v19, %v2408_v56  ;;  %v6834_v56 = vld [vmem:[#allocation7 + $0x140] sm:$0xff]  ;;  %7536 = vst [vmem:[#allocation35_spill] sm:$0xff] %v6836_v50  ;;  %vm7537_vm2 = vcmp.lt.s32.totalorder %v5678_v41, 98  ;;  %7540 = vst [vmem:[#allocation37_spill] sm:$0xff] %v6846_v45 }
 0x5a2   : > { %v6678_v29 = vpop.permute.xlu0 %2418  ;;  %7535 = vst [vmem:[#allocation34_spill] sm:$0xff] %v6834_v56 }
 0x5a3   : > { %v6680_v17 = vpop.permute.xlu1 %2416  ;;  %v2415_v32 = vadd.f32 %v2413_v39, %v2402_v1  ;;  %v6854_v39 = vld [vmem:[#allocation7 + $0x160] sm:$0xff] }
 0x5a4   : > { %v2420_v51 = vsel %vm7529_vm12, %v6680_v17, %v6678_v29  ;;  %v2421_v58 = vsel %vm7530_vm1, %v6678_v29, %v6680_v17  ;;  %v2401_v17 = vadd.f32 %v2399_v46, %v2388_v2  ;;  %vm7538_vm12 = vmmov %vm7537_vm2  ;;  %v6844_v46 = vld [vmem:[#allocation7 + $0x150] sm:$0xff]  ;;  %vm7541_vm1 = vcmp.lt.s32.totalorder %v5678_v41, 97  ;;  %7543 = vst [vmem:[#allocation38_spill] sm:$0xff] %v6854_v39 }
 0x5a5   : > { %v2425_v3 = vmul.f32 %v6806_v31, %v2420_v51  ;;  %v2426_v9 = vmul.f32 %v6808_v42, %v2421_v58  ;;  %7539 = vst [vmem:[#allocation36_spill] sm:$0xff] %v6844_v46 }
 0x5a6   : > { %v6724_v36 = vpop.permute.xlu0 %2431  ;;  %v2414_v0 = vadd.f32 %v2412_v52, %v2401_v17 }
 0x5a7   : > { %v6726_v48 = vpop.permute.xlu1 %2429  ;;  %v2428_v10 = vadd.f32 %v2426_v9, %v2415_v32 }
 0x5a8   : > { %v2433_v53 = vsel %vm7533_vm13, %v6726_v48, %v6724_v36  ;;  %v2434_v29 = vsel %vm7534_vm0, %v6724_v36, %v6726_v48  ;;  %vm7542_vm13 = vmmov %vm7541_vm1  ;;  %v2427_v2 = vadd.f32 %v2425_v3, %v2414_v0  ;;  %vm7545_vm0 = vcmp.lt.s32.totalorder %v5678_v41, 96  ;;  %v6864_v0 = vld [vmem:[#allocation7 + $0x170] sm:$0xff] }
 0x5a9   : > { %v2438_v36 = vmul.f32 %v6820_v47, %v2433_v53  ;;  %v2439_v48 = vmul.f32 %v6822_v34, %v2434_v29  ;;  %v6856_v29 = vld [vmem:[#allocation7 + $0x168] sm:$0xff]  ;;  %7547 = vst [vmem:[#allocation40_spill] sm:$0xff] %v6864_v0 }
 0x5aa   : > { %v2445_v6 = vpop.permute.xlu0 %2444  ;;  %7544 = vst [vmem:[#allocation39_spill] sm:$0xff] %v6856_v29 }
 0x5ab   : > { %v2443_v44 = vpop.permute.xlu1 %2442  ;;  %v2440_v34 = vadd.f32 %v2438_v36, %v2427_v2 }
 0x5ac   : > { %v2446_v28 = vsel %vm7537_vm2, %v2443_v44, %v2445_v6  ;;  %v2447_v19 = vsel %vm7538_vm12, %v2445_v6, %v2443_v44  ;;  %vm7546_vm2 = vmmov %vm7545_vm0 }
 0x5ad   : > { %v2451_v6 = vmul.f32 %v6834_v56, %v2446_v28  ;;  %v2452_v44 = vmul.f32 %v6836_v50, %v2447_v19  ;;  %v6866_v19 = vld [vmem:[#allocation7 + $0x178] sm:$0xff] }
 0x5ae   : > { %v2458_v62 = vpop.permute.xlu0 %2457  ;;  %7548 = vst [vmem:[#allocation41_spill] sm:$0xff] %v6866_v19 }
 0x5af   : > { %v2456_v43 = vpop.permute.xlu1 %2455  ;;  %v2453_v28 = vadd.f32 %v2451_v6, %v2440_v34 }
 0x5b0   : > { %v2459_v51 = vsel %vm7541_vm1, %v2456_v43, %v2458_v62  ;;  %v2460_v58 = vsel %vm7542_vm13, %v2458_v62, %v2456_v43  ;;  %v2441_v62 = vadd.f32 %v2439_v48, %v2428_v10  ;;  %v6878_v10 = vld [vmem:[#allocation7 + $0x180] sm:$0xff]  ;;  %vm7565_vm1 = vcmp.lt.s32.totalorder %v5678_v41, 114 }
 0x5b1   : > { %v2464_v32 = vmul.f32 %v6844_v46, %v2459_v51  ;;  %v2465_v43 = vmul.f32 %v6846_v45, %v2460_v58  ;;  %7550 = vst [vmem:[#allocation44_spill] sm:$0xff] %v6878_v10  ;;  %v6880_v45 = vld [vmem:[#allocation7 + $0x188] sm:$0xff]  ;;  %vm7566_vm13 = vmmov %vm7565_vm1 }
 0x5b2   : > { %v2471_v14 = vpop.permute.xlu0 %2470  ;;  %v2454_v50 = vadd.f32 %v2452_v44, %v2441_v62  ;;  %7551 = vst [vmem:[#allocation43_spill] sm:$0xff] %v6880_v45 }
 0x5b3   : > { %v2469_v15 = vpop.permute.xlu1 %2468  ;;  %v2466_v48 = vadd.f32 %v2464_v32, %v2453_v28  ;;  %v2521_v28 = vld [vmem:[%s5471_s20 + $0x18] sm:$0xff] }
 0x5b4   : > { %v2472_v17 = vsel %vm7545_vm0, %v2469_v15, %v2471_v14  ;;  %v2473_v1 = vsel %vm7546_vm2, %v2471_v14, %v2469_v15  ;;  %v2467_v51 = vadd.f32 %v2465_v43, %v2454_v50  ;;  %vm7567_vm0 = vcmp.lt.s32.totalorder %v5678_v41, 113 }
 0x5b5   : > { %v2477_v14 = vmul.f32 %v6854_v39, %v2472_v17  ;;  %v2478_v15 = vmul.f32 %v6856_v29, %v2473_v1  ;;  %vm7568_vm2 = vmmov %vm7567_vm0 }
 0x5b6   : > { %v2484_v52 = vpop.permute.xlu0 %2483 }
 0x5b7   : > { %v2482_v53 = vpop.permute.xlu1 %2481  ;;  %v2479_v34 = vadd.f32 %v2477_v14, %v2466_v48  ;;  %v2480_v6 = vadd.f32 %v2478_v15, %v2467_v51 }
 0x5b8   : > { %v2485_v3 = vsel %vm1189_vm14, %v2482_v53, %v2484_v52  ;;  %v2486_v9 = vsel %vm1189_vm14, %v2484_v52, %v2482_v53 }
 0x5b9   : > { %v2490_v58 = vmul.f32 %v6864_v0, %v2485_v3  ;;  %v2491_v2 = vmul.f32 %v6866_v19, %v2486_v9  ;;  %v2520_v9 = vld [vmem:[%s5471_s20 + $0x10] sm:$0xff] }
 0x5ba   : > { %v2495_v44 = vpop.permute.xlu0 %2494 }
 0x5bb   : > { %v2492_v17 = vadd.f32 %v2490_v58, %v2479_v34  ;;  %v2493_v1 = vadd.f32 %v2491_v2, %v2480_v6  ;;  %v4764_v2 = vld [vmem:[%s5471_s20 + $0x20] sm:$0xff] }
 0x5c8   : > { %v6874_v36 = vpop.permute.xlu1 %2509 }
 0x5c9   : > { %7549 = vst [vmem:[#allocation42_spill] sm:$0xff] %v6874_v36 }
 0x5cc   : > { %v2497_v52 = vpop.permute.xlu1 %2496 }
 0x5cd   : > { %v2498_v53 = vsel %vm1205_vm15, %v2495_v44, %v2497_v52  ;;  %v2499_v50 = vsel %vm1205_vm15, %v2497_v52, %v2495_v44  ;;  %v4765_v44 = vld [vmem:[%s5471_s20 + $0x28] sm:$0xff] }
 0x5ce   : > { %v2503_v62 = vmul.f32 %v6878_v10, %v2498_v53  ;;  %v2504_v32 = vmul.f32 %v6880_v45, %v2499_v50 }
 0x5d0   : > { %v2505_v43 = vadd.f32 %v2503_v62, %v2492_v17  ;;  %v2506_v3 = vadd.f32 %v2504_v32, %v2493_v1 }
 0x5d2   : > { %v2512_v14 = vadd.f32 %v6874_v36, %v2505_v43  ;;  %v2513_v15 = vadd.f32 %v6874_v36, %v2506_v3 }
 0x5d4   : > { %v2522_v48 = vadd.f32 %v2520_v9, %v2512_v14  ;;  %v2523_v51 = vadd.f32 %v2521_v28, %v2513_v15 }
 0x5d6   : > { %2524 = vst [vmem:[%s6406_s11 + $0x10] sm:$0xff] %v2522_v48  ;;  %2525 = vst [vmem:[%s6406_s11 + $0x18] sm:$0xff] %v2523_v51 }
 0x62e   : > { %v4327_v58 = vpop.f32.mrb[2].mxu1 }
 0x62f   : > { %v6896_v34 = vadd.f32 %v4327_v58, %v6384_v12  ;;  %v4329_v6 = vpop.f32.mrb[3].mxu1 }
 0x630   : > { %v6900_v52 = vadd.f32 %v4329_v6, %v6384_v12 }
 0x631   : > { %4576 = vrot.lane.b32.xlu1 %v6896_v34, %s7434_s18  ;;  %4332 = vrot.lane.b32.xlu0 %v6896_v34, %s7487_s3  ;;  %v4628_v53 = vadd.f32 %v6896_v34, %v4764_v2 }
 0x632   : > { %v4629_v50 = vadd.f32 %v6900_v52, %v4765_v44 }
 0x633   : > { %4766 = vst [vmem:[%s6406_s11 + $0x20] sm:$0xff] %v4628_v53 }
 0x634   : > { %4767 = vst [vmem:[%s6406_s11 + $0x28] sm:$0xff] %v4629_v50 }
 0x635   : > { %4588 = vrot.lane.b32.xlu1 %v6896_v34, %s7435_s0  ;;  %4342 = vrot.lane.b32.xlu0 %v6896_v34, %s7489_s23 }
 0x639   : > { %4334 = vrot.lane.b32.xlu1 %v6900_v52, %s7487_s3  ;;  %4354 = vrot.lane.b32.xlu0 %v6896_v34, %s7490_s22 }
 0x63d   : > { %4344 = vrot.lane.b32.xlu1 %v6900_v52, %s7489_s23  ;;  %4366 = vrot.lane.b32.xlu0 %v6896_v34, %s7491_s4  ;;  %s7604_s23 = sld [smem:[#allocation60_spill]] }
 0x641   : > { %4356 = vrot.lane.b32.xlu1 %v6900_v52, %s7490_s22  ;;  %4378 = vrot.lane.b32.xlu0 %v6896_v34, %s7492_s26 }
 0x645   : > { %4368 = vrot.lane.b32.xlu1 %v6900_v52, %s7491_s4  ;;  %4390 = vrot.lane.b32.xlu0 %v6896_v34, %s7493_s24 }
 0x649   : > { %4380 = vrot.lane.b32.xlu1 %v6900_v52, %s7492_s26  ;;  %4402 = vrot.lane.b32.xlu0 %v6896_v34, %s7495_s28 }
 0x64d   : > { %4392 = vrot.lane.b32.xlu1 %v6900_v52, %s7493_s24  ;;  %4414 = vrot.lane.b32.xlu0 %v6896_v34, %s7497_s21 }
 0x651   : > { %4404 = vrot.lane.b32.xlu1 %v6900_v52, %s7495_s28  ;;  %4426 = vrot.lane.b32.xlu0 %v6896_v34, %s7422_s17  ;;  %s7605_s28 = smov %s7604_s23 }
 0x655   : > { %4416 = vrot.lane.b32.xlu1 %v6900_v52, %s7497_s21  ;;  %4438 = vrot.lane.b32.xlu0 %v6896_v34, %s7423_s19 }
 0x659   : > { %4428 = vrot.lane.b32.xlu1 %v6900_v52, %s7422_s17  ;;  %4450 = vrot.lane.b32.xlu0 %v6896_v34, %s7424_s7 }
 0x65d   : > { %4440 = vrot.lane.b32.xlu1 %v6900_v52, %s7423_s19  ;;  %4462 = vrot.lane.b32.xlu0 %v6896_v34, %s7425_s27 }
 0x661   : > { %4452 = vrot.lane.b32.xlu1 %v6900_v52, %s7424_s7  ;;  %4480 = vrot.lane.b32.xlu0 %v6896_v34, %s7426_s29 }
 0x665   : > { %4464 = vrot.lane.b32.xlu1 %v6900_v52, %s7425_s27  ;;  %4492 = vrot.lane.b32.xlu0 %v6896_v34, %s7427_s15 }
 0x669   : > { %4482 = vrot.lane.b32.xlu1 %v6900_v52, %s7426_s29  ;;  %4504 = vrot.lane.b32.xlu0 %v6896_v34, %s7428_s10 }
 0x66d   : > { %4494 = vrot.lane.b32.xlu1 %v6900_v52, %s7427_s15  ;;  %4516 = vrot.lane.b32.xlu0 %v6896_v34, %s7429_s13 }
 0x671   : > { %4506 = vrot.lane.b32.xlu1 %v6900_v52, %s7428_s10  ;;  %4528 = vrot.lane.b32.xlu0 %v6896_v34, %s7430_s30 }
 0x675   : > { %4518 = vrot.lane.b32.xlu1 %v6900_v52, %s7429_s13  ;;  %4540 = vrot.lane.b32.xlu0 %v6896_v34, %s7431_s12 }
 0x679   : > { %4530 = vrot.lane.b32.xlu1 %v6900_v52, %s7430_s30  ;;  %4552 = vrot.lane.b32.xlu0 %v6896_v34, %s7432_s14 }
 0x67d   : > { %4542 = vrot.lane.b32.xlu1 %v6900_v52, %s7431_s12  ;;  %4564 = vrot.lane.b32.xlu0 %v6896_v34, %s7433_s16 }
 0x681   : > { %4554 = vrot.lane.b32.xlu1 %v6900_v52, %s7432_s14  ;;  %4600 = vrot.lane.b32.xlu0 %v6896_v34, %s7436_s1  ;;  %s5149_s14 = sshll.u32 %s5250_s8, 4  ;;  %s5150_s14 = int_to_ptr.vmem [resolvable:$false] %s5149_s14 }
 0x685   : > { %4566 = vrot.lane.b32.xlu1 %v6900_v52, %s7433_s16  ;;  %4578 = vrot.lane.b32.xlu0 %v6900_v52, %s7434_s18 }
 0x689   : > { %4602 = vrot.lane.b32.xlu1 %v6900_v52, %s7436_s1  ;;  %4590 = vrot.lane.b32.xlu0 %v6900_v52, %s7435_s0  ;;  %s7602_s0 = sld [smem:[#allocation19_spill]]  ;;  %s4781_s1 = sshll.u32 %s5308_s25, 10 }
 0x68a   : > { %s7167_s24 = scalar_lea.hbm %s7604_s23, %s4781_s1  ;;  %s4640_s25 = scalar_lea.sflag [#allocation4], %s5465_s9 }
 0x68d   : > { %4614 = vrot.lane.b32.xlu1 %v6900_v52, %s7437_s2  ;;  %4612 = vrot.lane.b32.xlu0 %v6896_v34, %s7437_s2  ;;  %s4654_s2 = sshll.u32 %s6406_s11, 4  ;;  %s7169_s2 = int_to_ptr.vmem [resolvable:$true] %s4654_s2 }
 0x68e   : > { %s5145_s26 = scalar_lea.vmem %s7169_s2, 1024  ;;  %p5152_p5 = scmp.lt.s32.totalorder %s7169_s2, %s5150_s14 }
 0x68f   : > { %p5146_p11 = scmp.ne.s32.totalorder %s7169_s2, %s5145_s26  ;;  %p7606_p0 = scmp.ne.s32.totalorder %s7602_s0, 0 }
 0x691   : > { %p5147_p1 = pnand %p5146_p11, %p7606_p0 }
 0x693   : > { %p5148_p3 = pneg %p5147_p1 }
 0x6a3   : > { %v7002_v12 = vpop.permute.xlu1 %4576  ;;  %v4333_v17 = vpop.permute.xlu0 %4332 }
 0x6a4   : > { %7552 = vst [vmem:[#allocation46_spill] sm:$0xff] %v7002_v12 }
 0x6a7   : > { %v7004_v1 = vpop.permute.xlu1 %4588  ;;  %v4343_v62 = vpop.permute.xlu0 %4342 }
 0x6a8   : > { %7553 = vst [vmem:[#allocation45_spill] sm:$0xff] %v7004_v1 }
 0x6ab   : > { %v4335_v32 = vpop.permute.xlu1 %4334  ;;  %v4355_v43 = vpop.permute.xlu0 %4354 }
 0x6ac   : > { %v4336_v29 = vsel %vm831_vm5, %v4333_v17, %v4335_v32  ;;  %v4337_v39 = vsel %vm831_vm5, %v4335_v32, %v4333_v17  ;;  %vm7556_vm5 = vcmp.lt.s32.totalorder %v5678_v41, 2 }
 0x6ad   : > { %v4340_v47 = vmul.f32 %v4337_v39, %v6578_v4  ;;  %v4341_v17 = vmul.f32 %v4336_v29, %v6580_v49 }
 0x6af   : > { %v4345_v3 = vpop.permute.xlu1 %4344  ;;  %v4367_v9 = vpop.permute.xlu0 %4366 }
 0x6b0   : > { %v4346_v45 = vsel %vm844_vm3, %v4343_v62, %v4345_v3  ;;  %v4347_v10 = vsel %vm844_vm3, %v4345_v3, %v4343_v62  ;;  %vm7554_vm3 = vcmp.lt.s32.totalorder %v5678_v41, 14 }
 0x6b1   : > { %v4350_v56 = vmul.f32 %v4347_v10, %v6568_v21  ;;  %v4351_v12 = vmul.f32 %v4346_v45, %v6570_v22 }
 0x6b3   : > { %v4357_v28 = vpop.permute.xlu1 %4356  ;;  %v4379_v14 = vpop.permute.xlu0 %4378  ;;  %v4352_v45 = vadd.f32 %v4350_v56, %v4340_v47  ;;  %v4353_v10 = vadd.f32 %v4351_v12, %v4341_v17 }
 0x6b4   : > { %v4358_v1 = vsel %vm860_vm4, %v4355_v43, %v4357_v28  ;;  %v4359_v46 = vsel %vm860_vm4, %v4357_v28, %v4355_v43  ;;  %vm7555_vm4 = vmmov %vm7554_vm3 }
 0x6b5   : > { %v4362_v32 = vmul.f32 %v4359_v46, %v6586_v18  ;;  %v4363_v42 = vmul.f32 %v4358_v1, %v6588_v8 }
 0x6b7   : > { %v4369_v15 = vpop.permute.xlu1 %4368  ;;  %v4391_v48 = vpop.permute.xlu0 %4390  ;;  %v4364_v8 = vadd.f32 %v4362_v32, %v4352_v45  ;;  %v4365_v46 = vadd.f32 %v4363_v42, %v4353_v10 }
 0x6b8   : > { %v4370_v62 = vsel %vm876_vm6, %v4367_v9, %v4369_v15  ;;  %v4371_v3 = vsel %vm876_vm6, %v4369_v15, %v4367_v9  ;;  %vm7557_vm6 = vmmov %vm7556_vm5 }
 0x6b9   : > { %v4374_v9 = vmul.f32 %v4371_v3, %v6598_v59  ;;  %v4375_v4 = vmul.f32 %v4370_v62, %v6600_v40 }
 0x6bb   : > { %v4381_v51 = vpop.permute.xlu1 %4380  ;;  %v4403_v58 = vpop.permute.xlu0 %4402  ;;  %v4376_v40 = vadd.f32 %v4374_v9, %v4364_v8  ;;  %v4377_v56 = vadd.f32 %v4375_v4, %v4365_v46  ;;  %v7558_v9 = vld [vmem:[#allocation24_spill] sm:$0xff] }
 0x6bc   : > { %v4382_v21 = vsel %vm892_vm7, %v4379_v14, %v4381_v51  ;;  %v4383_v22 = vsel %vm892_vm7, %v4381_v51, %v4379_v14  ;;  %vm7559_vm7 = vcmp.lt.s32.totalorder %v5678_v41, 1 }
 0x6bd   : > { %v4386_v39 = vmul.f32 %v4383_v22, %v6612_v11  ;;  %v4387_v29 = vmul.f32 %v4382_v21, %v6614_v60 }
 0x6bf   : > { %v4393_v2 = vpop.permute.xlu1 %4392  ;;  %v4415_v6 = vpop.permute.xlu0 %4414  ;;  %v4388_v60 = vadd.f32 %v4386_v39, %v4376_v40  ;;  %v4389_v15 = vadd.f32 %v4387_v29, %v4377_v56 }
 0x6c0   : > { %v4394_v49 = vsel %vm908_vm8, %v4391_v48, %v4393_v2  ;;  %v4395_v18 = vsel %vm908_vm8, %v4393_v2, %v4391_v48  ;;  %vm7560_vm8 = vmmov %vm7559_vm7 }
 0x6c1   : > { %v4398_v12 = vmul.f32 %v4395_v18, %v6622_v55  ;;  %v4399_v14 = vmul.f32 %v4394_v49, %v6624_v26 }
 0x6c3   : > { %v4405_v44 = vpop.permute.xlu1 %4404  ;;  %v4427_v53 = vpop.permute.xlu0 %4426  ;;  %v4400_v26 = vadd.f32 %v4398_v12, %v4388_v60  ;;  %v4401_v62 = vadd.f32 %v4399_v14, %v4389_v15 }
 0x6c4   : > { %v4406_v47 = vsel %vm924_vm9, %v4403_v58, %v4405_v44  ;;  %v4407_v59 = vsel %vm924_vm9, %v4405_v44, %v4403_v58  ;;  %vm7561_vm9 = vcmp.lt.s32.totalorder %v5678_v41, 127 }
 0x6c5   : > { %v4410_v48 = vmul.f32 %v4407_v59, %v6636_v38  ;;  %v4411_v51 = vmul.f32 %v4406_v47, %v6638_v30 }
 0x6c7   : > { %v4417_v50 = vpop.permute.xlu1 %4416  ;;  %v4439_v36 = vpop.permute.xlu0 %4438  ;;  %v4412_v30 = vadd.f32 %v4410_v48, %v4400_v26  ;;  %v4413_v17 = vadd.f32 %v4411_v51, %v4401_v62  ;;  %v7569_v26 = vld [vmem:[#allocation26_spill] sm:$0xff] }
 0x6c8   : > { %v4418_v42 = vsel %vm940_vm10, %v4415_v6, %v4417_v50  ;;  %v4419_v11 = vsel %vm940_vm10, %v4417_v50, %v4415_v6  ;;  %vm7562_vm10 = vmmov %vm7561_vm9 }
 0x6c9   : > { %v4422_v3 = vmul.f32 %v4419_v11, %v6650_v20  ;;  %v4423_v6 = vmul.f32 %v4418_v42, %v6652_v24 }
 0x6cb   : > { %v4429_v19 = vpop.permute.xlu1 %4428  ;;  %v4451_v0 = vpop.permute.xlu0 %4450  ;;  %v4424_v24 = vadd.f32 %v4422_v3, %v4412_v30  ;;  %v4425_v45 = vadd.f32 %v4423_v6, %v4413_v17  ;;  %v7573_v30 = vld [vmem:[#allocation27_spill] sm:$0xff] }
 0x6cc   : > { %v4430_v44 = vsel %vm956_vm11, %v4427_v53, %v4429_v19  ;;  %v4431_v55 = vsel %vm956_vm11, %v4429_v19, %v4427_v53  ;;  %vm7563_vm11 = vcmp.lt.s32.totalorder %v5678_v41, 126 }
 0x6cd   : > { %v4434_v32 = vmul.f32 %v4431_v55, %v6664_v5  ;;  %v4435_v21 = vmul.f32 %v4430_v44, %v6666_v37  ;;  %vm7564_vm12 = vmmov %vm7563_vm11 }
 0x6cf   : > { %v4441_v31 = vpop.permute.xlu1 %4440  ;;  %v4463_v43 = vpop.permute.xlu0 %4462  ;;  %v4436_v37 = vadd.f32 %v4434_v32, %v4424_v24  ;;  %v4437_v4 = vadd.f32 %v4435_v21, %v4425_v45  ;;  %v7577_v45 = vld [vmem:[#allocation29_spill] sm:$0xff] }
 0x6d0   : > { %v4442_v50 = vsel %vm7554_vm3, %v4439_v36, %v4441_v31  ;;  %v4443_v38 = vsel %vm7555_vm4, %v4441_v31, %v4439_v36  ;;  %vm7570_vm3 = vcmp.lt.s32.totalorder %v5678_v41, 112 }
 0x6d1   : > { %v4446_v10 = vmul.f32 %v4443_v38, %v6682_v23  ;;  %v4447_v31 = vmul.f32 %v4442_v50, %v7558_v9  ;;  %vm7571_vm4 = vmmov %vm7570_vm3  ;;  %v7572_v50 = vld [vmem:[#allocation25_spill] sm:$0xff] }
 0x6d3   : > { %v4453_v1 = vpop.permute.xlu1 %4452  ;;  %v4481_v28 = vpop.permute.xlu0 %4480  ;;  %v4448_v46 = vadd.f32 %v4446_v10, %v4436_v37  ;;  %v4449_v39 = vadd.f32 %v4447_v31, %v4437_v4  ;;  %v7579_v37 = vld [vmem:[#allocation31_spill] sm:$0xff] }
 0x6d4   : > { %v4454_v53 = vsel %vm7556_vm5, %v4451_v0, %v4453_v1  ;;  %v4455_v20 = vsel %vm7557_vm6, %v4453_v1, %v4451_v0  ;;  %vm7574_vm5 = vcmp.lt.s32.totalorder %v5678_v41, 111 }
 0x6d5   : > { %v4458_v49 = vmul.f32 %v4455_v20, %v6696_v7  ;;  %v4459_v18 = vmul.f32 %v4454_v53, %v6698_v13  ;;  %v4477_v13 = vmul.f32 %v6900_v52, %v6732_v16  ;;  %vm7575_vm6 = vmmov %vm7574_vm5  ;;  %v7576_v20 = vld [vmem:[#allocation28_spill] sm:$0xff] }
 0x6d7   : > { %v4465_v2 = vpop.permute.xlu1 %4464  ;;  %v4493_v58 = vpop.permute.xlu0 %4492  ;;  %v4460_v1 = vadd.f32 %v4458_v49, %v4448_v46  ;;  %v4461_v47 = vadd.f32 %v4459_v18, %v4449_v39 }
 0x6d8   : > { %v4466_v36 = vsel %vm7559_vm7, %v4463_v43, %v4465_v2  ;;  %v4467_v5 = vsel %vm7560_vm8, %v4465_v2, %v4463_v43  ;;  %vm7580_vm7 = vcmp.lt.s32.totalorder %v5678_v41, 110 }
 0x6d9   : > { %v4470_v23 = vmul.f32 %v4467_v5, %v6710_v61  ;;  %v4471_v29 = vmul.f32 %v4466_v36, %v6712_v35  ;;  %v4476_v61 = vmul.f32 %v6896_v34, %v6730_v27  ;;  %v7578_v36 = vld [vmem:[#allocation30_spill] sm:$0xff]  ;;  %vm7581_vm8 = vmmov %vm7580_vm7 }
 0x6db   : > { %v4483_v22 = vpop.permute.xlu1 %4482  ;;  %v4505_v19 = vpop.permute.xlu0 %4504  ;;  %v4472_v56 = vadd.f32 %v4470_v23, %v4460_v1  ;;  %v4473_v43 = vadd.f32 %v4471_v29, %v4461_v47  ;;  %v7582_v23 = vld [vmem:[#allocation32_spill] sm:$0xff]  ;;  %v7583_v1 = vld [vmem:[#allocation33_spill] sm:$0xff] }
 0x6dc   : > { %v4484_v12 = vsel %vm7561_vm9, %v4481_v28, %v4483_v22  ;;  %v4485_v7 = vsel %vm7562_vm10, %v4483_v22, %v4481_v28  ;;  %vm7584_vm9 = vcmp.lt.s32.totalorder %v5678_v41, 98 }
 0x6dd   : > { %v4478_v60 = vadd.f32 %v4476_v61, %v4472_v56  ;;  %v4479_v15 = vadd.f32 %v4477_v13, %v4473_v43  ;;  %v4488_v48 = vmul.f32 %v4484_v12, %v6734_v63  ;;  %v4489_v28 = vmul.f32 %v4485_v7, %v6736_v54  ;;  %vm7585_vm10 = vmmov %vm7584_vm9  ;;  %v7586_v13 = vld [vmem:[#allocation46_spill] sm:$0xff] }
 0x6df   : > { %v4495_v8 = vpop.permute.xlu1 %4494  ;;  %v4517_v0 = vpop.permute.xlu0 %4516  ;;  %v4490_v44 = vadd.f32 %v4488_v48, %v4478_v60  ;;  %v4491_v54 = vadd.f32 %v4489_v28, %v4479_v15  ;;  %v7590_v15 = vld [vmem:[#allocation35_spill] sm:$0xff] }
 0x6e0   : > { %v4496_v42 = vsel %vm7563_vm11, %v4493_v58, %v4495_v8  ;;  %v4497_v11 = vsel %vm7564_vm12, %v4495_v8, %v4493_v58  ;;  %vm7587_vm11 = vcmp.lt.s32.totalorder %v5678_v41, 97 }
 0x6e1   : > { %v4500_v34 = vmul.f32 %v4496_v42, %v6750_v25  ;;  %v4501_v52 = vmul.f32 %v4497_v11, %v6752_v57  ;;  %vm7588_vm12 = vmmov %vm7587_vm11  ;;  %v7589_v11 = vld [vmem:[#allocation34_spill] sm:$0xff] }
 0x6e3   : > { %v4507_v59 = vpop.permute.xlu1 %4506  ;;  %v4529_v40 = vpop.permute.xlu0 %4528  ;;  %v4502_v57 = vadd.f32 %v4500_v34, %v4490_v44  ;;  %v4503_v6 = vadd.f32 %v4501_v52, %v4491_v54  ;;  %v7592_v52 = vld [vmem:[#allocation37_spill] sm:$0xff] }
 0x6e4   : > { %v4508_v16 = vsel %vm7565_vm1, %v4505_v19, %v4507_v59  ;;  %v4509_v27 = vsel %vm7566_vm13, %v4507_v59, %v4505_v19  ;;  %v7593_v54 = vld [vmem:[#allocation45_spill] sm:$0xff]  ;;  %vm7594_vm1 = vcmp.lt.s32.totalorder %v5678_v41, 96 }
 0x6e5   : > { %v4512_v55 = vmul.f32 %v4508_v16, %v6764_v33  ;;  %v4513_v62 = vmul.f32 %v4509_v27, %v7569_v26  ;;  %v7591_v27 = vld [vmem:[#allocation36_spill] sm:$0xff]  ;;  %vm7595_vm13 = vmmov %vm7594_vm1 }
 0x6e7   : > { %v4519_v14 = vpop.permute.xlu1 %4518  ;;  %v4541_v35 = vpop.permute.xlu0 %4540  ;;  %v4514_v19 = vadd.f32 %v4512_v55, %v4502_v57  ;;  %v4515_v53 = vadd.f32 %v4513_v62, %v4503_v6  ;;  %v7597_v6 = vld [vmem:[#allocation39_spill] sm:$0xff] }
 0x6e8   : > { %v4520_v58 = vsel %vm7567_vm0, %v4517_v0, %v4519_v14  ;;  %v4521_v63 = vsel %vm7568_vm2, %v4519_v14, %v4517_v0 }
 0x6e9   : > { %v4524_v38 = vmul.f32 %v4520_v58, %v7572_v50  ;;  %v4525_v17 = vmul.f32 %v4521_v63, %v7573_v30 }
 0x6eb   : > { %v4531_v51 = vpop.permute.xlu1 %4530  ;;  %v4553_v2 = vpop.permute.xlu0 %4552  ;;  %v4526_v9 = vadd.f32 %v4524_v38, %v4514_v19  ;;  %v4527_v31 = vadd.f32 %v4525_v17, %v4515_v53  ;;  %v7598_v38 = vld [vmem:[#allocation40_spill] sm:$0xff]  ;;  %v7599_v17 = vld [vmem:[#allocation41_spill] sm:$0xff] }
 0x6ec   : > { %v4532_v3 = vsel %vm7570_vm3, %v4529_v40, %v4531_v51  ;;  %v4533_v25 = vsel %vm7571_vm4, %v4531_v51, %v4529_v40 }
 0x6ed   : > { %v4536_v24 = vmul.f32 %v4532_v3, %v7576_v20  ;;  %v4537_v10 = vmul.f32 %v4533_v25, %v7577_v45  ;;  %v7596_v25 = vld [vmem:[#allocation38_spill] sm:$0xff] }
 0x6ef   : > { %v4543_v32 = vpop.permute.xlu1 %4542  ;;  %v4565_v21 = vpop.permute.xlu0 %4564  ;;  %v4538_v46 = vadd.f32 %v4536_v24, %v4526_v9  ;;  %v4539_v39 = vadd.f32 %v4537_v10, %v4527_v31  ;;  %v7600_v24 = vld [vmem:[#allocation44_spill] sm:$0xff]  ;;  %v7601_v10 = vld [vmem:[#allocation43_spill] sm:$0xff] }
 0x6f0   : > { %v4544_v22 = vsel %vm7574_vm5, %v4541_v35, %v4543_v32  ;;  %v4545_v33 = vsel %vm7575_vm6, %v4543_v32, %v4541_v35 }
 0x6f1   : > { %v4548_v5 = vmul.f32 %v4544_v22, %v7578_v36  ;;  %v4549_v4 = vmul.f32 %v4545_v33, %v7579_v37 }
 0x6f3   : > { %v4555_v49 = vpop.permute.xlu1 %4554  ;;  %v4601_v18 = vpop.permute.xlu0 %4600  ;;  %v4550_v59 = vadd.f32 %v4548_v5, %v4538_v46  ;;  %v4551_v40 = vadd.f32 %v4549_v4, %v4539_v39  ;;  %v4768_v4 = vld [vmem:[%s5471_s20 + $0x30] sm:$0xff] }
 0x6f4   : > { %v4556_v8 = vsel %vm7580_vm7, %v4553_v2, %v4555_v49  ;;  %v4557_v0 = vsel %vm7581_vm8, %v4555_v49, %v4553_v2  ;;  %v4769_v49 = vld [vmem:[%s5471_s20 + $0x38] sm:$0xff]  ;;  %s5151_s20 = scalar_lea.vmem %s5150_s14, 2048 }
 0x6f5   : > { %v4560_v29 = vmul.f32 %v4556_v8, %v7582_v23  ;;  %v4561_v47 = vmul.f32 %v4557_v0, %v7583_v1  ;;  %p5153_p9 = scmp.lt.s32.totalorder %s5151_s20, %s5145_s26 }
 0x6f7   : > { %v4567_v56 = vpop.permute.xlu1 %4566  ;;  %v4579_v43 = vpop.permute.xlu0 %4578  ;;  %v4562_v35 = vadd.f32 %v4560_v29, %v4550_v59  ;;  %v4563_v42 = vadd.f32 %v4561_v47, %v4551_v40  ;;  %p5154_p12 = por %p5153_p9, %p5152_p5 }
 0x6f8   : > { %v4568_v12 = vsel %vm7584_vm9, %v4565_v21, %v4567_v56  ;;  %v4569_v7 = vsel %vm7585_vm10, %v4567_v56, %v4565_v21  ;;  %v4580_v61 = vsel %vm7587_vm11, %v7586_v13, %v4579_v43  ;;  %v4581_v14 = vsel %vm7588_vm12, %v4579_v43, %v7586_v13 }
 0x6f9   : > { %v4572_v60 = vmul.f32 %v4568_v12, %v7589_v11  ;;  %v4573_v48 = vmul.f32 %v4569_v7, %v7590_v15  ;;  %v4584_v34 = vmul.f32 %v4580_v61, %v7591_v27  ;;  %v4585_v51 = vmul.f32 %v4581_v14, %v7592_v52  ;;  %p5155_p2 = pnand %p5154_p12, %p5148_p3 }
 0x6fb   : > { %v4574_v28 = vadd.f32 %v4572_v60, %v4562_v35  ;;  %v4575_v16 = vadd.f32 %v4573_v48, %v4563_v42  ;;  %v4603_v2 = vpop.permute.xlu1 %4602  ;;  %v4591_v58 = vpop.permute.xlu0 %4590 }
 0x6fc   : > { %v4604_v63 = vsel %vm1189_vm14, %v4601_v18, %v4603_v2  ;;  %v4605_v44 = vsel %vm1189_vm14, %v4603_v2, %v4601_v18  ;;  %v4592_v55 = vsel %vm7594_vm1, %v7593_v54, %v4591_v58  ;;  %v4593_v26 = vsel %vm7595_vm13, %v4591_v58, %v7593_v54  ;;  %v7603_v18 = vld [vmem:[#allocation42_spill] sm:$0xff] }
 0x6fd   : > { %v4586_v62 = vadd.f32 %v4584_v34, %v4574_v28  ;;  %v4587_v3 = vadd.f32 %v4585_v51, %v4575_v16  ;;  %v4596_v57 = vmul.f32 %v4592_v55, %v7596_v25  ;;  %v4597_v50 = vmul.f32 %v4593_v26, %v7597_v6 }
 0x6fe   : > { %v4608_v30 = vmul.f32 %v4604_v63, %v7598_v38  ;;  %v4609_v32 = vmul.f32 %v4605_v44, %v7599_v17 }
 0x6ff   : > { %v4615_v21 = vpop.permute.xlu1 %4614  ;;  %v4613_v22 = vpop.permute.xlu0 %4612  ;;  %v4598_v33 = vadd.f32 %v4596_v57, %v4586_v62  ;;  %v4599_v19 = vadd.f32 %v4597_v50, %v4587_v3 }
 0x700   : > { %v4616_v53 = vsel %vm1205_vm15, %v4613_v22, %v4615_v21  ;;  %v4617_v20 = vsel %vm1205_vm15, %v4615_v21, %v4613_v22 }
 0x701   : > { %v4620_v45 = vmul.f32 %v4616_v53, %v7600_v24  ;;  %v4621_v9 = vmul.f32 %v4617_v20, %v7601_v10  ;;  %v4611_v31 = vadd.f32 %v4609_v32, %v4599_v19  ;;  %v4610_v36 = vadd.f32 %v4608_v30, %v4598_v33 }
 0x703   : > { %v4622_v5 = vadd.f32 %v4620_v45, %v4610_v36  ;;  %v4623_v37 = vadd.f32 %v4621_v9, %v4611_v31 }
 0x705   : > { %v4624_v8 = vadd.f32 %v4622_v5, %v7603_v18  ;;  %v4625_v41 = vadd.f32 %v4623_v37, %v7603_v18 }
 0x707   : > { %v4635_v0 = vadd.f32 %v4768_v4, %v4624_v8  ;;  %v4636_v46 = vadd.f32 %v4769_v49, %v4625_v41 }
 0x709   : > { %4770 = vst [vmem:[%s6406_s11 + $0x30] sm:$0xff] %v4635_v0  ;;  %4771 = vst [vmem:[%s6406_s11 + $0x38] sm:$0xff] %v4636_v46 }
 0x70a   : > { %5158 = shalt.err (!%p5155_p2)
}
 0x70b   : > { %s5159_s11 = scalar_lea.hbm %s7167_s24, 1024  ;;  %s5163_s13 = scalar_lea.hbm %s7605_s28, 2048 }
 0x70c   : > { %p5160_p13 = scmp.ne.s32.totalorder %s7167_s24, %s5159_s11  ;;  %p5164_p4 = scmp.lt.u32.totalorder %s7167_s24, %s7605_s28 }
 0x70d   : > { %p5165_p7 = scmp.lt.u32.totalorder %s5163_s13, %s5159_s11  ;;  %p5167_p11 = scmp.lt.u32.totalorder %s5159_s11, %s7167_s24 }
 0x70e   : > { %p5161_p6 = pnand %p5160_p13, %p7606_p0 }
 0x70f   : > { %p5166_p8 = por %p5165_p7, %p5164_p4 }
 0x710   : > { %p5162_p10 = pneg %p5161_p6 }
 0x711   : > { %p5168_p1 = por %p5167_p11, %p5166_p8 }
 0x713   : > { %p5169_p3 = pnand %p5168_p1, %p5162_p10 }
 0x715   : > { %5172 = shalt.err (!%p5169_p3)
}
 0x716   : > { %s5251_s7 = smov 256  }
 0x717   : > { %4912 = dma.vmem_to_hbm [thread:$0]  (%p7606_p0), %s7169_s2, 1024, %s7167_s24, %s4640_s25, %s5251_s7, %s5251_s7, %s7497_s21  }
 0x718 PF: > { %s7607_s27 = sld [smem:[#allocation12_spill]]  ;;  %s7608_s29 = sld [smem:[#allocation16_spill]] }
 0x719   : > { %s7609_s18 = sld [smem:[#allocation15_spill]] }
 0x71e   : > { %s4669_s16 = sand.u32 1, %s7607_s27   ;;  %p7610_p5 = scmp.ne.s32.totalorder %s7608_s29, 0 }
 0x71f   : > { %p7611_p9 = scmp.ge.s32.totalorder %s7609_s18, 2  ;;  %s4670_s17 = scalar_lea.sflag [#allocation4], %s4669_s16 }
 0x721   : > { %p4926_p12 = pnand %p7611_p9, %p7610_p5 }
 0x723   : > { %5198 = dma.done.wait (!%p4926_p12), %s4670_s17, 1024  }
 0x724   : > { %5200 = vsyncadd (!%p4926_p12), %s4670_s17, 4294966272  ;;  %s7612_s24 = sld [smem:[#allocation17_spill]]  ;;  %s7613_s21 = sld [smem:[#allocation13_spill]] }
 0x725   : > { %s7614_s22 = sld [smem:[#allocation14_spill]]  ;;  %s7615_s23 = sld [smem:[#allocation18_spill]] }
 0x72a   : > { %p20_p2 = scmp.ge.s32.totalorder %s7612_s24, 4  }
 0x72c   :  { %22 = sbr.rel (!%p20_p2) target bundleno = 13 (0xd), region = 147 }
 0x733   :  { %4675 = vsyncpa [#allocation3], 1 }
 0x734   :  { %4677 = vsyncpa [#allocation3 + $0x1], 1 }
 0x735   :  { %4678 = vsyncpa [#allocation6], 1 }
 0x736   :  { %4679 = vsyncpa [#allocation4], 1 }
 0x737   :  { %4681 = vsyncpa [#allocation4 + $0x1], 1 }

</bundles_post_ra>
